<compile_context>
chip_gen: v7x
topology: tpu7x:2x2x1
jax: 0.10.0
libtpu: 0.0.40
codegen_flags: <defaults>
</compile_context>

<pallas_src>
import math
import functools

import jax
import jax.numpy as jnp
from jax.experimental import pallas as pl
from jax.experimental.pallas import tpu as pltpu

NUM_HEADS = 8


def _round_up(x, m):
    return (x + m - 1) // m * m


def _i_s_attention_kernel(intent_ref, slot_ref, mask_ref,
                          w_int_ref, b_int_ref, w_slot_ref, b_slot_ref,
                          out_ref, *, block_b, seq, hidden, out_size,
                          out_cols, num_heads):
    """One grid step = `block_b` batch elements.

    intent_ref/slot_ref : [block_b*seq, Din]        bf16 (flattened token rows)
    mask_ref            : [block_b, seq]            f32
    w_int_ref           : [Din, n_cols_pad]         bf16  [Wq*s | Wk_slot | Wv_slot | 0pad]
    w_slot_ref          : [Din, n_cols_pad]         bf16  [Wq_slot*s | Wk | Wv | 0pad]
    b_*_ref             : [1,   n_cols_pad]         f32
    out_ref             : [block_b*seq, out_cols]   [slot ctx | intent ctx | 0pad]
    """
    head = hidden // num_heads
    v_head = out_size // num_heads
    rows = block_b * seq
    bf16 = jnp.bfloat16

    # --- Two fused projection GEMMs (bf16 MXU, f32 accumulation), then ONE
    # --- bf16 cast so every downstream slab is half-width. -------------------
    proj_i = (jnp.dot(intent_ref[...], w_int_ref[...],
                      preferred_element_type=jnp.float32)
              + b_int_ref[...]).astype(bf16)
    proj_s = (jnp.dot(slot_ref[...], w_slot_ref[...],
                      preferred_element_type=jnp.float32)
              + b_slot_ref[...]).astype(bf16)

    # --- Fold heads and both branches into one batch dim. --------------------
    # Batch index = (h * 2 + branch) * block_b + b
    #   branch 0 = intent-output branch: Q(intent), K(slot),  V(slot)
    #   branch 1 = slot-output branch:   Q_slot(slot), K_slot(intent), V_slot(intent)
    # Only static lane slices + leading-dim reshapes/concats are used here.
    def heads(col0, width, first, second):
        pieces = []
        for h in range(num_heads):
            sl = slice(col0 + h * width, col0 + (h + 1) * width)
            pieces.append(first[:, sl].reshape(block_b, seq, width))
            pieces.append(second[:, sl].reshape(block_b, seq, width))
        return jnp.concatenate(pieces, axis=0)   # [2*num_heads*block_b, seq, width]

    q = heads(0, head, proj_i, proj_s)           # query scale already folded in
    k = heads(hidden, head, proj_s, proj_i)
    v = heads(2 * hidden, v_head, proj_s, proj_i)

    # Hoisted additive key mask: built once per grid step (no per-head rebuilds).
    neg = (1.0 - mask_ref[...]) * -10000.0                       # [block_b, seq]
    amask = jnp.broadcast_to(neg[None, :, None, :],
                             (2 * num_heads, block_b, 1, seq))
    amask = amask.reshape(2 * num_heads * block_b, 1, seq)

    # --- Exactly two batched matmuls total; softmax in f32 with the division
    # --- pushed to the EUP via approximate reciprocal. -----------------------
    s = jnp.einsum('bqd,bkd->bqk', q, k,
                   preferred_element_type=jnp.float32) + amask
    s = s - jnp.max(s, axis=-1, keepdims=True)
    p = jnp.exp(s)
    p = p * pl.reciprocal(jnp.sum(p, axis=-1, keepdims=True), approx=True)
    # TODO(synk): attention dropout (config.attention_dropout) is identity in
    # eval mode and is omitted here (kernel is eval-mode only).
    ctx = jnp.einsum('bqk,bkd->bqd', p.astype(bf16), v,
                     preferred_element_type=jnp.float32)
    # [2*num_heads*block_b, seq, v_head] -> (heads, branch, rows, v_head)
    ctx = ctx.reshape(num_heads, 2, rows, v_head).astype(out_ref.dtype)

    # --- Lane-dense output assembly: write head slices straight into the
    # --- output block (acts as the VMEM accumulator; no wide lane concat). ---
    for h in range(num_heads):
        out_ref[:, h * v_head:(h + 1) * v_head] = ctx[h, 1]                    # slot branch
        out_ref[:, out_size + h * v_head:out_size + (h + 1) * v_head] = ctx[h, 0]  # intent
    if out_cols > 2 * out_size:   # zero the 128-lane padding tail (trimmed in wrapper)
        out_ref[:, 2 * out_size:] = jnp.zeros(
            (rows, out_cols - 2 * out_size), out_ref.dtype)


def prepare_i_s_attention_params(params, num_heads=NUM_HEADS):
    """One-time parameter prep (NOT per forward call).

    Transposes the PyTorch [out, in] weights to [in, out], fuses the six
    projections into two GEMM weights, folds the 1/sqrt(head_size) query scale
    in, pads the fused width up to a multiple of 128 lanes, and casts weights
    to bf16 (biases stay f32).
    """
    hidden = params["wq"].shape[0]
    out_size = params["wv"].shape[0]
    scale = 1.0 / math.sqrt(hidden // num_heads)

    w_int = jnp.concatenate([params["wq"].T * scale,
                             params["wk_slot"].T,
                             params["wv_slot"].T], axis=1)
    b_int = jnp.concatenate([params["bq"] * scale,
                             params["bk_slot"],
                             params["bv_slot"]], axis=0)
    w_slot = jnp.concatenate([params["wq_slot"].T * scale,
                              params["wk"].T,
                              params["wv"].T], axis=1)
    b_slot = jnp.concatenate([params["bq_slot"] * scale,
                              params["bk"],
                              params["bv"]], axis=0)

    n_cols = 2 * hidden + out_size
    n_cols_pad = _round_up(n_cols, 128)          # lane-dense projection output
    if n_cols_pad > n_cols:
        din = w_int.shape[0]
        zw = jnp.zeros((din, n_cols_pad - n_cols), w_int.dtype)
        zb = jnp.zeros((n_cols_pad - n_cols,), b_int.dtype)
        w_int = jnp.concatenate([w_int, zw], axis=1)
        b_int = jnp.concatenate([b_int, zb], axis=0)
        w_slot = jnp.concatenate([w_slot, zw], axis=1)
        b_slot = jnp.concatenate([b_slot, zb], axis=0)

    return {"w_int": w_int.astype(jnp.bfloat16),
            "b_int": b_int[None, :].astype(jnp.float32),
            "w_slot": w_slot.astype(jnp.bfloat16),
            "b_slot": b_slot[None, :].astype(jnp.float32)}


def _choose_blocking(B, S, Din, n_cols, out_cols, out_itemsize, num_heads,
                     vmem_budget_bytes, min_steps=1):
    """Pick (block_b, padded_B) so one grid step fits the VMEM budget.

    The budget covers the double-buffered pipeline blocks plus the in-kernel
    intermediates; ~40 MiB leaves headroom on v7x (64 MiB physical VMEM) and
    is comfortably inside v5e/v6e's 128 MiB.
    """
    per_b = S * (
        2 * Din * 2 * 2                   # two bf16 input blocks x double buffer
        + out_cols * out_itemsize * 2     # output block x double buffer
        + 2 * n_cols * (4 + 2 + 2)        # f32 GEMM accum + bf16 proj + q/k/v copies
        + 2 * num_heads * S * 4 * 2       # scores + probs (f32, both branches)
    )
    cap = max(8, int(vmem_budget_bytes // max(per_b, 1)) // 8 * 8)

    if B <= cap:
        block_b, b_pad = B, B             # whole batch in one block
    else:
        best = None
        for cand in range(8, cap + 1, 8):
            b_pad = _round_up(B, cand)
            key = (b_pad - B, -cand)      # least padding, then biggest block
            if best is None or key < best[0]:
                best = (key, cand, b_pad)
        block_b, b_pad = best[1], best[2]

    # When sharding grid steps across TensorCores (v7x), ensure >= min_steps.
    if min_steps > 1 and b_pad // block_b < min_steps and block_b > 8:
        block_b = max(8, _round_up((block_b + min_steps - 1) // min_steps, 8))
        b_pad = _round_up(B, block_b)
    return block_b, b_pad


def i_s_self_attention(intent, slot, mask, prepped, *, hidden_size, out_size,
                       num_heads=NUM_HEADS, block_b=None,
                       out_dtype=jnp.float32,
                       vmem_budget_bytes=40 * 1024 * 1024,
                       core_parallel=False,          # set True on v7x (2 TCs)
                       single_buffer_weights=False): # invariant-weight VMEM saver
    """Returns (context_layer_slot_branch, context_layer_intent_branch)."""
    B, S, Din = intent.shape
    n_cols_pad = prepped["w_int"].shape[1]
    out_cols = _round_up(2 * out_size, 128)          # lane-dense output block
    out_itemsize = jnp.dtype(out_dtype).itemsize

    if block_b is None:
        block_b, b_pad = _choose_blocking(
            B, S, Din, n_cols_pad, out_cols, out_itemsize, num_heads,
            vmem_budget_bytes, min_steps=2 if core_parallel else 1)
    else:
        assert block_b == B or block_b % 8 == 0, "mask block must satisfy (8,*) tiling"
        b_pad = _round_up(B, block_b)

    rows = block_b * S
    grid = (b_pad // block_b,)

    intent2 = intent.astype(jnp.bfloat16).reshape(B * S, Din)
    slot2 = slot.astype(jnp.bfloat16).reshape(B * S, Din)
    mask2 = mask.astype(jnp.float32)
    if b_pad > B:                                    # pad batch (fully-masked rows)
        zrow = jnp.zeros(((b_pad - B) * S, Din), jnp.bfloat16)
        intent2 = jnp.concatenate([intent2, zrow], axis=0)
        slot2 = jnp.concatenate([slot2, zrow], axis=0)
        mask2 = jnp.concatenate(
            [mask2, jnp.zeros((b_pad - B, S), jnp.float32)], axis=0)

    kernel = functools.partial(
        _i_s_attention_kernel, block_b=block_b, seq=S, hidden=hidden_size,
        out_size=out_size, out_cols=out_cols, num_heads=num_heads)

    def weight_spec(shape):
        # Constant-index blocks: resident across all grid steps.  Optionally
        # single-buffered (no double-buffer needed for invariant blocks).
        if single_buffer_weights:
            return pl.BlockSpec(shape, lambda b: (0, 0),
                                pipeline_mode=pl.Buffered(1))
        return pl.BlockSpec(shape, lambda b: (0, 0))

    grid_spec = pltpu.PrefetchScalarGridSpec(
        num_scalar_prefetch=0,
        grid=grid,
        in_specs=[
            pl.BlockSpec((rows, Din), lambda b: (b, 0)),     # intent rows (bf16)
            pl.BlockSpec((rows, Din), lambda b: (b, 0)),     # slot rows (bf16)
            pl.BlockSpec((block_b, S), lambda b: (b, 0)),    # mask (f32)
            weight_spec((Din, n_cols_pad)), weight_spec((1, n_cols_pad)),
            weight_spec((Din, n_cols_pad)), weight_spec((1, n_cols_pad)),
        ],
        out_specs=pl.BlockSpec((rows, out_cols), lambda b: (b, 0)),
    )

    dims = (pltpu.CORE_PARALLEL,) if core_parallel else ("parallel",)
    vmem_limit = int(min(vmem_budget_bytes + (8 << 20), 48 << 20))

    out = pl.pallas_call(
        kernel,
        out_shape=jax.ShapeDtypeStruct((b_pad * S, out_cols), out_dtype),
        grid_spec=grid_spec,
        compiler_params=pltpu.CompilerParams(
            dimension_semantics=dims,
            vmem_limit_bytes=vmem_limit),
    )(intent2, slot2, mask2,
      prepped["w_int"], prepped["b_int"], prepped["w_slot"], prepped["b_slot"])

    out3 = out.reshape(b_pad, S, out_cols)[:B]
    return out3[..., :out_size], out3[..., out_size:2 * out_size]


def _reference(intent, slot, mask, params, num_heads=NUM_HEADS):
    """Pure-JAX (f32) mirror of the PyTorch forward (eval mode)."""
    hidden = params["wq"].shape[0]
    head_size = hidden // num_heads

    def linear(x, w, b):
        return x @ w.T + b

    def split_heads(x):
        B, S, D = x.shape
        return x.reshape(B, S, num_heads, D // num_heads).transpose(0, 2, 1, 3)

    q = split_heads(linear(intent, params["wq"], params["bq"]))
    k = split_heads(linear(slot, params["wk"], params["bk"]))
    v = split_heads(linear(slot, params["wv"], params["bv"]))
    qs = split_heads(linear(slot, params["wq_slot"], params["bq_slot"]))
    ks = split_heads(linear(intent, params["wk_slot"], params["bk_slot"]))
    vs = split_heads(linear(intent, params["wv_slot"], params["bv_slot"]))

    amask = (1.0 - mask.astype(jnp.float32))[:, None, None, :] * -10000.0

    def attn(qh, kh, vh):
        s = jnp.einsum('bhqd,bhkd->bhqk', qh, kh) / math.sqrt(head_size) + amask
        p = jax.nn.softmax(s, axis=-1)
        c = jnp.einsum('bhqk,bhkd->bhqd', p, vh)
        B, H, S, dv = c.shape
        return c.transpose(0, 2, 1, 3).reshape(B, S, H * dv)

    ctx_intent = attn(q, k, v)
    ctx_slot = attn(qs, ks, vs)
    return ctx_slot, ctx_intent


def _init_params(key, input_size, hidden_size, out_size):
    keys = jax.random.split(key, 12)
    s = 0.02
    return {
        "wq": jax.random.normal(keys[0], (hidden_size, input_size), jnp.float32) * s,
        "bq": jax.random.normal(keys[1], (hidden_size,), jnp.float32) * s,
        "wq_slot": jax.random.normal(keys[2], (hidden_size, input_size), jnp.float32) * s,
        "bq_slot": jax.random.normal(keys[3], (hidden_size,), jnp.float32) * s,
        "wk": jax.random.normal(keys[4], (hidden_size, input_size), jnp.float32) * s,
        "bk": jax.random.normal(keys[5], (hidden_size,), jnp.float32) * s,
        "wk_slot": jax.random.normal(keys[6], (hidden_size, input_size), jnp.float32) * s,
        "bk_slot": jax.random.normal(keys[7], (hidden_size,), jnp.float32) * s,
        "wv": jax.random.normal(keys[8], (out_size, input_size), jnp.float32) * s,
        "bv": jax.random.normal(keys[9], (out_size,), jnp.float32) * s,
        "wv_slot": jax.random.normal(keys[10], (out_size, input_size), jnp.float32) * s,
        "bv_slot": jax.random.normal(keys[11], (out_size,), jnp.float32) * s,
    }


if __name__ == "__main__":
    B, S = 2, 8
    input_size, hidden_size, out_size = 32, 32, 32

    key = jax.random.PRNGKey(0)
    k_int, k_slot, k_param = jax.random.split(key, 3)
    intent = jax.random.normal(k_int, (B, S, input_size), jnp.float32)
    slot = jax.random.normal(k_slot, (B, S, input_size), jnp.float32)
    # mask: first 6 / 4 tokens valid for the two batch elements.
    mask = jnp.array([[1, 1, 1, 1, 1, 1, 0, 0],
                      [1, 1, 1, 1, 0, 0, 0, 0]], dtype=jnp.float32)

    params = _init_params(k_param, input_size, hidden_size, out_size)
    prepped = prepare_i_s_attention_params(params)   # one-time prep, not per call

    out_slot, out_intent = i_s_self_attention(
        intent, slot, mask, prepped, hidden_size=hidden_size, out_size=out_size)
    jax.block_until_ready((out_slot, out_intent))

    ref_slot, ref_intent = _reference(intent, slot, mask, params)
    assert out_slot.shape == (B, S, out_size)
    assert out_intent.shape == (B, S, out_size)
    # bf16 MXU matmuls + approximate reciprocal -> relaxed tolerance vs f32 ref.
    assert jnp.allclose(out_slot, ref_slot, atol=2e-2, rtol=2e-2)
    assert jnp.allclose(out_intent, ref_intent, atol=2e-2, rtol=2e-2)

    print("KERNEL_OK")
</pallas_src>

<mosaic_0001>
module attributes {stable_mosaic.version = 11 : i64} {
  func.func @_i_s_attention_kernel(%arg0: i32, %arg1: memref<16x32xbf16, #tpu.memory_space<vmem>>, %arg2: memref<16x32xbf16, #tpu.memory_space<vmem>>, %arg3: memref<2x8xf32, #tpu.memory_space<vmem>>, %arg4: memref<32x128xbf16, #tpu.memory_space<vmem>>, %arg5: memref<1x128xf32, #tpu.memory_space<vmem>>, %arg6: memref<32x128xbf16, #tpu.memory_space<vmem>>, %arg7: memref<1x128xf32, #tpu.memory_space<vmem>>, %arg8: memref<16x128xf32, #tpu.memory_space<vmem>>) attributes {dimension_semantics = [#tpu.dimension_semantics<parallel>], iteration_bounds = array<i64: 1>, scalar_prefetch = 0 : i64, scratch_operands = 0 : i64, tpu.core_type = #tpu.core_type<tc>, window_params = [{transform_indices = @transform_0, window_bounds = array<i64: 16, 32>}, {transform_indices = @transform_1, window_bounds = array<i64: 16, 32>}, {transform_indices = @transform_2, window_bounds = array<i64: 2, 8>}, {pipeline_mode = #tpu.pipeline_mode<synchronous>, transform_indices = @transform_3, window_bounds = array<i64: 32, 128>}, {pipeline_mode = #tpu.pipeline_mode<synchronous>, transform_indices = @transform_4, window_bounds = array<i64: 1, 128>}, {pipeline_mode = #tpu.pipeline_mode<synchronous>, transform_indices = @transform_5, window_bounds = array<i64: 32, 128>}, {pipeline_mode = #tpu.pipeline_mode<synchronous>, transform_indices = @transform_6, window_bounds = array<i64: 1, 128>}, {transform_indices = @transform_7, window_bounds = array<i64: 16, 128>}]} {
    %c0 = arith.constant 0 : index
    %c0_0 = arith.constant 0 : index
    %0 = vector.load %arg1[%c0, %c0_0] : memref<16x32xbf16, #tpu.memory_space<vmem>>, vector<16x32xbf16>
    %c0_1 = arith.constant 0 : index
    %c0_2 = arith.constant 0 : index
    %1 = vector.load %arg4[%c0_1, %c0_2] : memref<32x128xbf16, #tpu.memory_space<vmem>>, vector<32x128xbf16>
    %cst = arith.constant dense<0.000000e+00> : vector<16x128xf32>
    %2 = tpu.matmul %0, %1, %cst {dimension_numbers = #tpu.dot_dimension_numbers<[1], [0], [0], [1], [0, 0, 1, 1], [], []>} : vector<16x32xbf16>, vector<32x128xbf16>, vector<16x128xf32> -> vector<16x128xf32>
    %c0_3 = arith.constant 0 : index
    %c0_4 = arith.constant 0 : index
    %3 = vector.load %arg5[%c0_3, %c0_4] : memref<1x128xf32, #tpu.memory_space<vmem>>, vector<1x128xf32>
    %4 = vector.broadcast %3 : vector<1x128xf32> to vector<16x128xf32>
    %5 = arith.addf %2, %4 : vector<16x128xf32>
    %6 = arith.truncf %5 : vector<16x128xf32> to vector<16x128xbf16>
    %c0_5 = arith.constant 0 : index
    %c0_6 = arith.constant 0 : index
    %7 = vector.load %arg2[%c0_5, %c0_6] : memref<16x32xbf16, #tpu.memory_space<vmem>>, vector<16x32xbf16>
    %c0_7 = arith.constant 0 : index
    %c0_8 = arith.constant 0 : index
    %8 = vector.load %arg6[%c0_7, %c0_8] : memref<32x128xbf16, #tpu.memory_space<vmem>>, vector<32x128xbf16>
    %cst_9 = arith.constant dense<0.000000e+00> : vector<16x128xf32>
    %9 = tpu.matmul %7, %8, %cst_9 {dimension_numbers = #tpu.dot_dimension_numbers<[1], [0], [0], [1], [0, 0, 1, 1], [], []>} : vector<16x32xbf16>, vector<32x128xbf16>, vector<16x128xf32> -> vector<16x128xf32>
    %c0_10 = arith.constant 0 : index
    %c0_11 = arith.constant 0 : index
    %10 = vector.load %arg7[%c0_10, %c0_11] : memref<1x128xf32, #tpu.memory_space<vmem>>, vector<1x128xf32>
    %11 = vector.broadcast %10 : vector<1x128xf32> to vector<16x128xf32>
    %12 = arith.addf %9, %11 : vector<16x128xf32>
    %13 = arith.truncf %12 : vector<16x128xf32> to vector<16x128xbf16>
    %14 = vector.extract_strided_slice %6 {offsets = [0, 0], sizes = [16, 4], strides = [1, 1]} : vector<16x128xbf16> to vector<16x4xbf16>
    %15 = vector.shape_cast %14 : vector<16x4xbf16> to vector<2x8x4xbf16>
    %16 = vector.extract_strided_slice %13 {offsets = [0, 0], sizes = [16, 4], strides = [1, 1]} : vector<16x128xbf16> to vector<16x4xbf16>
    %17 = vector.shape_cast %16 : vector<16x4xbf16> to vector<2x8x4xbf16>
    %18 = vector.extract_strided_slice %6 {offsets = [0, 4], sizes = [16, 4], strides = [1, 1]} : vector<16x128xbf16> to vector<16x4xbf16>
    %19 = vector.shape_cast %18 : vector<16x4xbf16> to vector<2x8x4xbf16>
    %20 = vector.extract_strided_slice %13 {offsets = [0, 4], sizes = [16, 4], strides = [1, 1]} : vector<16x128xbf16> to vector<16x4xbf16>
    %21 = vector.shape_cast %20 : vector<16x4xbf16> to vector<2x8x4xbf16>
    %22 = vector.extract_strided_slice %6 {offsets = [0, 8], sizes = [16, 4], strides = [1, 1]} : vector<16x128xbf16> to vector<16x4xbf16>
    %23 = vector.shape_cast %22 : vector<16x4xbf16> to vector<2x8x4xbf16>
    %24 = vector.extract_strided_slice %13 {offsets = [0, 8], sizes = [16, 4], strides = [1, 1]} : vector<16x128xbf16> to vector<16x4xbf16>
    %25 = vector.shape_cast %24 : vector<16x4xbf16> to vector<2x8x4xbf16>
    %26 = vector.extract_strided_slice %6 {offsets = [0, 12], sizes = [16, 4], strides = [1, 1]} : vector<16x128xbf16> to vector<16x4xbf16>
    %27 = vector.shape_cast %26 : vector<16x4xbf16> to vector<2x8x4xbf16>
    %28 = vector.extract_strided_slice %13 {offsets = [0, 12], sizes = [16, 4], strides = [1, 1]} : vector<16x128xbf16> to vector<16x4xbf16>
    %29 = vector.shape_cast %28 : vector<16x4xbf16> to vector<2x8x4xbf16>
    %30 = vector.extract_strided_slice %6 {offsets = [0, 16], sizes = [16, 4], strides = [1, 1]} : vector<16x128xbf16> to vector<16x4xbf16>
    %31 = vector.shape_cast %30 : vector<16x4xbf16> to vector<2x8x4xbf16>
    %32 = vector.extract_strided_slice %13 {offsets = [0, 16], sizes = [16, 4], strides = [1, 1]} : vector<16x128xbf16> to vector<16x4xbf16>
    %33 = vector.shape_cast %32 : vector<16x4xbf16> to vector<2x8x4xbf16>
    %34 = vector.extract_strided_slice %6 {offsets = [0, 20], sizes = [16, 4], strides = [1, 1]} : vector<16x128xbf16> to vector<16x4xbf16>
    %35 = vector.shape_cast %34 : vector<16x4xbf16> to vector<2x8x4xbf16>
    %36 = vector.extract_strided_slice %13 {offsets = [0, 20], sizes = [16, 4], strides = [1, 1]} : vector<16x128xbf16> to vector<16x4xbf16>
    %37 = vector.shape_cast %36 : vector<16x4xbf16> to vector<2x8x4xbf16>
    %38 = vector.extract_strided_slice %6 {offsets = [0, 24], sizes = [16, 4], strides = [1, 1]} : vector<16x128xbf16> to vector<16x4xbf16>
    %39 = vector.shape_cast %38 : vector<16x4xbf16> to vector<2x8x4xbf16>
    %40 = vector.extract_strided_slice %13 {offsets = [0, 24], sizes = [16, 4], strides = [1, 1]} : vector<16x128xbf16> to vector<16x4xbf16>
    %41 = vector.shape_cast %40 : vector<16x4xbf16> to vector<2x8x4xbf16>
    %42 = vector.extract_strided_slice %6 {offsets = [0, 28], sizes = [16, 4], strides = [1, 1]} : vector<16x128xbf16> to vector<16x4xbf16>
    %43 = vector.shape_cast %42 : vector<16x4xbf16> to vector<2x8x4xbf16>
    %44 = vector.extract_strided_slice %13 {offsets = [0, 28], sizes = [16, 4], strides = [1, 1]} : vector<16x128xbf16> to vector<16x4xbf16>
    %45 = vector.shape_cast %44 : vector<16x4xbf16> to vector<2x8x4xbf16>
    %46 = tpu.concatenate %15, %17, %19, %21, %23, %25, %27, %29, %31, %33, %35, %37, %39, %41, %43, %45 in 0 : vector<2x8x4xbf16>, vector<2x8x4xbf16>, vector<2x8x4xbf16>, vector<2x8x4xbf16>, vector<2x8x4xbf16>, vector<2x8x4xbf16>, vector<2x8x4xbf16>, vector<2x8x4xbf16>, vector<2x8x4xbf16>, vector<2x8x4xbf16>, vector<2x8x4xbf16>, vector<2x8x4xbf16>, vector<2x8x4xbf16>, vector<2x8x4xbf16>, vector<2x8x4xbf16>, vector<2x8x4xbf16> -> vector<32x8x4xbf16>
    %47 = vector.extract_strided_slice %13 {offsets = [0, 32], sizes = [16, 4], strides = [1, 1]} : vector<16x128xbf16> to vector<16x4xbf16>
    %48 = vector.shape_cast %47 : vector<16x4xbf16> to vector<2x8x4xbf16>
    %49 = vector.extract_strided_slice %6 {offsets = [0, 32], sizes = [16, 4], strides = [1, 1]} : vector<16x128xbf16> to vector<16x4xbf16>
    %50 = vector.shape_cast %49 : vector<16x4xbf16> to vector<2x8x4xbf16>
    %51 = vector.extract_strided_slice %13 {offsets = [0, 36], sizes = [16, 4], strides = [1, 1]} : vector<16x128xbf16> to vector<16x4xbf16>
    %52 = vector.shape_cast %51 : vector<16x4xbf16> to vector<2x8x4xbf16>
    %53 = vector.extract_strided_slice %6 {offsets = [0, 36], sizes = [16, 4], strides = [1, 1]} : vector<16x128xbf16> to vector<16x4xbf16>
    %54 = vector.shape_cast %53 : vector<16x4xbf16> to vector<2x8x4xbf16>
    %55 = vector.extract_strided_slice %13 {offsets = [0, 40], sizes = [16, 4], strides = [1, 1]} : vector<16x128xbf16> to vector<16x4xbf16>
    %56 = vector.shape_cast %55 : vector<16x4xbf16> to vector<2x8x4xbf16>
    %57 = vector.extract_strided_slice %6 {offsets = [0, 40], sizes = [16, 4], strides = [1, 1]} : vector<16x128xbf16> to vector<16x4xbf16>
    %58 = vector.shape_cast %57 : vector<16x4xbf16> to vector<2x8x4xbf16>
    %59 = vector.extract_strided_slice %13 {offsets = [0, 44], sizes = [16, 4], strides = [1, 1]} : vector<16x128xbf16> to vector<16x4xbf16>
    %60 = vector.shape_cast %59 : vector<16x4xbf16> to vector<2x8x4xbf16>
    %61 = vector.extract_strided_slice %6 {offsets = [0, 44], sizes = [16, 4], strides = [1, 1]} : vector<16x128xbf16> to vector<16x4xbf16>
    %62 = vector.shape_cast %61 : vector<16x4xbf16> to vector<2x8x4xbf16>
    %63 = vector.extract_strided_slice %13 {offsets = [0, 48], sizes = [16, 4], strides = [1, 1]} : vector<16x128xbf16> to vector<16x4xbf16>
    %64 = vector.shape_cast %63 : vector<16x4xbf16> to vector<2x8x4xbf16>
    %65 = vector.extract_strided_slice %6 {offsets = [0, 48], sizes = [16, 4], strides = [1, 1]} : vector<16x128xbf16> to vector<16x4xbf16>
    %66 = vector.shape_cast %65 : vector<16x4xbf16> to vector<2x8x4xbf16>
    %67 = vector.extract_strided_slice %13 {offsets = [0, 52], sizes = [16, 4], strides = [1, 1]} : vector<16x128xbf16> to vector<16x4xbf16>
    %68 = vector.shape_cast %67 : vector<16x4xbf16> to vector<2x8x4xbf16>
    %69 = vector.extract_strided_slice %6 {offsets = [0, 52], sizes = [16, 4], strides = [1, 1]} : vector<16x128xbf16> to vector<16x4xbf16>
    %70 = vector.shape_cast %69 : vector<16x4xbf16> to vector<2x8x4xbf16>
    %71 = vector.extract_strided_slice %13 {offsets = [0, 56], sizes = [16, 4], strides = [1, 1]} : vector<16x128xbf16> to vector<16x4xbf16>
    %72 = vector.shape_cast %71 : vector<16x4xbf16> to vector<2x8x4xbf16>
    %73 = vector.extract_strided_slice %6 {offsets = [0, 56], sizes = [16, 4], strides = [1, 1]} : vector<16x128xbf16> to vector<16x4xbf16>
    %74 = vector.shape_cast %73 : vector<16x4xbf16> to vector<2x8x4xbf16>
    %75 = vector.extract_strided_slice %13 {offsets = [0, 60], sizes = [16, 4], strides = [1, 1]} : vector<16x128xbf16> to vector<16x4xbf16>
    %76 = vector.shape_cast %75 : vector<16x4xbf16> to vector<2x8x4xbf16>
    %77 = vector.extract_strided_slice %6 {offsets = [0, 60], sizes = [16, 4], strides = [1, 1]} : vector<16x128xbf16> to vector<16x4xbf16>
    %78 = vector.shape_cast %77 : vector<16x4xbf16> to vector<2x8x4xbf16>
    %79 = tpu.concatenate %48, %50, %52, %54, %56, %58, %60, %62, %64, %66, %68, %70, %72, %74, %76, %78 in 0 : vector<2x8x4xbf16>, vector<2x8x4xbf16>, vector<2x8x4xbf16>, vector<2x8x4xbf16>, vector<2x8x4xbf16>, vector<2x8x4xbf16>, vector<2x8x4xbf16>, vector<2x8x4xbf16>, vector<2x8x4xbf16>, vector<2x8x4xbf16>, vector<2x8x4xbf16>, vector<2x8x4xbf16>, vector<2x8x4xbf16>, vector<2x8x4xbf16>, vector<2x8x4xbf16>, vector<2x8x4xbf16> -> vector<32x8x4xbf16>
    %80 = vector.extract_strided_slice %13 {offsets = [0, 64], sizes = [16, 4], strides = [1, 1]} : vector<16x128xbf16> to vector<16x4xbf16>
    %81 = vector.shape_cast %80 : vector<16x4xbf16> to vector<2x8x4xbf16>
    %82 = vector.extract_strided_slice %6 {offsets = [0, 64], sizes = [16, 4], strides = [1, 1]} : vector<16x128xbf16> to vector<16x4xbf16>
    %83 = vector.shape_cast %82 : vector<16x4xbf16> to vector<2x8x4xbf16>
    %84 = vector.extract_strided_slice %13 {offsets = [0, 68], sizes = [16, 4], strides = [1, 1]} : vector<16x128xbf16> to vector<16x4xbf16>
    %85 = vector.shape_cast %84 : vector<16x4xbf16> to vector<2x8x4xbf16>
    %86 = vector.extract_strided_slice %6 {offsets = [0, 68], sizes = [16, 4], strides = [1, 1]} : vector<16x128xbf16> to vector<16x4xbf16>
    %87 = vector.shape_cast %86 : vector<16x4xbf16> to vector<2x8x4xbf16>
    %88 = vector.extract_strided_slice %13 {offsets = [0, 72], sizes = [16, 4], strides = [1, 1]} : vector<16x128xbf16> to vector<16x4xbf16>
    %89 = vector.shape_cast %88 : vector<16x4xbf16> to vector<2x8x4xbf16>
    %90 = vector.extract_strided_slice %6 {offsets = [0, 72], sizes = [16, 4], strides = [1, 1]} : vector<16x128xbf16> to vector<16x4xbf16>
    %91 = vector.shape_cast %90 : vector<16x4xbf16> to vector<2x8x4xbf16>
    %92 = vector.extract_strided_slice %13 {offsets = [0, 76], sizes = [16, 4], strides = [1, 1]} : vector<16x128xbf16> to vector<16x4xbf16>
    %93 = vector.shape_cast %92 : vector<16x4xbf16> to vector<2x8x4xbf16>
    %94 = vector.extract_strided_slice %6 {offsets = [0, 76], sizes = [16, 4], strides = [1, 1]} : vector<16x128xbf16> to vector<16x4xbf16>
    %95 = vector.shape_cast %94 : vector<16x4xbf16> to vector<2x8x4xbf16>
    %96 = vector.extract_strided_slice %13 {offsets = [0, 80], sizes = [16, 4], strides = [1, 1]} : vector<16x128xbf16> to vector<16x4xbf16>
    %97 = vector.shape_cast %96 : vector<16x4xbf16> to vector<2x8x4xbf16>
    %98 = vector.extract_strided_slice %6 {offsets = [0, 80], sizes = [16, 4], strides = [1, 1]} : vector<16x128xbf16> to vector<16x4xbf16>
    %99 = vector.shape_cast %98 : vector<16x4xbf16> to vector<2x8x4xbf16>
    %100 = vector.extract_strided_slice %13 {offsets = [0, 84], sizes = [16, 4], strides = [1, 1]} : vector<16x128xbf16> to vector<16x4xbf16>
    %101 = vector.shape_cast %100 : vector<16x4xbf16> to vector<2x8x4xbf16>
    %102 = vector.extract_strided_slice %6 {offsets = [0, 84], sizes = [16, 4], strides = [1, 1]} : vector<16x128xbf16> to vector<16x4xbf16>
    %103 = vector.shape_cast %102 : vector<16x4xbf16> to vector<2x8x4xbf16>
    %104 = vector.extract_strided_slice %13 {offsets = [0, 88], sizes = [16, 4], strides = [1, 1]} : vector<16x128xbf16> to vector<16x4xbf16>
    %105 = vector.shape_cast %104 : vector<16x4xbf16> to vector<2x8x4xbf16>
    %106 = vector.extract_strided_slice %6 {offsets = [0, 88], sizes = [16, 4], strides = [1, 1]} : vector<16x128xbf16> to vector<16x4xbf16>
    %107 = vector.shape_cast %106 : vector<16x4xbf16> to vector<2x8x4xbf16>
    %108 = vector.extract_strided_slice %13 {offsets = [0, 92], sizes = [16, 4], strides = [1, 1]} : vector<16x128xbf16> to vector<16x4xbf16>
    %109 = vector.shape_cast %108 : vector<16x4xbf16> to vector<2x8x4xbf16>
    %110 = vector.extract_strided_slice %6 {offsets = [0, 92], sizes = [16, 4], strides = [1, 1]} : vector<16x128xbf16> to vector<16x4xbf16>
    %111 = vector.shape_cast %110 : vector<16x4xbf16> to vector<2x8x4xbf16>
    %112 = tpu.concatenate %81, %83, %85, %87, %89, %91, %93, %95, %97, %99, %101, %103, %105, %107, %109, %111 in 0 : vector<2x8x4xbf16>, vector<2x8x4xbf16>, vector<2x8x4xbf16>, vector<2x8x4xbf16>, vector<2x8x4xbf16>, vector<2x8x4xbf16>, vector<2x8x4xbf16>, vector<2x8x4xbf16>, vector<2x8x4xbf16>, vector<2x8x4xbf16>, vector<2x8x4xbf16>, vector<2x8x4xbf16>, vector<2x8x4xbf16>, vector<2x8x4xbf16>, vector<2x8x4xbf16>, vector<2x8x4xbf16> -> vector<32x8x4xbf16>
    %c0_12 = arith.constant 0 : index
    %c0_13 = arith.constant 0 : index
    %113 = vector.load %arg3[%c0_12, %c0_13] : memref<2x8xf32, #tpu.memory_space<vmem>>, vector<2x8xf32>
    %cst_14 = arith.constant 1.000000e+00 : f32
    %114 = vector.broadcast %cst_14 : f32 to vector<2x8xf32>
    %115 = arith.subf %114, %113 : vector<2x8xf32>
    %cst_15 = arith.constant -1.000000e+04 : f32
    %116 = vector.broadcast %cst_15 : f32 to vector<2x8xf32>
    %117 = arith.mulf %115, %116 : vector<2x8xf32>
    %118 = vector.shape_cast %117 : vector<2x8xf32> to vector<1x2x1x8xf32>
    %119 = vector.shape_cast %118 : vector<1x2x1x8xf32> to vector<1x2x1x8xf32>
    %120 = vector.broadcast %119 : vector<1x2x1x8xf32> to vector<16x2x1x8xf32>
    %121 = vector.shape_cast %120 : vector<16x2x1x8xf32> to vector<32x1x8xf32>
    "tpu.trace_start"() <{level = 10 : i32, message = "bqd,bkd->bqk"}> : () -> ()
    %cst_16 = arith.constant dense<0.000000e+00> : vector<32x8x8xf32>
    %122 = tpu.matmul %46, %79, %cst_16 {dimension_numbers = #tpu.dot_dimension_numbers<[2], [2], [1], [1], [0, 0, 0, 1, 1, 1], [0], [0]>} : vector<32x8x4xbf16>, vector<32x8x4xbf16>, vector<32x8x8xf32> -> vector<32x8x8xf32>
    "tpu.trace_stop"() : () -> ()
    %123 = vector.broadcast %121 : vector<32x1x8xf32> to vector<32x8x8xf32>
    %124 = arith.addf %122, %123 : vector<32x8x8xf32>
    %cst_17 = arith.constant dense<0xFF800000> : vector<32x8xf32>
    %125 = vector.multi_reduction <maximumf>, %124, %cst_17 [2] : vector<32x8x8xf32> to vector<32x8xf32>
    %126 = vector.shape_cast %125 : vector<32x8xf32> to vector<32x8x1xf32>
    %127 = vector.broadcast %126 : vector<32x8x1xf32> to vector<32x8x8xf32>
    %128 = arith.subf %124, %127 : vector<32x8x8xf32>
    %129 = math.exp %128 : vector<32x8x8xf32>
    %cst_18 = arith.constant dense<0.000000e+00> : vector<32x8xf32>
    %130 = vector.multi_reduction <add>, %129, %cst_18 [2] : vector<32x8x8xf32> to vector<32x8xf32>
    %131 = vector.shape_cast %130 : vector<32x8xf32> to vector<32x8x1xf32>
    %132 = tpu.reciprocal %131 {approx = true} : vector<32x8x1xf32> -> vector<32x8x1xf32>
    %133 = vector.broadcast %132 : vector<32x8x1xf32> to vector<32x8x8xf32>
    %134 = arith.mulf %129, %133 : vector<32x8x8xf32>
    %135 = arith.truncf %134 : vector<32x8x8xf32> to vector<32x8x8xbf16>
    "tpu.trace_start"() <{level = 10 : i32, message = "bqk,bkd->bqd"}> : () -> ()
    %cst_19 = arith.constant dense<0.000000e+00> : vector<32x8x4xf32>
    %136 = tpu.matmul %135, %112, %cst_19 {dimension_numbers = #tpu.dot_dimension_numbers<[2], [1], [1], [2], [0, 0, 0, 1, 1, 2], [0], [0]>} : vector<32x8x8xbf16>, vector<32x8x4xbf16>, vector<32x8x4xf32> -> vector<32x8x4xf32>
    "tpu.trace_stop"() : () -> ()
    %137 = vector.shape_cast %136 : vector<32x8x4xf32> to vector<8x2x16x4xf32>
    %138 = vector.extract_strided_slice %137 {offsets = [0, 1, 0, 0], sizes = [1, 1, 16, 4], strides = [1, 1, 1, 1]} : vector<8x2x16x4xf32> to vector<1x1x16x4xf32>
    %139 = vector.shape_cast %138 : vector<1x1x16x4xf32> to vector<16x4xf32>
    %c0_20 = arith.constant 0 : index
    %c0_21 = arith.constant 0 : index
    %140 = vector.load %arg8[%c0_20, %c0_21] : memref<16x128xf32, #tpu.memory_space<vmem>>, vector<16x4xf32>
    tpu.vector_store %arg8[%c0_20, %c0_21], %139 {strides = array<i32>} : memref<16x128xf32, #tpu.memory_space<vmem>>, vector<16x4xf32>,
    %141 = vector.extract_strided_slice %137 {offsets = [0, 0, 0, 0], sizes = [1, 1, 16, 4], strides = [1, 1, 1, 1]} : vector<8x2x16x4xf32> to vector<1x1x16x4xf32>
    %142 = vector.shape_cast %141 : vector<1x1x16x4xf32> to vector<16x4xf32>
    %c0_22 = arith.constant 0 : index
    %c32 = arith.constant 32 : index
    %143 = vector.load %arg8[%c0_22, %c32] : memref<16x128xf32, #tpu.memory_space<vmem>>, vector<16x4xf32>
    tpu.vector_store %arg8[%c0_22, %c32], %142 {strides = array<i32>} : memref<16x128xf32, #tpu.memory_space<vmem>>, vector<16x4xf32>,
    %144 = vector.extract_strided_slice %137 {offsets = [1, 1, 0, 0], sizes = [1, 1, 16, 4], strides = [1, 1, 1, 1]} : vector<8x2x16x4xf32> to vector<1x1x16x4xf32>
    %145 = vector.shape_cast %144 : vector<1x1x16x4xf32> to vector<16x4xf32>
    %c0_23 = arith.constant 0 : index
    %c4 = arith.constant 4 : index
    %146 = vector.load %arg8[%c0_23, %c4] : memref<16x128xf32, #tpu.memory_space<vmem>>, vector<16x4xf32>
    tpu.vector_store %arg8[%c0_23, %c4], %145 {strides = array<i32>} : memref<16x128xf32, #tpu.memory_space<vmem>>, vector<16x4xf32>,
    %147 = vector.extract_strided_slice %137 {offsets = [1, 0, 0, 0], sizes = [1, 1, 16, 4], strides = [1, 1, 1, 1]} : vector<8x2x16x4xf32> to vector<1x1x16x4xf32>
    %148 = vector.shape_cast %147 : vector<1x1x16x4xf32> to vector<16x4xf32>
    %c0_24 = arith.constant 0 : index
    %c36 = arith.constant 36 : index
    %149 = vector.load %arg8[%c0_24, %c36] : memref<16x128xf32, #tpu.memory_space<vmem>>, vector<16x4xf32>
    tpu.vector_store %arg8[%c0_24, %c36], %148 {strides = array<i32>} : memref<16x128xf32, #tpu.memory_space<vmem>>, vector<16x4xf32>,
    %150 = vector.extract_strided_slice %137 {offsets = [2, 1, 0, 0], sizes = [1, 1, 16, 4], strides = [1, 1, 1, 1]} : vector<8x2x16x4xf32> to vector<1x1x16x4xf32>
    %151 = vector.shape_cast %150 : vector<1x1x16x4xf32> to vector<16x4xf32>
    %c0_25 = arith.constant 0 : index
    %c8 = arith.constant 8 : index
    %152 = vector.load %arg8[%c0_25, %c8] : memref<16x128xf32, #tpu.memory_space<vmem>>, vector<16x4xf32>
    tpu.vector_store %arg8[%c0_25, %c8], %151 {strides = array<i32>} : memref<16x128xf32, #tpu.memory_space<vmem>>, vector<16x4xf32>,
    %153 = vector.extract_strided_slice %137 {offsets = [2, 0, 0, 0], sizes = [1, 1, 16, 4], strides = [1, 1, 1, 1]} : vector<8x2x16x4xf32> to vector<1x1x16x4xf32>
    %154 = vector.shape_cast %153 : vector<1x1x16x4xf32> to vector<16x4xf32>
    %c0_26 = arith.constant 0 : index
    %c40 = arith.constant 40 : index
    %155 = vector.load %arg8[%c0_26, %c40] : memref<16x128xf32, #tpu.memory_space<vmem>>, vector<16x4xf32>
    tpu.vector_store %arg8[%c0_26, %c40], %154 {strides = array<i32>} : memref<16x128xf32, #tpu.memory_space<vmem>>, vector<16x4xf32>,
    %156 = vector.extract_strided_slice %137 {offsets = [3, 1, 0, 0], sizes = [1, 1, 16, 4], strides = [1, 1, 1, 1]} : vector<8x2x16x4xf32> to vector<1x1x16x4xf32>
    %157 = vector.shape_cast %156 : vector<1x1x16x4xf32> to vector<16x4xf32>
    %c0_27 = arith.constant 0 : index
    %c12 = arith.constant 12 : index
    %158 = vector.load %arg8[%c0_27, %c12] : memref<16x128xf32, #tpu.memory_space<vmem>>, vector<16x4xf32>
    tpu.vector_store %arg8[%c0_27, %c12], %157 {strides = array<i32>} : memref<16x128xf32, #tpu.memory_space<vmem>>, vector<16x4xf32>,
    %159 = vector.extract_strided_slice %137 {offsets = [3, 0, 0, 0], sizes = [1, 1, 16, 4], strides = [1, 1, 1, 1]} : vector<8x2x16x4xf32> to vector<1x1x16x4xf32>
    %160 = vector.shape_cast %159 : vector<1x1x16x4xf32> to vector<16x4xf32>
    %c0_28 = arith.constant 0 : index
    %c44 = arith.constant 44 : index
    %161 = vector.load %arg8[%c0_28, %c44] : memref<16x128xf32, #tpu.memory_space<vmem>>, vector<16x4xf32>
    tpu.vector_store %arg8[%c0_28, %c44], %160 {strides = array<i32>} : memref<16x128xf32, #tpu.memory_space<vmem>>, vector<16x4xf32>,
    %162 = vector.extract_strided_slice %137 {offsets = [4, 1, 0, 0], sizes = [1, 1, 16, 4], strides = [1, 1, 1, 1]} : vector<8x2x16x4xf32> to vector<1x1x16x4xf32>
    %163 = vector.shape_cast %162 : vector<1x1x16x4xf32> to vector<16x4xf32>
    %c0_29 = arith.constant 0 : index
    %c16 = arith.constant 16 : index
    %164 = vector.load %arg8[%c0_29, %c16] : memref<16x128xf32, #tpu.memory_space<vmem>>, vector<16x4xf32>
    tpu.vector_store %arg8[%c0_29, %c16], %163 {strides = array<i32>} : memref<16x128xf32, #tpu.memory_space<vmem>>, vector<16x4xf32>,
    %165 = vector.extract_strided_slice %137 {offsets = [4, 0, 0, 0], sizes = [1, 1, 16, 4], strides = [1, 1, 1, 1]} : vector<8x2x16x4xf32> to vector<1x1x16x4xf32>
    %166 = vector.shape_cast %165 : vector<1x1x16x4xf32> to vector<16x4xf32>
    %c0_30 = arith.constant 0 : index
    %c48 = arith.constant 48 : index
    %167 = vector.load %arg8[%c0_30, %c48] : memref<16x128xf32, #tpu.memory_space<vmem>>, vector<16x4xf32>
    tpu.vector_store %arg8[%c0_30, %c48], %166 {strides = array<i32>} : memref<16x128xf32, #tpu.memory_space<vmem>>, vector<16x4xf32>,
    %168 = vector.extract_strided_slice %137 {offsets = [5, 1, 0, 0], sizes = [1, 1, 16, 4], strides = [1, 1, 1, 1]} : vector<8x2x16x4xf32> to vector<1x1x16x4xf32>
    %169 = vector.shape_cast %168 : vector<1x1x16x4xf32> to vector<16x4xf32>
    %c0_31 = arith.constant 0 : index
    %c20 = arith.constant 20 : index
    %170 = vector.load %arg8[%c0_31, %c20] : memref<16x128xf32, #tpu.memory_space<vmem>>, vector<16x4xf32>
    tpu.vector_store %arg8[%c0_31, %c20], %169 {strides = array<i32>} : memref<16x128xf32, #tpu.memory_space<vmem>>, vector<16x4xf32>,
    %171 = vector.extract_strided_slice %137 {offsets = [5, 0, 0, 0], sizes = [1, 1, 16, 4], strides = [1, 1, 1, 1]} : vector<8x2x16x4xf32> to vector<1x1x16x4xf32>
    %172 = vector.shape_cast %171 : vector<1x1x16x4xf32> to vector<16x4xf32>
    %c0_32 = arith.constant 0 : index
    %c52 = arith.constant 52 : index
    %173 = vector.load %arg8[%c0_32, %c52] : memref<16x128xf32, #tpu.memory_space<vmem>>, vector<16x4xf32>
    tpu.vector_store %arg8[%c0_32, %c52], %172 {strides = array<i32>} : memref<16x128xf32, #tpu.memory_space<vmem>>, vector<16x4xf32>,
    %174 = vector.extract_strided_slice %137 {offsets = [6, 1, 0, 0], sizes = [1, 1, 16, 4], strides = [1, 1, 1, 1]} : vector<8x2x16x4xf32> to vector<1x1x16x4xf32>
    %175 = vector.shape_cast %174 : vector<1x1x16x4xf32> to vector<16x4xf32>
    %c0_33 = arith.constant 0 : index
    %c24 = arith.constant 24 : index
    %176 = vector.load %arg8[%c0_33, %c24] : memref<16x128xf32, #tpu.memory_space<vmem>>, vector<16x4xf32>
    tpu.vector_store %arg8[%c0_33, %c24], %175 {strides = array<i32>} : memref<16x128xf32, #tpu.memory_space<vmem>>, vector<16x4xf32>,
    %177 = vector.extract_strided_slice %137 {offsets = [6, 0, 0, 0], sizes = [1, 1, 16, 4], strides = [1, 1, 1, 1]} : vector<8x2x16x4xf32> to vector<1x1x16x4xf32>
    %178 = vector.shape_cast %177 : vector<1x1x16x4xf32> to vector<16x4xf32>
    %c0_34 = arith.constant 0 : index
    %c56 = arith.constant 56 : index
    %179 = vector.load %arg8[%c0_34, %c56] : memref<16x128xf32, #tpu.memory_space<vmem>>, vector<16x4xf32>
    tpu.vector_store %arg8[%c0_34, %c56], %178 {strides = array<i32>} : memref<16x128xf32, #tpu.memory_space<vmem>>, vector<16x4xf32>,
    %180 = vector.extract_strided_slice %137 {offsets = [7, 1, 0, 0], sizes = [1, 1, 16, 4], strides = [1, 1, 1, 1]} : vector<8x2x16x4xf32> to vector<1x1x16x4xf32>
    %181 = vector.shape_cast %180 : vector<1x1x16x4xf32> to vector<16x4xf32>
    %c0_35 = arith.constant 0 : index
    %c28 = arith.constant 28 : index
    %182 = vector.load %arg8[%c0_35, %c28] : memref<16x128xf32, #tpu.memory_space<vmem>>, vector<16x4xf32>
    tpu.vector_store %arg8[%c0_35, %c28], %181 {strides = array<i32>} : memref<16x128xf32, #tpu.memory_space<vmem>>, vector<16x4xf32>,
    %183 = vector.extract_strided_slice %137 {offsets = [7, 0, 0, 0], sizes = [1, 1, 16, 4], strides = [1, 1, 1, 1]} : vector<8x2x16x4xf32> to vector<1x1x16x4xf32>
    %184 = vector.shape_cast %183 : vector<1x1x16x4xf32> to vector<16x4xf32>
    %c0_36 = arith.constant 0 : index
    %c60 = arith.constant 60 : index
    %185 = vector.load %arg8[%c0_36, %c60] : memref<16x128xf32, #tpu.memory_space<vmem>>, vector<16x4xf32>
    tpu.vector_store %arg8[%c0_36, %c60], %184 {strides = array<i32>} : memref<16x128xf32, #tpu.memory_space<vmem>>, vector<16x4xf32>,
    %cst_37 = arith.constant 0.000000e+00 : f32
    %186 = vector.broadcast %cst_37 : f32 to vector<16x64xf32>
    %c0_38 = arith.constant 0 : index
    %c64 = arith.constant 64 : index
    %187 = vector.load %arg8[%c0_38, %c64] : memref<16x128xf32, #tpu.memory_space<vmem>>, vector<16x64xf32>
    tpu.vector_store %arg8[%c0_38, %c64], %186 {strides = array<i32>} : memref<16x128xf32, #tpu.memory_space<vmem>>, vector<16x64xf32>,
    return
  }
  func.func @transform_0(%arg0: i32) -> (i32, i32) {
    %c0_i32 = arith.constant 0 : i32
    %c0_i32_0 = arith.constant 0 : i32
    return %arg0, %c0_i32 : i32, i32
  }
  func.func @transform_1(%arg0: i32) -> (i32, i32) {
    %c0_i32 = arith.constant 0 : i32
    %c0_i32_0 = arith.constant 0 : i32
    return %arg0, %c0_i32 : i32, i32
  }
  func.func @transform_2(%arg0: i32) -> (i32, i32) {
    %c0_i32 = arith.constant 0 : i32
    %c0_i32_0 = arith.constant 0 : i32
    return %arg0, %c0_i32 : i32, i32
  }
  func.func @transform_3(%arg0: i32) -> (i32, i32) {
    %c0_i32 = arith.constant 0 : i32
    %c0_i32_0 = arith.constant 0 : i32
    %c0_i32_1 = arith.constant 0 : i32
    return %c0_i32, %c0_i32_0 : i32, i32
  }
  func.func @transform_4(%arg0: i32) -> (i32, i32) {
    %c0_i32 = arith.constant 0 : i32
    %c0_i32_0 = arith.constant 0 : i32
    %c0_i32_1 = arith.constant 0 : i32
    return %c0_i32, %c0_i32_0 : i32, i32
  }
  func.func @transform_5(%arg0: i32) -> (i32, i32) {
    %c0_i32 = arith.constant 0 : i32
    %c0_i32_0 = arith.constant 0 : i32
    %c0_i32_1 = arith.constant 0 : i32
    return %c0_i32, %c0_i32_0 : i32, i32
  }
  func.func @transform_6(%arg0: i32) -> (i32, i32) {
    %c0_i32 = arith.constant 0 : i32
    %c0_i32_0 = arith.constant 0 : i32
    %c0_i32_1 = arith.constant 0 : i32
    return %c0_i32, %c0_i32_0 : i32, i32
  }
  func.func @transform_7(%arg0: i32) -> (i32, i32) {
    %c0_i32 = arith.constant 0 : i32
    %c0_i32_0 = arith.constant 0 : i32
    return %arg0, %c0_i32 : i32, i32
  }
}

</mosaic_0001>

<bundles_post_ra>
// kernel: tpu_custom_call.1
= control target key start
LH: loop header
LB: loop body
LE: loop exit
PB: predicated region body
PF: predicated region fallthrough
CT: control target
= control target key end

     0   :  { %12 = vsyncpa [#allocation3], 0  ;;  %s6281_s0 = inlined_call_operand.hbm [shape: bf16[16,32], index: 0, kind: input, shape index: {}]   ;;  %s6282_s1 = inlined_call_operand.hbm [shape: bf16[16,32], index: 1, kind: input, shape index: {}]   ;;  %s6283_s2 = inlined_call_operand.vmem [shape: f32[2,8], index: 2, kind: input, shape index: {}]   ;;  %s6284_s3 = inlined_call_operand.hbm [shape: bf16[32,128], index: 3, kind: input, shape index: {}]   ;;  %s6285_s4 = inlined_call_operand.hbm [shape: f32[1,128], index: 4, kind: input, shape index: {}]   ;;  %s6286_s5 = inlined_call_operand.vmem [shape: bf16[32,128], index: 5, kind: input, shape index: {}]   ;;  %s6287_s6 = inlined_call_operand.vmem [shape: f32[1,128], index: 6, kind: input, shape index: {}]   ;;  %s6288_s7 = inlined_call_operand.hbm [shape: f32[16,128], index: 7, kind: output, shape index: {}]  }
   0x1   :  { %13 = vsyncpa [#allocation6], 0 }
   0x2   :  { %14 = vsyncpa [#allocation9], 0 }
   0x3   :  { %15 = vsyncpa [#allocation4], 0  ;;  %s4967_s24 = smov [#allocation5]   ;;  %s4968_s26 = smov [#allocation2]  }
   0x4   :  { %s33_s25 = sshll.u32 %s4967_s24, 4  ;;  %s21_s27 = sshll.u32 %s4968_s26, 4  ;;  %s34_s25 = int_to_ptr.vmem [resolvable:$true] %s33_s25  ;;  %s5040_s27 = int_to_ptr.vmem [resolvable:$true] %s21_s27 }
   0x5   :  { %s4849_s30 = scalar_lea.hbm %s6282_s1, 128 }
   0x6   :  { %p4850_p0 = scmp.ne.s32.totalorder %s6282_s1, %s4849_s30  ;;  %p4853_p1 = scmp.lt.u32.totalorder %s4849_s30, %s6282_s1 }
   0x8   :  { %p4855_p2 = pnand %p4853_p1, %p4850_p0 }
   0xa   :  { %4858 = shalt.err (!%p4855_p2)
}
   0xb   :  { %s4859_s12 = scalar_lea.vmem %s34_s25, 128  ;;  %p4864_p4 = scmp.lt.s32.totalorder %s34_s25, %s34_s25 }
   0xc   :  { %p4860_p3 = scmp.ne.s32.totalorder %s34_s25, %s4859_s12  ;;  %p4865_p5 = scmp.lt.s32.totalorder %s4859_s12, %s4859_s12 }
   0xe   :  { %p4866_p6 = por %p4865_p5, %p4864_p4 }
  0x10   :  { %p4867_p7 = pnand %p4866_p6, %p4860_p3 }
  0x12   :  { %4870 = shalt.err (!%p4867_p7)
}
  0x13   :  { %s4969_s13 = smov 64   ;;  %s4970_s14 = smov 4  }
  0x14   :  { %39 = dma.hbm_to_vmem [thread:$0]  %s6282_s1, 128, %s34_s25, [#allocation6], %s4969_s13, %s4969_s13, %s4970_s14  }
  0x15   :  { %s4871_s19 = scalar_lea.hbm %s6281_s0, 128 }
  0x16   :  { %p4872_p8 = scmp.ne.s32.totalorder %s6281_s0, %s4871_s19  ;;  %p4875_p9 = scmp.lt.u32.totalorder %s4871_s19, %s6281_s0 }
  0x18   :  { %p4877_p10 = pnand %p4875_p9, %p4872_p8 }
  0x1a   :  { %4880 = shalt.err (!%p4877_p10)
}
  0x1b   :  { %s4881_s24 = scalar_lea.vmem %s5040_s27, 128  ;;  %p4886_p12 = scmp.lt.s32.totalorder %s5040_s27, %s5040_s27 }
  0x1c   :  { %p4882_p11 = scmp.ne.s32.totalorder %s5040_s27, %s4881_s24  ;;  %p4887_p13 = scmp.lt.s32.totalorder %s4881_s24, %s4881_s24 }
  0x1e   :  { %p4888_p0 = por %p4887_p13, %p4886_p12 }
  0x20   :  { %p4889_p1 = pnand %p4888_p0, %p4882_p11 }
  0x22   :  { %4892 = shalt.err (!%p4889_p1)
}
  0x23   :  { %27 = dma.hbm_to_vmem [thread:$0]  %s6281_s0, 128, %s5040_s27, [#allocation3], %s4969_s13, %s4969_s13, %s4970_s14  }
  0x24   :  { %s4971_s26 = smov [#allocation7]   ;;  %s4972_s29 = smov [#allocation8]  }
  0x25   :  { %s47_s28 = sshll.u32 %s4971_s26, 4  ;;  %s60_s30 = sshll.u32 %s4972_s29, 4  ;;  %s48_s28 = int_to_ptr.vmem [resolvable:$true] %s47_s28  ;;  %s61_s30 = int_to_ptr.vmem [resolvable:$true] %s60_s30 }
  0x26   :  { %s4893_s10 = scalar_lea.hbm %s6284_s3, 256 }
  0x27   :  { %p4894_p2 = scmp.ne.s32.totalorder %s6284_s3, %s4893_s10  ;;  %p4897_p3 = scmp.lt.u32.totalorder %s4893_s10, %s6284_s3 }
  0x29   :  { %p4899_p4 = pnand %p4897_p3, %p4894_p2 }
  0x2b   :  { %4902 = shalt.err (!%p4899_p4)
}
  0x2c   :  { %s4903_s0 = scalar_lea.vmem %s48_s28, 256  ;;  %p4908_p6 = scmp.lt.s32.totalorder %s48_s28, %s48_s28 }
  0x2d   :  { %p4904_p5 = scmp.ne.s32.totalorder %s48_s28, %s4903_s0  ;;  %p4909_p7 = scmp.lt.s32.totalorder %s4903_s0, %s4903_s0 }
  0x2f   :  { %p4910_p8 = por %p4909_p7, %p4908_p6 }
  0x31   :  { %p4911_p9 = pnand %p4910_p8, %p4904_p5 }
  0x33   :  { %4914 = shalt.err (!%p4911_p9)
}
  0x34   :  { %53 = dma.hbm_to_vmem [thread:$0]  %s6284_s3, 256, %s48_s28, [#allocation6], %s4969_s13, %s4969_s13, %s4970_s14  }
  0x35   :  { %s4915_s20 = scalar_lea.hbm %s6285_s4, 16 }
  0x36   :  { %p4916_p10 = scmp.ne.s32.totalorder %s6285_s4, %s4915_s20  ;;  %p4919_p11 = scmp.lt.u32.totalorder %s4915_s20, %s6285_s4 }
  0x38   :  { %p4921_p12 = pnand %p4919_p11, %p4916_p10 }
  0x3a   :  { %4924 = shalt.err (!%p4921_p12)
}
  0x3b   :  { %s4925_s1 = scalar_lea.vmem %s61_s30, 16  ;;  %s4929_s25 = scalar_lea.vmem %s61_s30, 32 }
  0x3c   :  { %p4926_p13 = scmp.ne.s32.totalorder %s61_s30, %s4925_s1  ;;  %p4930_p0 = scmp.lt.s32.totalorder %s61_s30, %s61_s30 }
  0x3d   :  { %p4931_p1 = scmp.lt.s32.totalorder %s4929_s25, %s4925_s1 }
  0x3f   :  { %p4932_p2 = por %p4931_p1, %p4930_p0 }
  0x41   :  { %p4933_p3 = pnand %p4932_p2, %p4926_p13 }
  0x43   :  { %4936 = shalt.err (!%p4933_p3)
}
  0x44   :  { %63 = dma.hbm_to_vmem [thread:$0]  %s6285_s4, 16, %s61_s30, [#allocation9]  }
  0x45   :  { %4959 = dma.done.wait [#allocation3], 128  }
  0x46   :  { %4960 = vsyncadd [#allocation3], 4294967168 }
  0x47   :  { %4961 = dma.done.wait [#allocation6], 384  }
  0x48   :  { %4962 = vsyncadd [#allocation6], 4294966912 }
  0x49   :  { %4963 = dma.done.wait [#allocation9], 16  }
  0x4a   :  { %4964 = vsyncadd [#allocation9], 4294967280  ;;  %v6289_v0 = vmov 0.0   ;;  %vm4974_vm0 = vmmov 0   ;;  %v4715_v1 = vld [vmem:[#allocation7] sm:$0xff]   ;;  %v4717_v3 = vld [vmem:[#allocation7 + $0x8] sm:$0xff]  }
  0x4b   :  { %4282 = vmatprep.subr.bf16.mxu0 %v6289_v0  ;;  %4290 = vmatprep.subr.bf16.mxu1 %v6289_v0  ;;  %v4716_v2 = vld [vmem:[%s6286_s5] sm:$0xff]   ;;  %v4718_v4 = vld [vmem:[%s6286_s5 + $0x8] sm:$0xff]   ;;  %v4719_v5 = vld [vmem:[#allocation2] sm:$0xff]   ;;  %vm111_vm1 = vcmask 261120   ;;  %s4975_s9 = smov 124   ;;  %s4977_s10 = smov 116  }
  0x4c   :  { %4286 = vmatprep.mubr.msk.bf16.mxu0 %vm4974_vm0, %v6289_v0  ;;  %4294 = vmatprep.mubr.msk.bf16.mxu1 %vm4974_vm0, %v6289_v0  ;;  %v4720_v6 = vld [vmem:[#allocation5] sm:$0xff]   ;;  %v4038_v7 = vld [vmem:[#allocation8] ss:$0 sm:$0xff]  ;;  %v4043_v8 = vld [vmem:[%s6287_s6] ss:$0 sm:$0xff]  ;;  %s4976_s6 = smov 120  }
  0x4d   :  { %4283 = vmatpush3.bf16.msra.mxu0 %v4715_v1  ;;  %4291 = vmatpush3.bf16.msra.mxu1 %v4716_v2  ;;  %s4978_s11 = smov 96   ;;  %s4979_s12 = smov 112   ;;  %vm336_vm2 = vcmask 31744   ;;  %vm1927_vm3 = vcmask 64512   ;;  %vm2317_vm4 = vcmask 1043456   ;;  %vm3859_vm5 = vcmask 294144  }
  0x4e   :  { %4284 = vmatprep.subr.bf16.mxu0 %v6289_v0  ;;  %4292 = vmatprep.subr.bf16.mxu1 %v6289_v0  ;;  %s4980_s15 = smov 108   ;;  %s4981_s16 = smov 104   ;;  %vm3870_vm6 = vcmask 64544   ;;  %vm3881_vm7 = vcmask 326944   ;;  %vm3892_vm8 = vcmask 97344   ;;  %vm3903_vm9 = vcmask 359744  }
  0x4f   :  { %s4982_s0 = smov 100   ;;  %s4986_s18 = smov 40   ;;  %vm3914_vm10 = vcmask 130144   ;;  %vm3925_vm11 = vcmask 392544   ;;  %vm3936_vm12 = vcmask 162944   ;;  %vm3947_vm13 = vcmask 425344  }
  0x50   :  { %s4988_s19 = smov 44   ;;  %s4989_s20 = smov 12   ;;  %vm3958_vm14 = vcmask 195744   ;;  %vm3969_vm15 = vcmask 458144  }
  0x51   :  { %4285 = vmatpush3.bf16.msra.mxu0 %v4717_v3  ;;  %4293 = vmatpush3.bf16.msra.mxu1 %v4718_v4  ;;  %s4990_s21 = smov 48   ;;  %s4991_s22 = smov 16  }
  0x52   :  { %4298 = vmatprep.subr.bf16.mxu0 %v6289_v0  ;;  %4304 = vmatprep.subr.bf16.mxu1 %v6289_v0  ;;  %s4992_s23 = smov 52   ;;  %s4993_s24 = smov 20  }
  0x53   :  { %s4994_s1 = smov 56   ;;  %s4995_s25 = smov 24  }
  0x54   :  { %4287 = vmatmul.mubr.msk.bf16.vlgmr.msra.gmra.mrb[0].mxu0 %vm111_vm1, %v4719_v5  ;;  %4295 = vmatmul.mubr.msk.bf16.vlgmr.msra.gmra.mrb[0].mxu1 %vm111_vm1, %v4720_v6  ;;  %s4996_s3 = smov 28   ;;  %s4997_s26 = smov 60   ;;  %vm3991_vm1 = vcmask 490944  }
  0x55   :  { %4300 = vmatprep.mubr.msk.bf16.mxu0 %vm4974_vm0, %v6289_v0  ;;  %4306 = vmatprep.mubr.msk.bf16.mxu1 %vm4974_vm0, %v6289_v0  ;;  %s4998_s4 = smov [#allocation10]  }
  0x56   :  { %s4024_s28 = sshll.u32 %s4998_s4, 4  ;;  %s4025_s28 = int_to_ptr.vmem [resolvable:$true] %s4024_s28 }
  0x57   :  { %s4937_s29 = scalar_lea.vmem %s4025_s28, 256  ;;  %p4942_p5 = scmp.lt.s32.totalorder %s4025_s28, %s4025_s28 }
  0x58   :  { %p4938_p4 = scmp.ne.s32.totalorder %s4025_s28, %s4937_s29  ;;  %p4943_p6 = scmp.lt.s32.totalorder %s4937_s29, %s4937_s29 }
  0x5a   :  { %p4944_p7 = por %p4943_p6, %p4942_p5 }
  0x5c   :  { %p4945_p8 = pnand %p4944_p7, %p4938_p4 }
 0x127   :  { %v149_v9 = vpop.f32.mrb[0].mxu0  ;;  %v224_v11 = vpop.f32.mrb[0].mxu1 }
 0x128   :  { %v150_v10 = vadd.f32 %v4038_v7, %v149_v9  ;;  %v4288_v12 = vpop.f32.mrb[1].mxu0  ;;  %v225_v13 = vadd.f32 %v4043_v8, %v224_v11  ;;  %v4296_v14 = vpop.f32.mrb[1].mxu1 }
 0x129   :  { %v152_v15 = vpop.f32.mrb[2].mxu0  ;;  %v227_v17 = vpop.f32.mrb[2].mxu1 }
 0x12a   :  { %v5127_v16 = vpack.c.bf16 %v150_v10, %v150_v10  ;;  %v153_v18 = vadd.f32 %v4038_v7, %v152_v15  ;;  %v4289_v19 = vpop.f32.mrb[3].mxu0  ;;  %v5129_v20 = vpack.c.bf16 %v225_v13, %v225_v13  ;;  %v228_v21 = vadd.f32 %v4043_v8, %v227_v17  ;;  %v4297_v22 = vpop.f32.mrb[3].mxu1 }
 0x12c   :  { %v5131_v23 = vpack.c.bf16 %v153_v18, %v153_v18  ;;  %242 = vrot.lane.b32.xlu1 %v5127_v16, %s4975_s9  ;;  %246 = vrot.lane.b32.xlu0 %v5129_v20, %s4975_s9  ;;  %v5135_v24 = vpack.c.bf16 %v228_v21, %v228_v21 }
 0x130   :  { %244 = vrot.lane.b32.xlu1 %v5131_v23, %s4975_s9  ;;  %248 = vrot.lane.b32.xlu0 %v5135_v24, %s4975_s9 }
 0x134   :  { %256 = vrot.lane.b32.xlu1 %v5135_v24, %s4976_s6  ;;  %254 = vrot.lane.b32.xlu0 %v5129_v20, %s4976_s6 }
 0x138   :  { %252 = vrot.lane.b32.xlu1 %v5131_v23, %s4976_s6  ;;  %250 = vrot.lane.b32.xlu0 %v5127_v16, %s4976_s6 }
 0x13c   :  { %264 = vrot.lane.b32.xlu1 %v5135_v24, %s4977_s10  ;;  %262 = vrot.lane.b32.xlu0 %v5129_v20, %s4977_s10 }
 0x140   :  { %260 = vrot.lane.b32.xlu1 %v5131_v23, %s4977_s10  ;;  %258 = vrot.lane.b32.xlu0 %v5127_v16, %s4977_s10 }
 0x144   :  { %383 = vrot.lane.b32.xlu1 %v5135_v24, %s4978_s11  ;;  %334 = vrot.lane.b32.xlu0 %v5129_v20, %s4978_s11 }
 0x148   :  { %272 = vrot.lane.b32.xlu1 %v5135_v24, %s4979_s12  ;;  %270 = vrot.lane.b32.xlu0 %v5129_v20, %s4979_s12 }
 0x14c   :  { %479 = vrot.lane.b32.xlu1 %v5131_v23, %s4978_s11  ;;  %431 = vrot.lane.b32.xlu0 %v5127_v16, %s4978_s11 }
 0x150   :  { %268 = vrot.lane.b32.xlu1 %v5131_v23, %s4979_s12  ;;  %266 = vrot.lane.b32.xlu0 %v5127_v16, %s4979_s12 }
 0x19e   :  { %v5159_v25 = vpop.permute.xlu1 %242  ;;  %v5161_v26 = vpop.permute.xlu0 %246 }
 0x19f   :  { %v5165_v27 = vcombine.low %v5161_v26, %v5161_v26  ;;  %v5179_v31 = vcombine.low %v5159_v25, %v5159_v25 }
 0x1a1   :  { %529 = vrot.lane.b32.xlu0 %v5165_v27, %s4978_s11 }
 0x1a2   :  { %v5169_v28 = vpop.permute.xlu1 %244  ;;  %v5171_v29 = vpop.permute.xlu0 %248 }
 0x1a3   :  { %v5175_v30 = vcombine.low %v5171_v29, %v5171_v29  ;;  %v5197_v36 = vcombine.low %v5169_v28, %v5169_v28 }
 0x1a5   :  { %278 = vrot.lane.b32.xlu0 %v5129_v20, %s4980_s15  ;;  %579 = vrot.lane.b32.xlu1 %v5175_v30, %s4978_s11 }
 0x1a6   :  { %v5184_v32 = vpop.permute.xlu1 %256  ;;  %v5186_v33 = vpop.permute.xlu0 %254 }
 0x1a7   :  { %v5208_v39 = vcombine.low %v5186_v33, %v5186_v33  ;;  %v5219_v42 = vcombine.low %v5184_v32, %v5184_v32 }
 0x1a9   :  { %629 = vrot.lane.b32.xlu0 %v5179_v31, %s4978_s11  ;;  %280 = vrot.lane.b32.xlu1 %v5135_v24, %s4980_s15 }
 0x1aa   :  { %v5191_v34 = vpop.permute.xlu1 %252  ;;  %v5193_v35 = vpop.permute.xlu0 %250 }
 0x1ab   :  { %v5228_v46 = vcombine.low %v5193_v35, %v5193_v35  ;;  %v5243_v50 = vcombine.low %v5191_v34, %v5191_v34 }
 0x1ad   :  { %274 = vrot.lane.b32.xlu0 %v5127_v16, %s4980_s15  ;;  %679 = vrot.lane.b32.xlu1 %v5197_v36, %s4978_s11 }
 0x1ae   :  { %v5202_v37 = vpop.permute.xlu1 %264  ;;  %v5204_v38 = vpop.permute.xlu0 %262 }
 0x1af   :  { %v5254_v54 = vcombine.low %v5204_v38, %v5204_v38  ;;  %v5270_v56 = vcombine.low %v5202_v37, %v5202_v37 }
 0x1b1   :  { %729 = vrot.lane.b32.xlu0 %v5208_v39, %s4978_s11  ;;  %276 = vrot.lane.b32.xlu1 %v5131_v23, %s4980_s15 }
 0x1b2   :  { %v5213_v40 = vpop.permute.xlu1 %260  ;;  %v5215_v41 = vpop.permute.xlu0 %258 }
 0x1b3   :  { %v5280_v57 = vcombine.low %v5215_v41, %v5215_v41  ;;  %v5293_v58 = vcombine.low %v5213_v40, %v5213_v40 }
 0x1b5   :  { %286 = vrot.lane.b32.xlu0 %v5129_v20, %s4981_s16  ;;  %779 = vrot.lane.b32.xlu1 %v5219_v42, %s4978_s11 }
 0x1b6   :  { %v384_v43 = vpop.permute.xlu1 %383  ;;  %v335_v44 = vpop.permute.xlu0 %334 }
 0x1b7   :  { %v389_v45 = vsel %vm336_vm2, %v384_v43, 0  ;;  %v341_v47 = vsel %vm336_vm2, %v335_v44, 0 }
 0x1b8   :  { %4305 = vmatpush3.bf16.xpose.msra.mxu1 %v389_v45  ;;  %4299 = vmatpush3.bf16.xpose.msra.mxu0 %v341_v47 }
 0x1b9   :  { %4316 = vmatprep.subr.bf16.mxu1 %v6289_v0  ;;  %829 = vrot.lane.b32.xlu0 %v5228_v46, %s4978_s11 }
 0x1ba   :  { %288 = vrot.lane.b32.xlu1 %v5135_v24, %s4981_s16  ;;  %v5236_v48 = vpop.permute.xlu1 %272  ;;  %v5238_v49 = vpop.permute.xlu0 %270  ;;  %4310 = vmatprep.subr.bf16.mxu0 %v6289_v0 }
 0x1bb   :  { %v5300_v59 = vcombine.low %v5238_v49, %v5238_v49  ;;  %v5309_v61 = vcombine.low %v5236_v48, %v5236_v48 }
 0x1bd   :  { %282 = vrot.lane.b32.xlu0 %v5127_v16, %s4981_s16 }
 0x1be   :  { %879 = vrot.lane.b32.xlu1 %v5243_v50, %s4978_s11  ;;  %v480_v51 = vpop.permute.xlu1 %479  ;;  %v432_v52 = vpop.permute.xlu0 %431 }
 0x1bf   :  { %v485_v53 = vsel %vm336_vm2, %v480_v51, 0  ;;  %4307 = vmatmul.mubr.msk.bf16.vlgmr.msra.gmra.mrb[4].mxu1 %vm336_vm2, %v5131_v23  ;;  %v437_v55 = vsel %vm336_vm2, %v432_v52, 0  ;;  %4301 = vmatmul.mubr.msk.bf16.vlgmr.msra.gmra.mrb[4].mxu0 %vm336_vm2, %v5127_v16 }
 0x1c0   :  { %4317 = vmatpush3.bf16.xpose.msra.mxu1 %v485_v53  ;;  %4311 = vmatpush3.bf16.xpose.msra.mxu0 %v437_v55 }
 0x1c1   :  { %4312 = vmatprep.mubr.msk.bf16.mxu0 %vm4974_vm0, %v6289_v0  ;;  %929 = vrot.lane.b32.xlu0 %v5254_v54, %s4978_s11 }
 0x1c2   :  { %284 = vrot.lane.b32.xlu1 %v5131_v23, %s4981_s16  ;;  %4318 = vmatprep.mubr.msk.bf16.mxu1 %vm4974_vm0, %v6289_v0  ;;  %v5302_v60 = vpop.permute.xlu0 %266  ;;  %v5315_v63 = vpop.permute.xlu1 %268 }
 0x1c3   :  { %4322 = vmatprep.subr.bf16.mxu0 %v6289_v0  ;;  %4328 = vmatprep.subr.bf16.mxu1 %v6289_v0  ;;  %v5313_v62 = vcombine.low %v5302_v60, %v5302_v60  ;;  %v5323_v1 = vcombine.low %v5315_v63, %v5315_v63 }
 0x1c5   :  { %294 = vrot.lane.b32.xlu0 %v5129_v20, %s4982_s0 }
 0x1c6   :  { %979 = vrot.lane.b32.xlu1 %v5270_v56, %s4978_s11 }
 0x1c7   :  { %4319 = vmatmul.mubr.msk.bf16.vlgmr.msra.gmra.mrb[8].mxu1 %vm336_vm2, %v5135_v24  ;;  %4313 = vmatmul.mubr.msk.bf16.vlgmr.msra.gmra.mrb[8].mxu0 %vm336_vm2, %v5129_v20 }
 0x1c8   :  { %4330 = vmatprep.mubr.msk.bf16.mxu1 %vm4974_vm0, %v6289_v0  ;;  %4324 = vmatprep.mubr.msk.bf16.mxu0 %vm4974_vm0, %v6289_v0 }
 0x1c9   :  { %1029 = vrot.lane.b32.xlu0 %v5280_v57, %s4978_s11 }
 0x1ca   :  { %296 = vrot.lane.b32.xlu1 %v5135_v24, %s4982_s0 }
 0x1cd   :  { %290 = vrot.lane.b32.xlu0 %v5127_v16, %s4982_s0 }
 0x1ce   :  { %1079 = vrot.lane.b32.xlu1 %v5293_v58, %s4978_s11 }
 0x1d1   :  { %1129 = vrot.lane.b32.xlu0 %v5300_v59, %s4978_s11 }
 0x1d2   :  { %292 = vrot.lane.b32.xlu1 %v5131_v23, %s4982_s0 }
 0x1d5   :  { %1229 = vrot.lane.b32.xlu0 %v5313_v62, %s4978_s11 }
 0x1d6   :  { %1179 = vrot.lane.b32.xlu1 %v5309_v61, %s4978_s11 }
 0x1da   :  { %1279 = vrot.lane.b32.xlu1 %v5323_v1, %s4978_s11 }
 0x213   :  { %v530_v2 = vpop.permute.xlu0 %529 }
 0x214   :  { %v535_v3 = vsel %vm336_vm2, %v530_v2, 0 }
 0x215   :  { %4323 = vmatpush3.bf16.xpose.msra.mxu0 %v535_v3 }
 0x216   :  { %4334 = vmatprep.subr.bf16.mxu0 %v6289_v0 }
 0x217   :  { %v5329_v4 = vpop.permute.xlu0 %278  ;;  %v580_v5 = vpop.permute.xlu1 %579 }
 0x218   :  { %v5333_v6 = vcombine.low %v5329_v4, %v5329_v4  ;;  %v585_v7 = vsel %vm336_vm2, %v580_v5, 0 }
 0x219   :  { %4329 = vmatpush3.bf16.xpose.msra.mxu1 %v585_v7 }
 0x21a   :  { %1329 = vrot.lane.b32.xlu0 %v5333_v6, %s4978_s11  ;;  %4340 = vmatprep.subr.bf16.mxu1 %v6289_v0 }
 0x21b   :  { %v630_v8 = vpop.permute.xlu0 %629  ;;  %v5339_v9 = vpop.permute.xlu1 %280 }
 0x21c   :  { %v635_v10 = vsel %vm336_vm2, %v630_v8, 0  ;;  %v5344_v11 = vcombine.low %v5339_v9, %v5339_v9  ;;  %4325 = vmatmul.mubr.msk.bf16.vlgmr.msra.gmra.mrb[12].mxu0 %vm336_vm2, %v5159_v25 }
 0x21d   :  { %4335 = vmatpush3.bf16.xpose.msra.mxu0 %v635_v10  ;;  %4336 = vmatprep.mubr.msk.bf16.mxu0 %vm4974_vm0, %v6289_v0 }
 0x21e   :  { %1379 = vrot.lane.b32.xlu1 %v5344_v11, %s4978_s11  ;;  %4346 = vmatprep.subr.bf16.mxu0 %v6289_v0 }
 0x21f   :  { %v5353_v12 = vpop.permute.xlu0 %274  ;;  %v680_v13 = vpop.permute.xlu1 %679 }
 0x220   :  { %v5357_v14 = vcombine.low %v5353_v12, %v5353_v12  ;;  %v685_v15 = vsel %vm336_vm2, %v680_v13, 0  ;;  %4331 = vmatmul.mubr.msk.bf16.vlgmr.msra.gmra.mrb[12].mxu1 %vm336_vm2, %v5169_v28 }
 0x221   :  { %4341 = vmatpush3.bf16.xpose.msra.mxu1 %v685_v15  ;;  %4342 = vmatprep.mubr.msk.bf16.mxu1 %vm4974_vm0, %v6289_v0 }
 0x222   :  { %1429 = vrot.lane.b32.xlu0 %v5357_v14, %s4978_s11  ;;  %4352 = vmatprep.subr.bf16.mxu1 %v6289_v0 }
 0x223   :  { %v730_v17 = vpop.permute.xlu0 %729  ;;  %v5367_v18 = vpop.permute.xlu1 %276 }
 0x224   :  { %v735_v19 = vsel %vm336_vm2, %v730_v17, 0  ;;  %v5372_v21 = vcombine.low %v5367_v18, %v5367_v18  ;;  %4337 = vmatmul.mubr.msk.bf16.vlgmr.msra.gmra.mrb[16].mxu0 %vm336_vm2, %v5161_v26 }
 0x225   :  { %4347 = vmatpush3.bf16.xpose.msra.mxu0 %v735_v19  ;;  %4348 = vmatprep.mubr.msk.bf16.mxu0 %vm4974_vm0, %v6289_v0 }
 0x226   :  { %1479 = vrot.lane.b32.xlu1 %v5372_v21, %s4978_s11  ;;  %4358 = vmatprep.subr.bf16.mxu0 %v6289_v0 }
 0x227   :  { %v5381_v22 = vpop.permute.xlu0 %286  ;;  %v780_v25 = vpop.permute.xlu1 %779 }
 0x228   :  { %v5385_v28 = vcombine.low %v5381_v22, %v5381_v22  ;;  %v785_v43 = vsel %vm336_vm2, %v780_v25, 0  ;;  %4343 = vmatmul.mubr.msk.bf16.vlgmr.msra.gmra.mrb[16].mxu1 %vm336_vm2, %v5171_v29 }
 0x229   :  { %4353 = vmatpush3.bf16.xpose.msra.mxu1 %v785_v43  ;;  %4354 = vmatprep.mubr.msk.bf16.mxu1 %vm4974_vm0, %v6289_v0 }
 0x22a   :  { %1529 = vrot.lane.b32.xlu0 %v5385_v28, %s4978_s11  ;;  %4364 = vmatprep.subr.bf16.mxu1 %v6289_v0 }
 0x22b   :  { %v830_v26 = vpop.permute.xlu0 %829 }
 0x22c   :  { %v5395_v44 = vpop.permute.xlu1 %288  ;;  %v835_v45 = vsel %vm336_vm2, %v830_v26, 0  ;;  %4349 = vmatmul.mubr.msk.bf16.vlgmr.msra.gmra.mrb[20].mxu0 %vm336_vm2, %v5193_v35 }
 0x22d   :  { %v5400_v47 = vcombine.low %v5395_v44, %v5395_v44  ;;  %4359 = vmatpush3.bf16.xpose.msra.mxu0 %v835_v45  ;;  %4360 = vmatprep.mubr.msk.bf16.mxu0 %vm4974_vm0, %v6289_v0 }
 0x22e   :  { %4370 = vmatprep.subr.bf16.mxu0 %v6289_v0 }
 0x22f   :  { %1579 = vrot.lane.b32.xlu1 %v5400_v47, %s4978_s11  ;;  %v5409_v29 = vpop.permute.xlu0 %282 }
 0x230   :  { %v880_v51 = vpop.permute.xlu1 %879  ;;  %v5413_v52 = vcombine.low %v5409_v29, %v5409_v29  ;;  %4355 = vmatmul.mubr.msk.bf16.vlgmr.msra.gmra.mrb[20].mxu1 %vm336_vm2, %v5191_v34 }
 0x231   :  { %v885_v53 = vsel %vm336_vm2, %v880_v51, 0  ;;  %4366 = vmatprep.mubr.msk.bf16.mxu1 %vm4974_vm0, %v6289_v0 }
 0x232   :  { %4365 = vmatpush3.bf16.xpose.msra.mxu1 %v885_v53  ;;  %1629 = vrot.lane.b32.xlu0 %v5413_v52, %s4978_s11 }
 0x233   :  { %4376 = vmatprep.subr.bf16.mxu1 %v6289_v0  ;;  %v930_v35 = vpop.permute.xlu0 %929 }
 0x234   :  { %v5423_v55 = vpop.permute.xlu1 %284  ;;  %v935_v2 = vsel %vm336_vm2, %v930_v35, 0  ;;  %4361 = vmatmul.mubr.msk.bf16.vlgmr.msra.gmra.mrb[24].mxu0 %vm336_vm2, %v5186_v33 }
 0x235   :  { %v5428_v3 = vcombine.low %v5423_v55, %v5423_v55  ;;  %4371 = vmatpush3.bf16.xpose.msra.mxu0 %v935_v2  ;;  %4372 = vmatprep.mubr.msk.bf16.mxu0 %vm4974_vm0, %v6289_v0 }
 0x236   :  { %4382 = vmatprep.subr.bf16.mxu0 %v6289_v0 }
 0x237   :  { %1679 = vrot.lane.b32.xlu1 %v5428_v3, %s4978_s11  ;;  %v5437_v34 = vpop.permute.xlu0 %294 }
 0x238   :  { %v980_v5 = vpop.permute.xlu1 %979  ;;  %v5441_v7 = vcombine.low %v5437_v34, %v5437_v34 }
 0x239   :  { %v985_v8 = vsel %vm336_vm2, %v980_v5, 0  ;;  %4367 = vmatmul.mubr.msk.bf16.vlgmr.msra.gmra.mrb[24].mxu1 %vm336_vm2, %v5184_v32 }
 0x23a   :  { %4377 = vmatpush3.bf16.xpose.msra.mxu1 %v985_v8  ;;  %4378 = vmatprep.mubr.msk.bf16.mxu1 %vm4974_vm0, %v6289_v0 }
 0x23b   :  { %1729 = vrot.lane.b32.xlu0 %v5441_v7, %s4978_s11  ;;  %4388 = vmatprep.subr.bf16.mxu1 %v6289_v0  ;;  %v1030_v33 = vpop.permute.xlu0 %1029 }
 0x23c   :  { %v5451_v10 = vpop.permute.xlu1 %296  ;;  %v1035_v13 = vsel %vm336_vm2, %v1030_v33, 0  ;;  %4373 = vmatmul.mubr.msk.bf16.vlgmr.msra.gmra.mrb[28].mxu0 %vm336_vm2, %v5215_v41 }
 0x23d   :  { %v5456_v15 = vcombine.low %v5451_v10, %v5451_v10  ;;  %4383 = vmatpush3.bf16.xpose.msra.mxu0 %v1035_v13  ;;  %4384 = vmatprep.mubr.msk.bf16.mxu0 %vm4974_vm0, %v6289_v0 }
 0x23e   :  { %4394 = vmatprep.subr.bf16.mxu0 %v6289_v0 }
 0x23f   :  { %1779 = vrot.lane.b32.xlu1 %v5456_v15, %s4978_s11  ;;  %v5465_v32 = vpop.permute.xlu0 %290 }
 0x240   :  { %v1080_v17 = vpop.permute.xlu1 %1079  ;;  %v5469_v19 = vcombine.low %v5465_v32, %v5465_v32 }
 0x241   :  { %v1085_v25 = vsel %vm336_vm2, %v1080_v17, 0  ;;  %4379 = vmatmul.mubr.msk.bf16.vlgmr.msra.gmra.mrb[28].mxu1 %vm336_vm2, %v5213_v40 }
 0x242   :  { %6292 = vst [vmem:[#allocation15_spill] sm:$0xff] %v5469_v19  ;;  %4389 = vmatpush3.bf16.xpose.msra.mxu1 %v1085_v25  ;;  %4390 = vmatprep.mubr.msk.bf16.mxu1 %vm4974_vm0, %v6289_v0 }
 0x243   :  { %1829 = vrot.lane.b32.xlu0 %v5469_v19, %s4978_s11  ;;  %4400 = vmatprep.subr.bf16.mxu1 %v6289_v0  ;;  %v1130_v41 = vpop.permute.xlu0 %1129 }
 0x244   :  { %v5479_v43 = vpop.permute.xlu1 %292  ;;  %v1135_v26 = vsel %vm336_vm2, %v1130_v41, 0  ;;  %4385 = vmatmul.mubr.msk.bf16.vlgmr.msra.gmra.mrb[32].mxu0 %vm336_vm2, %v5204_v38 }
 0x245   :  { %v5484_v45 = vcombine.low %v5479_v43, %v5479_v43  ;;  %4395 = vmatpush3.bf16.xpose.msra.mxu0 %v1135_v26  ;;  %4396 = vmatprep.mubr.msk.bf16.mxu0 %vm4974_vm0, %v6289_v0 }
 0x246   :  { %4406 = vmatprep.subr.bf16.mxu0 %v6289_v0 }
 0x247   :  { %2361 = vrot.lane.b32.xlu0 %v5135_v24, %s4969_s13  ;;  %1879 = vrot.lane.b32.xlu1 %v5484_v45, %s4978_s11  ;;  %v1230_v53 = vpop.permute.xlu0 %1229 }
 0x248   :  { %v1180_v40 = vpop.permute.xlu1 %1179  ;;  %v1235_v24 = vsel %vm336_vm2, %v1230_v53, 0 }
 0x249   :  { %v1185_v51 = vsel %vm336_vm2, %v1180_v40, 0  ;;  %4391 = vmatmul.mubr.msk.bf16.vlgmr.msra.gmra.mrb[32].mxu1 %vm336_vm2, %v5202_v37 }
 0x24a   :  { %4401 = vmatpush3.bf16.xpose.msra.mxu1 %v1185_v51  ;;  %4402 = vmatprep.mubr.msk.bf16.mxu1 %vm4974_vm0, %v6289_v0 }
 0x24b   :  { %2457 = vrot.lane.b32.xlu0 %v5131_v23, %s4969_s13  ;;  %2312 = vrot.lane.b32.xlu1 %v5129_v20, %s4969_s13 }
 0x24c   :  { %4412 = vmatprep.subr.bf16.mxu1 %v6289_v0  ;;  %4397 = vmatmul.mubr.msk.bf16.vlgmr.msra.gmra.mrb[36].mxu0 %vm336_vm2, %v5302_v60  ;;  %v1280_v38 = vpop.permute.xlu1 %1279 }
 0x24d   :  { %4407 = vmatpush3.bf16.xpose.msra.mxu0 %v1235_v24  ;;  %4408 = vmatprep.mubr.msk.bf16.mxu0 %vm4974_vm0, %v6289_v0  ;;  %v1285_v20 = vsel %vm336_vm2, %v1280_v38, 0 }
 0x24e   :  { %4418 = vmatprep.subr.bf16.mxu0 %v6289_v0 }
 0x24f   :  { %2553 = vrot.lane.b32.xlu0 %v5175_v30, %s4969_s13  ;;  %2409 = vrot.lane.b32.xlu1 %v5127_v16, %s4969_s13  ;;  %v4983_v16 = vmov 1966171168   ;;  %v298_v30 = vld [vmem:[%s6283_s2] sm:$0x3]  ;;  %s4984_s2 = smov 32  }
 0x250   :  { %v303_v23 = vunpack.c.l.s4 %v4983_v16 }
 0x251   :  { %4403 = vmatmul.mubr.msk.bf16.vlgmr.msra.gmra.mrb[36].mxu1 %vm336_vm2, %v5315_v63 }
 0x252   :  { %4413 = vmatpush3.bf16.xpose.msra.mxu1 %v1285_v20  ;;  %4414 = vmatprep.mubr.msk.bf16.mxu1 %vm4974_vm0, %v6289_v0 }
 0x253   :  { %2649 = vrot.lane.b32.xlu0 %v5197_v36, %s4969_s13  ;;  %2505 = vrot.lane.b32.xlu1 %v5165_v27, %s4969_s13  ;;  %v305_v27 = vlaneseq  ;;  %v304_v36 = vunpack.c.0.s8 %v303_v23 }
 0x254   :  { %4424 = vmatprep.subr.bf16.mxu1 %v6289_v0  ;;  %4409 = vmatmul.mubr.msk.bf16.vlgmr.msra.gmra.mrb[40].mxu0 %vm336_vm2, %v5238_v49 }
 0x255   :  { %4420 = vmatprep.mubr.msk.bf16.mxu0 %vm4974_vm0, %v6289_v0  ;;  %v306_v37 = vshrl.u32 %v305_v27, 7 }
 0x257   :  { %2745 = vrot.lane.b32.xlu0 %v5219_v42, %s4969_s13  ;;  %2601 = vrot.lane.b32.xlu1 %v5179_v31, %s4969_s13  ;;  %v299_v31 = vsub.f32 1.0, %v298_v30  ;;  %v307_v42 = vsub.s32 %v304_v36, %v306_v37  ;;  %v326_v49 = vsub.s32 0, %v306_v37 }
 0x259   :  { %4415 = vmatmul.mubr.msk.bf16.vlgmr.msra.gmra.mrb[40].mxu1 %vm336_vm2, %v5236_v48 }
 0x25a   :  { %4426 = vmatprep.mubr.msk.bf16.mxu1 %vm4974_vm0, %v6289_v0 }
 0x25b   :  { %2841 = vrot.lane.b32.xlu0 %v5243_v50, %s4969_s13  ;;  %2697 = vrot.lane.b32.xlu1 %v5208_v39, %s4969_s13  ;;  %v300_v39 = vmul.f32 -10000.0, %v299_v31 }
 0x25f   :  { %2937 = vrot.lane.b32.xlu0 %v5270_v56, %s4969_s13  ;;  %2793 = vrot.lane.b32.xlu1 %v5228_v46, %s4969_s13  ;;  %v308_v46 = vrot.slane %v300_v39, %v307_v42 }
 0x261   :  { %v316_v48 = vrot.slane %v308_v46, %v307_v42  ;;  %v309_v56 = vcombine.high %v308_v46, %v308_v46 }
 0x263   :  { %3033 = vrot.lane.b32.xlu0 %v5293_v58, %s4969_s13  ;;  %2889 = vrot.lane.b32.xlu1 %v5254_v54, %s4969_s13  ;;  %v323_v60 = vrot.slane %v309_v56, %v307_v42 }
 0x267   :  { %3129 = vrot.lane.b32.xlu0 %v5309_v61, %s4969_s13  ;;  %2985 = vrot.lane.b32.xlu1 %v5280_v57, %s4969_s13  ;;  %v5573_v57 = vrot.slane %v316_v48, %v326_v49 }
 0x26b   :  { %3225 = vrot.lane.b32.xlu0 %v5323_v1, %s4969_s13  ;;  %3081 = vrot.lane.b32.xlu1 %v5300_v59, %s4969_s13 }
 0x26f   :  { %3321 = vrot.lane.b32.xlu0 %v5344_v11, %s4969_s13  ;;  %3177 = vrot.lane.b32.xlu1 %v5313_v62, %s4969_s13 }
 0x273   :  { %3417 = vrot.lane.b32.xlu0 %v5372_v21, %s4969_s13  ;;  %3273 = vrot.lane.b32.xlu1 %v5333_v6, %s4969_s13 }
 0x277   :  { %3369 = vrot.lane.b32.xlu1 %v5357_v14, %s4969_s13 }
 0x27b   :  { %3465 = vrot.lane.b32.xlu1 %v5385_v28, %s4969_s13  ;;  %v5581_v28 = vrot.slane %v323_v60, %v326_v49 }
 0x28c   :  { %v1330_v50 = vpop.permute.xlu0 %1329 }
 0x28d   :  { %v1335_v54 = vsel %vm336_vm2, %v1330_v50, 0 }
 0x28e   :  { %4419 = vmatpush3.bf16.xpose.msra.mxu0 %v1335_v54 }
 0x28f   :  { %4430 = vmatprep.subr.bf16.mxu0 %v6289_v0 }
 0x290   :  { %v1380_v58 = vpop.permute.xlu1 %1379 }
 0x291   :  { %v1385_v59 = vsel %vm336_vm2, %v1380_v58, 0 }
 0x292   :  { %v425_v61 = vpop.f32.mrb[4].mxu1  ;;  %v377_v62 = vpop.f32.mrb[4].mxu0  ;;  %4425 = vmatpush3.bf16.xpose.msra.mxu1 %v1385_v59 }
 0x293   :  { %v4308_v63 = vpop.f32.mrb[5].mxu1  ;;  %v5578_v1 = vadd.f32 %v377_v62, %v5573_v57  ;;  %v4302_v6 = vpop.f32.mrb[5].mxu0  ;;  %4436 = vmatprep.subr.bf16.mxu1 %v6289_v0  ;;  %v5592_v13 = vadd.f32 %v425_v61, %v5581_v28 }
 0x294   :  { %v428_v11 = vpop.f32.mrb[6].mxu1  ;;  %v1430_v14 = vpop.permute.xlu0 %1429 }
 0x295   :  { %v380_v21 = vpop.f32.mrb[6].mxu0  ;;  %v1435_v35 = vsel %vm336_vm2, %v1430_v14, 0  ;;  %v4309_v5 = vpop.f32.mrb[7].mxu1  ;;  %4421 = vmatmul.mubr.msk.bf16.vlgmr.msra.gmra.mrb[44].mxu0 %vm336_vm2, %v5353_v12  ;;  %v1928_v8 = vsel %vm1927_vm3, %v5578_v1, -inf  ;;  %v1931_v16 = vsel %vm1927_vm3, %v5592_v13, -inf }
 0x296   :  { %v4303_v2 = vpop.f32.mrb[7].mxu0  ;;  %4431 = vmatpush3.bf16.xpose.msra.mxu0 %v1435_v35  ;;  %1929 = vmax.xlane.f32.xlu0 %v1928_v8 }
 0x297   :  { %4432 = vmatprep.mubr.msk.bf16.mxu0 %vm4974_vm0, %v6289_v0  ;;  %4442 = vmatprep.subr.bf16.mxu0 %v6289_v0 }
 0x298   :  { %v1480_v33 = vpop.permute.xlu1 %1479 }
 0x299   :  { %v1485_v17 = vsel %vm336_vm2, %v1480_v33, 0  ;;  %4427 = vmatmul.mubr.msk.bf16.vlgmr.msra.gmra.mrb[44].mxu1 %vm336_vm2, %v5367_v18 }
 0x29a   :  { %v521_v12 = vpop.f32.mrb[8].mxu1  ;;  %v473_v25 = vpop.f32.mrb[8].mxu0  ;;  %4437 = vmatpush3.bf16.xpose.msra.mxu1 %v1485_v17  ;;  %4438 = vmatprep.mubr.msk.bf16.mxu1 %vm4974_vm0, %v6289_v0 }
 0x29b   :  { %v4320_v41 = vpop.f32.mrb[9].mxu1  ;;  %v5600_v26 = vadd.f32 %v473_v25, %v5573_v57  ;;  %v4314_v40 = vpop.f32.mrb[9].mxu0  ;;  %4448 = vmatprep.subr.bf16.mxu1 %v6289_v0  ;;  %v5611_v27 = vadd.f32 %v521_v12, %v5581_v28 }
 0x29c   :  { %v524_v51 = vpop.f32.mrb[10].mxu1  ;;  %v1530_v53 = vpop.permute.xlu0 %1529 }
 0x29d   :  { %v476_v24 = vpop.f32.mrb[10].mxu0  ;;  %v1535_v38 = vsel %vm336_vm2, %v1530_v53, 0  ;;  %v4321_v18 = vpop.f32.mrb[11].mxu1  ;;  %4433 = vmatmul.mubr.msk.bf16.vlgmr.msra.gmra.mrb[48].mxu0 %vm336_vm2, %v5329_v4  ;;  %v1934_v23 = vsel %vm1927_vm3, %v5600_v26, -inf  ;;  %v1937_v31 = vsel %vm1927_vm3, %v5611_v27, -inf }
 0x29e   :  { %v4315_v20 = vpop.f32.mrb[11].mxu0  ;;  %4443 = vmatpush3.bf16.xpose.msra.mxu0 %v1535_v38  ;;  %1935 = vmax.xlane.f32.xlu0 %v1934_v23 }
 0x29f   :  { %1932 = vmax.xlane.f32.xlu1 %v1931_v16  ;;  %4444 = vmatprep.mubr.msk.bf16.mxu0 %vm4974_vm0, %v6289_v0 }
 0x2a0   :  { %4454 = vmatprep.subr.bf16.mxu0 %v6289_v0 }
 0x2a1   :  { %v1580_v30 = vpop.permute.xlu1 %1579  ;;  %4439 = vmatmul.mubr.msk.bf16.vlgmr.msra.gmra.mrb[48].mxu1 %vm336_vm2, %v5339_v9 }
 0x2a2   :  { %v1585_v4 = vsel %vm336_vm2, %v1580_v30, 0  ;;  %4450 = vmatprep.mubr.msk.bf16.mxu1 %vm4974_vm0, %v6289_v0  ;;  %1938 = vmax.xlane.f32.xlu0 %v1937_v31 }
 0x2a3   :  { %4449 = vmatpush3.bf16.xpose.msra.mxu1 %v1585_v4 }
 0x2a4   :  { %4460 = vmatprep.subr.bf16.mxu1 %v6289_v0  ;;  %v1630_v36 = vpop.permute.xlu0 %1629 }
 0x2a5   :  { %v1635_v37 = vsel %vm336_vm2, %v1630_v36, 0  ;;  %4445 = vmatmul.mubr.msk.bf16.vlgmr.msra.gmra.mrb[52].mxu0 %vm336_vm2, %v5409_v29 }
 0x2a6   :  { %4455 = vmatpush3.bf16.xpose.msra.mxu0 %v1635_v37  ;;  %4456 = vmatprep.mubr.msk.bf16.mxu0 %vm4974_vm0, %v6289_v0 }
 0x2a7   :  { %4466 = vmatprep.subr.bf16.mxu0 %v6289_v0 }
 0x2a9   :  { %v1680_v9 = vpop.permute.xlu1 %1679 }
 0x2aa   :  { %v1685_v39 = vsel %vm336_vm2, %v1680_v9, 0  ;;  %4451 = vmatmul.mubr.msk.bf16.vlgmr.msra.gmra.mrb[52].mxu1 %vm336_vm2, %v5423_v55 }
 0x2ab   :  { %4461 = vmatpush3.bf16.xpose.msra.mxu1 %v1685_v39  ;;  %4462 = vmatprep.mubr.msk.bf16.mxu1 %vm4974_vm0, %v6289_v0 }
 0x2ac   :  { %4472 = vmatprep.subr.bf16.mxu1 %v6289_v0 }
 0x2ad   :  { %v1730_v42 = vpop.permute.xlu0 %1729  ;;  %4457 = vmatmul.mubr.msk.bf16.vlgmr.msra.gmra.mrb[56].mxu0 %vm336_vm2, %v5381_v22 }
 0x2ae   :  { %v1735_v29 = vsel %vm336_vm2, %v1730_v42, 0  ;;  %4468 = vmatprep.mubr.msk.bf16.mxu0 %vm4974_vm0, %v6289_v0 }
 0x2af   :  { %4467 = vmatpush3.bf16.xpose.msra.mxu0 %v1735_v29 }
 0x2b0   :  { %4478 = vmatprep.subr.bf16.mxu0 %v6289_v0 }
 0x2b1   :  { %v1780_v46 = vpop.permute.xlu1 %1779 }
 0x2b2   :  { %v1785_v55 = vsel %vm336_vm2, %v1780_v46, 0  ;;  %4463 = vmatmul.mubr.msk.bf16.vlgmr.msra.gmra.mrb[56].mxu1 %vm336_vm2, %v5395_v44 }
 0x2b3   :  { %4473 = vmatpush3.bf16.xpose.msra.mxu1 %v1785_v55  ;;  %4474 = vmatprep.mubr.msk.bf16.mxu1 %vm4974_vm0, %v6289_v0 }
 0x2b4   :  { %4484 = vmatprep.subr.bf16.mxu1 %v6289_v0 }
 0x2b5   :  { %v1830_v48 = vpop.permute.xlu0 %1829 }
 0x2b6   :  { %v1835_v22 = vsel %vm336_vm2, %v1830_v48, 0  ;;  %4469 = vmatmul.mubr.msk.bf16.vlgmr.msra.gmra.mrb[60].mxu0 %vm336_vm2, %v5465_v32 }
 0x2b7   :  { %4479 = vmatpush3.bf16.xpose.msra.mxu0 %v1835_v22  ;;  %4480 = vmatprep.mubr.msk.bf16.mxu0 %vm4974_vm0, %v6289_v0 }
 0x2b8   :  { %4490 = vmatprep.subr.bf16.mxu0 %v6289_v0 }
 0x2b9   :  { %v1880_v49 = vpop.permute.xlu1 %1879  ;;  %v2362_v54 = vpop.permute.xlu0 %2361 }
 0x2ba   :  { %v1885_v44 = vsel %vm336_vm2, %v1880_v49, 0  ;;  %4475 = vmatmul.mubr.msk.bf16.vlgmr.msra.gmra.mrb[60].mxu1 %vm336_vm2, %v5479_v43  ;;  %v2367_v43 = vsel %vm2317_vm4, %v2362_v54, 0 }
 0x2bb   :  { %4485 = vmatpush3.bf16.xpose.msra.mxu1 %v1885_v44  ;;  %4486 = vmatprep.mubr.msk.bf16.mxu1 %vm4974_vm0, %v6289_v0 }
 0x2bc   :  { %4496 = vmatprep.subr.bf16.mxu1 %v6289_v0 }
 0x2bd   :  { %v2313_v32 = vpop.permute.xlu1 %2312  ;;  %v5672_v56 = vpop.permute.xlu0 %2457 }
 0x2be   :  { %v2319_v50 = vsel %vm2317_vm4, %v2313_v32, 0  ;;  %4481 = vmatmul.mubr.msk.bf16.vlgmr.msra.gmra.mrb[64].mxu0 %vm336_vm2, %v5437_v34 }
 0x2bf   :  { %4491 = vmatpush3.bf16.msra.mxu0 %v2319_v50  ;;  %4492 = vmatprep.mubr.msk.bf16.mxu0 %vm4974_vm0, %v6289_v0 }
 0x2c0   :  { %4502 = vmatprep.subr.bf16.mxu0 %v6289_v0 }
 0x2c1   :  { %v5674_v34 = vpop.permute.xlu1 %2409  ;;  %v5676_v58 = vpop.permute.xlu0 %2553 }
 0x2c2   :  { %4487 = vmatmul.mubr.msk.bf16.vlgmr.msra.gmra.mrb[64].mxu1 %vm336_vm2, %v5451_v10 }
 0x2c3   :  { %4497 = vmatpush3.bf16.msra.mxu1 %v2367_v43  ;;  %4498 = vmatprep.mubr.msk.bf16.mxu1 %vm4974_vm0, %v6289_v0 }
 0x2c4   :  { %4508 = vmatprep.subr.bf16.mxu1 %v6289_v0 }
 0x2c5   :  { %v5678_v59 = vpop.permute.xlu1 %2505  ;;  %v5680_v60 = vpop.permute.xlu0 %2649 }
 0x2c9   :  { %v5685_v63 = vpop.permute.xlu1 %2601  ;;  %v5692_v5 = vpop.permute.xlu0 %2745 }
 0x2cd   :  { %v5696_v12 = vpop.permute.xlu1 %2697  ;;  %v5703_v38 = vpop.permute.xlu0 %2841 }
 0x2d1   :  { %v5708_v23 = vpop.permute.xlu1 %2793  ;;  %v5715_v39 = vpop.permute.xlu0 %2937 }
 0x2d5   :  { %v5719_v55 = vpop.permute.xlu1 %2889  ;;  %v5726_v54 = vpop.permute.xlu0 %3033 }
 0x2ef   :  { %v571_v61 = vpop.f32.mrb[12].mxu0 }
 0x2f0   :  { %v5683_v62 = vadd.f32 %v571_v61, %v5573_v57  ;;  %v4326_v10 = vpop.f32.mrb[13].mxu0 }
 0x2f1   :  { %v574_v6 = vpop.f32.mrb[14].mxu0 }
 0x2f2   :  { %v4327_v11 = vpop.f32.mrb[15].mxu0  ;;  %v1940_v14 = vsel %vm1927_vm3, %v5683_v62, -inf  ;;  %v5731_v6 = vpop.permute.xlu1 %2985 }
 0x2f3   :  { %v621_v21 = vpop.f32.mrb[12].mxu1  ;;  %1941 = vmax.xlane.f32.xlu1 %v1940_v14 }
 0x2f4   :  { %v5690_v35 = vadd.f32 %v621_v21, %v5581_v28  ;;  %v4332_v2 = vpop.f32.mrb[13].mxu1 }
 0x2f5   :  { %v624_v8 = vpop.f32.mrb[14].mxu1 }
 0x2f6   :  { %v4333_v33 = vpop.f32.mrb[15].mxu1  ;;  %v1943_v17 = vsel %vm1927_vm3, %v5690_v35, -inf }
 0x2f7   :  { %1944 = vmax.xlane.f32.xlu0 %v1943_v17  ;;  %v671_v25 = vpop.f32.mrb[16].mxu0  ;;  %v5738_v17 = vpop.permute.xlu0 %3129 }
 0x2f8   :  { %v5699_v41 = vadd.f32 %v671_v25, %v5573_v57  ;;  %v4338_v40 = vpop.f32.mrb[17].mxu0 }
 0x2f9   :  { %v674_v51 = vpop.f32.mrb[18].mxu0 }
 0x2fa   :  { %v4339_v53 = vpop.f32.mrb[19].mxu0  ;;  %v1946_v24 = vsel %vm1927_vm3, %v5699_v41, -inf }
 0x2fb   :  { %v721_v20 = vpop.f32.mrb[16].mxu1  ;;  %1947 = vmax.xlane.f32.xlu1 %v1946_v24  ;;  %v5742_v53 = vpop.permute.xlu1 %3081 }
 0x2fc   :  { %v5706_v18 = vadd.f32 %v721_v20, %v5581_v28  ;;  %v4344_v16 = vpop.f32.mrb[17].mxu1 }
 0x2fd   :  { %v724_v30 = vpop.f32.mrb[18].mxu1 }
 0x2fe   :  { %v4345_v4 = vpop.f32.mrb[19].mxu1  ;;  %v1949_v31 = vsel %vm1927_vm3, %v5706_v18, -inf }
 0x2ff   :  { %1950 = vmax.xlane.f32.xlu0 %v1949_v31  ;;  %v771_v36 = vpop.f32.mrb[20].mxu0 }
 0x300   :  { %v5713_v37 = vadd.f32 %v771_v36, %v5573_v57  ;;  %v4350_v9 = vpop.f32.mrb[21].mxu0  ;;  %v5749_v36 = vpop.permute.xlu0 %3225 }
 0x301   :  { %v774_v42 = vpop.f32.mrb[22].mxu0  ;;  %6293 = vst [vmem:[#allocation16_spill] sm:$0xff] %v5749_v36 }
 0x302   :  { %v4351_v29 = vpop.f32.mrb[23].mxu0  ;;  %v1952_v46 = vsel %vm1927_vm3, %v5713_v37, -inf }
 0x303   :  { %v821_v48 = vpop.f32.mrb[20].mxu1  ;;  %1953 = vmax.xlane.f32.xlu1 %v1952_v46  ;;  %v5754_v46 = vpop.permute.xlu1 %3177 }
 0x304   :  { %v5722_v22 = vadd.f32 %v821_v48, %v5581_v28  ;;  %v4356_v49 = vpop.f32.mrb[21].mxu1  ;;  %6294 = vst [vmem:[#allocation17_spill] sm:$0xff] %v5754_v46 }
 0x305   :  { %v824_v44 = vpop.f32.mrb[22].mxu1 }
 0x306   :  { %v4357_v32 = vpop.f32.mrb[23].mxu1  ;;  %v1955_v50 = vsel %vm1927_vm3, %v5722_v22, -inf }
 0x307   :  { %1956 = vmax.xlane.f32.xlu0 %v1955_v50  ;;  %v871_v43 = vpop.f32.mrb[24].mxu0 }
 0x308   :  { %v5729_v61 = vadd.f32 %v871_v43, %v5573_v57  ;;  %v4362_v10 = vpop.f32.mrb[25].mxu0 }
 0x309   :  { %v874_v11 = vpop.f32.mrb[26].mxu0  ;;  %v5761_v10 = vpop.permute.xlu0 %3321 }
 0x30a   :  { %v4363_v14 = vpop.f32.mrb[27].mxu0  ;;  %v1958_v21 = vsel %vm1927_vm3, %v5729_v61, -inf  ;;  %6295 = vst [vmem:[#allocation18_spill] sm:$0xff] %v5761_v10 }
 0x30b   :  { %1959 = vmax.xlane.f32.xlu1 %v1958_v21 }
 0x30c   :  { %v921_v2 = vpop.f32.mrb[24].mxu1 }
 0x30d   :  { %v5736_v8 = vadd.f32 %v921_v2, %v5581_v28  ;;  %v4368_v33 = vpop.f32.mrb[25].mxu1  ;;  %v5765_v2 = vpop.permute.xlu1 %3273 }
 0x30e   :  { %v924_v25 = vpop.f32.mrb[26].mxu1  ;;  %6296 = vst [vmem:[#allocation19_spill] sm:$0xff] %v5765_v2 }
 0x30f   :  { %v4369_v40 = vpop.f32.mrb[27].mxu1  ;;  %v1961_v51 = vsel %vm1927_vm3, %v5736_v8, -inf  ;;  %v971_v24 = vpop.f32.mrb[28].mxu0 }
 0x310   :  { %1962 = vmax.xlane.f32.xlu0 %v1961_v51  ;;  %v5745_v20 = vadd.f32 %v971_v24, %v5573_v57  ;;  %v4374_v16 = vpop.f32.mrb[29].mxu0 }
 0x311   :  { %v974_v30 = vpop.f32.mrb[30].mxu0 }
 0x312   :  { %v4375_v4 = vpop.f32.mrb[31].mxu0  ;;  %v1964_v31 = vsel %vm1927_vm3, %v5745_v20, -inf  ;;  %v5772_v30 = vpop.permute.xlu0 %3417 }
 0x313   :  { %1965 = vmax.xlane.f32.xlu1 %v1964_v31  ;;  %6297 = vst [vmem:[#allocation20_spill] sm:$0xff] %v5772_v30 }
 0x314   :  { %v1021_v9 = vpop.f32.mrb[28].mxu1 }
 0x315   :  { %v5752_v42 = vadd.f32 %v1021_v9, %v5581_v28  ;;  %v4380_v29 = vpop.f32.mrb[29].mxu1  ;;  %v5774_v9 = vpop.permute.xlu1 %3369 }
 0x316   :  { %v1024_v48 = vpop.f32.mrb[30].mxu1  ;;  %6298 = vst [vmem:[#allocation21_spill] sm:$0xff] %v5774_v9 }
 0x317   :  { %v4381_v49 = vpop.f32.mrb[31].mxu1  ;;  %v1967_v44 = vsel %vm1927_vm3, %v5752_v42, -inf  ;;  %v1071_v32 = vpop.f32.mrb[32].mxu0 }
 0x318   :  { %1968 = vmax.xlane.f32.xlu0 %v1967_v44  ;;  %v5759_v50 = vadd.f32 %v1071_v32, %v5573_v57  ;;  %v4386_v43 = vpop.f32.mrb[33].mxu0 }
 0x319   :  { %v1074_v11 = vpop.f32.mrb[34].mxu0 }
 0x31a   :  { %v4387_v14 = vpop.f32.mrb[35].mxu0  ;;  %v1970_v21 = vsel %vm1927_vm3, %v5759_v50, -inf }
 0x31b   :  { %1971 = vmax.xlane.f32.xlu1 %v1970_v21 }
 0x31c   :  { %v1121_v33 = vpop.f32.mrb[32].mxu1 }
 0x31d   :  { %v5768_v25 = vadd.f32 %v1121_v33, %v5581_v28  ;;  %v4392_v40 = vpop.f32.mrb[33].mxu1  ;;  %v5777_v33 = vpop.permute.xlu1 %3465 }
 0x31e   :  { %v1124_v51 = vpop.f32.mrb[34].mxu1  ;;  %6299 = vst [vmem:[#allocation22_spill] sm:$0xff] %v5777_v33 }
 0x31f   :  { %v4393_v24 = vpop.f32.mrb[35].mxu1  ;;  %v1973_v16 = vsel %vm1927_vm3, %v5768_v25, -inf  ;;  %v1171_v4 = vpop.f32.mrb[36].mxu0 }
 0x320   :  { %1974 = vmax.xlane.f32.xlu0 %v1973_v16  ;;  %v4398_v31 = vpop.f32.mrb[37].mxu0 }
 0x321   :  { %v1174_v29 = vpop.f32.mrb[38].mxu0 }
 0x322   :  { %v4399_v48 = vpop.f32.mrb[39].mxu0 }
 0x323   :  { %v1930_v44 = vpop.xlane.xlu0 %1929 }
 0x324   :  { %v1221_v49 = vpop.f32.mrb[36].mxu1  ;;  %v2024_v32 = vsub.f32 %v5578_v1, %v1930_v44 }
 0x325   :  { %v4404_v43 = vpop.f32.mrb[37].mxu1 }
 0x326   :  { %v1224_v11 = vpop.f32.mrb[38].mxu1  ;;  %v2056_v14 = vmul.f32 1.442695, %v2024_v32 }
 0x327   :  { %v4405_v21 = vpop.f32.mrb[39].mxu1  ;;  %v1271_v40 = vpop.f32.mrb[40].mxu0 }
 0x328   :  { %4721 = vpow2.f32 %v2056_v14  ;;  %v4410_v51 = vpop.f32.mrb[41].mxu0 }
 0x329   :  { %v1274_v24 = vpop.f32.mrb[42].mxu0  ;;  %v5785_v51 = vadd.f32 %v1171_v4, %v5573_v57 }
 0x32a   :  { %v4411_v16 = vpop.f32.mrb[43].mxu0 }
 0x32b   :  { %v1936_v48 = vpop.xlane.xlu0 %1935 }
 0x32c   :  { %v1321_v31 = vpop.f32.mrb[40].mxu1  ;;  %v1933_v0 = vpop.xlane.xlu1 %1932  ;;  %v2026_v9 = vsub.f32 %v5600_v26, %v1936_v48 }
 0x32d   :  { %v2025_v29 = vsub.f32 %v5592_v13, %v1933_v0  ;;  %v4416_v30 = vpop.f32.mrb[41].mxu1  ;;  %v1976_v13 = vsel %vm1927_vm3, %v5785_v51, -inf }
 0x32e   :  { %v1324_v1 = vpop.f32.mrb[42].mxu1  ;;  %v2060_v32 = vmul.f32 1.442695, %v2026_v9  ;;  %v5801_v9 = vadd.f32 %v1271_v40, %v5573_v57 }
 0x32f   :  { %v2058_v44 = vmul.f32 1.442695, %v2025_v29  ;;  %v4417_v43 = vpop.f32.mrb[43].mxu1  ;;  %v1939_v11 = vpop.xlane.xlu0 %1938  ;;  %v5812_v1 = vadd.f32 %v1321_v31, %v5581_v28 }
 0x330   :  { %v2027_v14 = vsub.f32 %v5611_v27, %v1939_v11  ;;  %v5796_v27 = vadd.f32 %v1221_v49, %v5581_v28  ;;  %v1982_v49 = vsel %vm1927_vm3, %v5801_v9, -inf }
 0x331   :  { %4723 = vpow2.f32 %v2058_v44  ;;  %v1985_v44 = vsel %vm1927_vm3, %v5812_v1, -inf }
 0x332   :  { %4725 = vpow2.f32 %v2060_v32  ;;  %v5782_v21 = vpop.eup %4721  ;;  %v2062_v24 = vmul.f32 1.442695, %v2027_v14  ;;  %v1979_v29 = vsel %vm1927_vm3, %v5796_v27, -inf }
 0x333   :  { %v2120_v0 = vsel %vm1927_vm3, %v5782_v21, 0.0 }
 0x334   :  { %2121 = vadd.xlane.f32.xlu1 %v2120_v0  ;;  %4727 = vpow2.f32 %v2062_v24 }
 0x338   :  { %1977 = vmax.xlane.f32.xlu1 %v1976_v13 }
 0x33b   :  { %v5791_v26 = vpop.eup %4723 }
 0x33c   :  { %v5793_v30 = vpop.eup %4725  ;;  %v2123_v4 = vsel %vm1927_vm3, %v5791_v26, 0.0 }
 0x33d   :  { %2124 = vadd.xlane.f32.xlu0 %v2123_v4  ;;  %v2126_v16 = vsel %vm1927_vm3, %v5793_v30, 0.0 }
 0x33e   :  { %2127 = vadd.xlane.f32.xlu1 %v2126_v16  ;;  %v5807_v48 = vpop.eup %4727 }
 0x33f   :  { %v2129_v40 = vsel %vm1927_vm3, %v5807_v48, 0.0 }
 0x341   :  { %1980 = vmax.xlane.f32.xlu0 %v1979_v29 }
 0x342   :  { %1983 = vmax.xlane.f32.xlu1 %v1982_v49 }
 0x345   :  { %2130 = vadd.xlane.f32.xlu0 %v2129_v40 }
 0x349   :  { %1986 = vmax.xlane.f32.xlu0 %v1985_v44 }
 0x353   :  { %3561 = vrot.lane.b32.xlu1 %v5413_v52, %s4969_s13 }
 0x357   :  { %3609 = vrot.lane.b32.xlu1 %v5428_v3, %s4969_s13 }
 0x35f   :  { %3513 = vrot.lane.b32.xlu0 %v5400_v47, %s4969_s13 }
 0x368   :  { %v1371_v43 = vpop.f32.mrb[44].mxu0 }
 0x369   :  { %v4422_v31 = vpop.f32.mrb[45].mxu0  ;;  %v5825_v52 = vadd.f32 %v1371_v43, %v5573_v57 }
 0x36a   :  { %v1374_v32 = vpop.f32.mrb[46].mxu0 }
 0x36b   :  { %v4423_v11 = vpop.f32.mrb[47].mxu0 }
 0x36c   :  { %v1421_v14 = vpop.f32.mrb[44].mxu1  ;;  %v1988_v11 = vsel %vm1927_vm3, %v5825_v52, -inf }
 0x36d   :  { %v4428_v24 = vpop.f32.mrb[45].mxu1  ;;  %v5828_v47 = vadd.f32 %v1421_v14, %v5581_v28 }
 0x36e   :  { %v1424_v0 = vpop.f32.mrb[46].mxu1 }
 0x36f   :  { %v4429_v13 = vpop.f32.mrb[47].mxu1 }
 0x370   :  { %v1471_v4 = vpop.f32.mrb[48].mxu0 }
 0x371   :  { %v4434_v16 = vpop.f32.mrb[49].mxu0  ;;  %v5831_v32 = vadd.f32 %v1471_v4, %v5573_v57 }
 0x372   :  { %v1474_v29 = vpop.f32.mrb[50].mxu0 }
 0x373   :  { %v4435_v49 = vpop.f32.mrb[51].mxu0  ;;  %v1994_v4 = vsel %vm1927_vm3, %v5831_v32, -inf }
 0x374   :  { %v1521_v40 = vpop.f32.mrb[48].mxu1 }
 0x375   :  { %v4440_v3 = vpop.f32.mrb[49].mxu1  ;;  %v5836_v43 = vadd.f32 %v1521_v40, %v5581_v28 }
 0x376   :  { %v1524_v44 = vpop.f32.mrb[50].mxu1 }
 0x377   :  { %v4441_v33 = vpop.f32.mrb[51].mxu1 }
 0x378   :  { %v1571_v31 = vpop.f32.mrb[52].mxu0  ;;  %v1991_v33 = vsel %vm1927_vm3, %v5828_v47, -inf }
 0x379   :  { %v4446_v24 = vpop.f32.mrb[53].mxu0  ;;  %v5841_v14 = vadd.f32 %v1571_v31, %v5573_v57 }
 0x37a   :  { %v1574_v0 = vpop.f32.mrb[54].mxu0  ;;  %v1997_v24 = vsel %vm1927_vm3, %v5836_v43, -inf }
 0x37b   :  { %1989 = vmax.xlane.f32.xlu1 %v1988_v11  ;;  %v4447_v13 = vpop.f32.mrb[55].mxu0  ;;  %v2000_v31 = vsel %vm1927_vm3, %v5841_v14, -inf }
 0x37d   :  { %v1621_v16 = vpop.f32.mrb[52].mxu1 }
 0x37e   :  { %v4452_v29 = vpop.f32.mrb[53].mxu1  ;;  %1992 = vmax.xlane.f32.xlu0 %v1991_v33  ;;  %v5846_v44 = vadd.f32 %v1621_v16, %v5581_v28 }
 0x37f   :  { %1995 = vmax.xlane.f32.xlu1 %v1994_v4  ;;  %v1624_v49 = vpop.f32.mrb[54].mxu1 }
 0x380   :  { %v4453_v3 = vpop.f32.mrb[55].mxu1  ;;  %v1942_v40 = vpop.xlane.xlu1 %1941  ;;  %v2003_v10 = vsel %vm1927_vm3, %v5846_v44, -inf }
 0x381   :  { %v1671_v11 = vpop.f32.mrb[56].mxu0  ;;  %v2028_v33 = vsub.f32 %v5683_v62, %v1942_v40 }
 0x382   :  { %v5851_v0 = vadd.f32 %v1671_v11, %v5573_v57  ;;  %1998 = vmax.xlane.f32.xlu0 %v1997_v24  ;;  %v4458_v13 = vpop.f32.mrb[57].mxu0 }
 0x383   :  { %2001 = vmax.xlane.f32.xlu1 %v2000_v31  ;;  %v1674_v29 = vpop.f32.mrb[58].mxu0  ;;  %v2064_v13 = vmul.f32 1.442695, %v2028_v33 }
 0x384   :  { %v4459_v4 = vpop.f32.mrb[59].mxu0  ;;  %v2006_v16 = vsel %vm1927_vm3, %v5851_v0, -inf  ;;  %v1945_v3 = vpop.xlane.xlu0 %1944 }
 0x385   :  { %v1721_v49 = vpop.f32.mrb[56].mxu1  ;;  %v2029_v24 = vsub.f32 %v5690_v35, %v1945_v3  ;;  %4729 = vpow2.f32 %v2064_v13 }
 0x386   :  { %v5861_v11 = vadd.f32 %v1721_v49, %v5581_v28  ;;  %v4464_v2 = vpop.f32.mrb[57].mxu1  ;;  %2004 = vmax.xlane.f32.xlu0 %v2003_v10 }
 0x387   :  { %2007 = vmax.xlane.f32.xlu1 %v2006_v16  ;;  %v1724_v62 = vpop.f32.mrb[58].mxu1  ;;  %v2066_v36 = vmul.f32 1.442695, %v2029_v24 }
 0x388   :  { %v4465_v40 = vpop.f32.mrb[59].mxu1  ;;  %v2009_v31 = vsel %vm1927_vm3, %v5861_v11, -inf  ;;  %v1948_v29 = vpop.xlane.xlu1 %1947 }
 0x389   :  { %v1771_v4 = vpop.f32.mrb[60].mxu0  ;;  %v2030_v19 = vsub.f32 %v5699_v41, %v1948_v29  ;;  %4731 = vpow2.f32 %v2066_v36 }
 0x38a   :  { %v5868_v46 = vadd.f32 %v1771_v4, %v5573_v57  ;;  %2010 = vmax.xlane.f32.xlu0 %v2009_v31  ;;  %v4470_v49 = vpop.f32.mrb[61].mxu0 }
 0x38b   :  { %v1774_v35 = vpop.f32.mrb[62].mxu0  ;;  %v2068_v10 = vmul.f32 1.442695, %v2030_v19 }
 0x38c   :  { %v4471_v2 = vpop.f32.mrb[63].mxu0  ;;  %v2012_v33 = vsel %vm1927_vm3, %v5868_v46, -inf  ;;  %v1951_v3 = vpop.xlane.xlu0 %1950 }
 0x38d   :  { %v1821_v16 = vpop.f32.mrb[60].mxu1  ;;  %2013 = vmax.xlane.f32.xlu1 %v2012_v33  ;;  %v2031_v41 = vsub.f32 %v5706_v18, %v1951_v3  ;;  %4733 = vpow2.f32 %v2068_v10 }
 0x38e   :  { %v5873_v24 = vadd.f32 %v1821_v16, %v5581_v28  ;;  %v4476_v62 = vpop.f32.mrb[61].mxu1 }
 0x38f   :  { %v1824_v40 = vpop.f32.mrb[62].mxu1  ;;  %v2070_v31 = vmul.f32 1.442695, %v2031_v41  ;;  %v5884_v16 = vpop.eup %4729 }
 0x390   :  { %v4477_v13 = vpop.f32.mrb[63].mxu1  ;;  %v2015_v19 = vsel %vm1927_vm3, %v5873_v24, -inf  ;;  %v1954_v29 = vpop.xlane.xlu1 %1953 }
 0x391   :  { %2016 = vmax.xlane.f32.xlu0 %v2015_v19  ;;  %v1871_v4 = vpop.f32.mrb[64].mxu0  ;;  %v2032_v49 = vsub.f32 %v5713_v37, %v1954_v29  ;;  %4735 = vpow2.f32 %v2070_v31 }
 0x392   :  { %v5880_v36 = vadd.f32 %v1871_v4, %v5573_v57  ;;  %v4482_v35 = vpop.f32.mrb[65].mxu0  ;;  %v2132_v4 = vsel %vm1927_vm3, %v5884_v16, 0.0 }
 0x393   :  { %v1874_v2 = vpop.f32.mrb[66].mxu0  ;;  %v2072_v18 = vmul.f32 1.442695, %v2032_v49  ;;  %v5890_v31 = vpop.eup %4731 }
 0x394   :  { %v4483_v33 = vpop.f32.mrb[67].mxu0  ;;  %v2018_v10 = vsel %vm1927_vm3, %v5880_v36, -inf  ;;  %v1957_v41 = vpop.xlane.xlu0 %1956  ;;  %v2135_v2 = vsel %vm1927_vm3, %v5890_v31, 0.0 }
 0x395   :  { %v1921_v3 = vpop.f32.mrb[64].mxu1  ;;  %2019 = vmax.xlane.f32.xlu1 %v2018_v10  ;;  %4737 = vpow2.f32 %v2072_v18  ;;  %v2033_v57 = vsub.f32 %v5722_v22, %v1957_v41 }
 0x396   :  { %v5887_v62 = vadd.f32 %v1921_v3, %v5581_v28  ;;  %v4488_v37 = vpop.f32.mrb[65].mxu1 }
 0x397   :  { %v1924_v40 = vpop.f32.mrb[66].mxu1  ;;  %v2074_v13 = vmul.f32 1.442695, %v2033_v57  ;;  %v5896_v49 = vpop.eup %4733 }
 0x398   :  { %v4489_v19 = vpop.f32.mrb[67].mxu1  ;;  %v2021_v29 = vsel %vm1927_vm3, %v5887_v62, -inf  ;;  %v1960_v35 = vpop.xlane.xlu1 %1959  ;;  %v2138_v18 = vsel %vm1927_vm3, %v5896_v49, 0.0 }
 0x399   :  { %2022 = vmax.xlane.f32.xlu0 %v2021_v29  ;;  %2133 = vadd.xlane.f32.xlu1 %v2132_v4  ;;  %4739 = vpow2.f32 %v2074_v13  ;;  %v2034_v28 = vsub.f32 %v5729_v61, %v1960_v35 }
 0x39b   :  { %v2076_v22 = vmul.f32 1.442695, %v2034_v28  ;;  %v5903_v33 = vpop.eup %4735 }
 0x39c   :  { %v2141_v61 = vsel %vm1927_vm3, %v5903_v33, 0.0 }
 0x39d   :  { %2136 = vadd.xlane.f32.xlu0 %v2135_v2  ;;  %v1963_v10 = vpop.xlane.xlu0 %1962  ;;  %2139 = vadd.xlane.f32.xlu1 %v2138_v18  ;;  %4741 = vpow2.f32 %v2076_v22 }
 0x39e   :  { %v2035_v3 = vsub.f32 %v5736_v8, %v1963_v10 }
 0x39f   :  { %v5906_v41 = vpop.eup %4737 }
 0x3a0   :  { %v2078_v57 = vmul.f32 1.442695, %v2035_v3  ;;  %v1966_v37 = vpop.xlane.xlu1 %1965  ;;  %v2144_v40 = vsel %vm1927_vm3, %v5906_v41, 0.0 }
 0x3a1   :  { %2142 = vadd.xlane.f32.xlu0 %v2141_v61  ;;  %v2036_v13 = vsub.f32 %v5745_v20, %v1966_v37  ;;  %2145 = vadd.xlane.f32.xlu1 %v2144_v40 }
 0x3a2   :  { %4743 = vpow2.f32 %v2078_v57 }
 0x3a3   :  { %v5913_v19 = vpop.eup %4739  ;;  %v2080_v29 = vmul.f32 1.442695, %v2036_v13 }
 0x3a4   :  { %v2147_v8 = vsel %vm1927_vm3, %v5913_v19, 0.0 }
 0x3a5   :  { %v1969_v4 = vpop.xlane.xlu0 %1968  ;;  %4745 = vpow2.f32 %v2080_v29  ;;  %2148 = vadd.xlane.f32.xlu0 %v2147_v8 }
 0x3a6   :  { %v2037_v35 = vsub.f32 %v5752_v42, %v1969_v4 }
 0x3a7   :  { %v5918_v28 = vpop.eup %4741 }
 0x3a8   :  { %v2082_v22 = vmul.f32 1.442695, %v2037_v35  ;;  %v1972_v2 = vpop.xlane.xlu1 %1971  ;;  %v2150_v18 = vsel %vm1927_vm3, %v5918_v28, 0.0 }
 0x3a9   :  { %v2038_v20 = vsub.f32 %v5759_v50, %v1972_v2  ;;  %2151 = vadd.xlane.f32.xlu1 %v2150_v18 }
 0x3aa   :  { %4747 = vpow2.f32 %v2082_v22 }
 0x3ab   :  { %v2084_v3 = vmul.f32 1.442695, %v2038_v20 }
 0x3ac   :  { %v5923_v10 = vpop.eup %4743 }
 0x3ad   :  { %v1975_v57 = vpop.xlane.xlu0 %1974  ;;  %v2153_v61 = vsel %vm1927_vm3, %v5923_v10, 0.0  ;;  %4749 = vpow2.f32 %v2084_v3 }
 0x3ae   :  { %v2039_v42 = vsub.f32 %v5768_v25, %v1975_v57  ;;  %2154 = vadd.xlane.f32.xlu0 %v2153_v61 }
 0x3af   :  { %v5928_v37 = vpop.eup %4745 }
 0x3b0   :  { %v2086_v40 = vmul.f32 1.442695, %v2039_v42  ;;  %v2156_v13 = vsel %vm1927_vm3, %v5928_v37, 0.0 }
 0x3b1   :  { %2157 = vadd.xlane.f32.xlu1 %v2156_v13 }
 0x3b2   :  { %4751 = vpow2.f32 %v2086_v40 }
 0x3b4   :  { %v5932_v50 = vpop.eup %4747 }
 0x3b5   :  { %v2159_v29 = vsel %vm1927_vm3, %v5932_v50, 0.0 }
 0x3b6   :  { %2160 = vadd.xlane.f32.xlu0 %v2159_v29 }
 0x3b7   :  { %v5936_v4 = vpop.eup %4749 }
 0x3b8   :  { %v2162_v25 = vsel %vm1927_vm3, %v5936_v4, 0.0 }
 0x3b9   :  { %2163 = vadd.xlane.f32.xlu1 %v2162_v25 }
 0x3bc   :  { %v5940_v8 = vpop.eup %4751 }
 0x3bd   :  { %v2165_v35 = vsel %vm1927_vm3, %v5940_v8, 0.0 }
 0x3be   :  { %2166 = vadd.xlane.f32.xlu0 %v2165_v35 }
 0x3c1   :  { %v2122_v22 = vpop.xlane.xlu1 %2121 }
 0x3c2   :  { %4753 = vrcp.f32 %v2122_v22 }
 0x3c5   :  { %v1978_v2 = vpop.xlane.xlu1 %1977 }
 0x3c6   :  { %v2040_v18 = vsub.f32 %v5785_v51, %v1978_v2  ;;  %v2415_v51 = vsel %vm2317_vm4, %v5674_v34, 0 }
 0x3c8   :  { %v2088_v20 = vmul.f32 1.442695, %v2040_v18 }
 0x3ca   :  { %v2125_v3 = vpop.xlane.xlu0 %2124  ;;  %4755 = vpow2.f32 %v2088_v20  ;;  %v6300_v20 = vmov 0.0  }
 0x3cb   :  { %v2128_v57 = vpop.xlane.xlu1 %2127  ;;  %4757 = vrcp.f32 %v2125_v3 }
 0x3cc   :  { %v4754_v61 = vpop.eup %4753  ;;  %4759 = vrcp.f32 %v2128_v57 }
 0x3cd   :  { %v2248_v42 = vmul.f32 %v4754_v61, %v5782_v21 }
 0x3ce   :  { %v1981_v40 = vpop.xlane.xlu0 %1980 }
 0x3cf   :  { %v2041_v13 = vsub.f32 %v5796_v27, %v1981_v40  ;;  %v1984_v29 = vpop.xlane.xlu1 %1983  ;;  %v2280_v35 = vpack.c.bf16 %v2248_v42, %v2248_v42 }
 0x3d0   :  { %v2042_v25 = vsub.f32 %v5801_v9, %v1984_v29 }
 0x3d1   :  { %v2090_v22 = vmul.f32 1.442695, %v2041_v13  ;;  %4493 = vmatmul.mubr.msk.bf16.vlgmr.msra.gmra.mrb[68].mxu0 %vm1927_vm3, %v2280_v35  ;;  %v2511_v35 = vsel %vm2317_vm4, %v5678_v59, 0 }
 0x3d2   :  { %v2092_v2 = vmul.f32 1.442695, %v2042_v25  ;;  %v2131_v18 = vpop.xlane.xlu0 %2130  ;;  %4503 = vmatpush3.bf16.msra.mxu0 %v2415_v51  ;;  %4504 = vmatprep.mubr.msk.bf16.mxu0 %vm4974_vm0, %v6300_v20  ;;  %v2463_v25 = vsel %vm2317_vm4, %v5672_v56, 0 }
 0x3d3   :  { %4761 = vpow2.f32 %v2090_v22  ;;  %4514 = vmatprep.subr.bf16.mxu0 %v6300_v20 }
 0x3d4   :  { %4763 = vpow2.f32 %v2092_v2  ;;  %v5954_v21 = vpop.eup %4755  ;;  %v2559_v2 = vsel %vm2317_vm4, %v5676_v58, 0 }
 0x3d5   :  { %4765 = vrcp.f32 %v2131_v18  ;;  %v4758_v27 = vpop.eup %4757  ;;  %v2168_v34 = vsel %vm1927_vm3, %v5954_v21, 0.0 }
 0x3d6   :  { %v1987_v9 = vpop.xlane.xlu0 %1986  ;;  %v4760_v3 = vpop.eup %4759  ;;  %v2249_v57 = vmul.f32 %v4758_v27, %v5791_v26  ;;  %2169 = vadd.xlane.f32.xlu1 %v2168_v34 }
 0x3d7   :  { %v2043_v61 = vsub.f32 %v5812_v1, %v1987_v9  ;;  %v2250_v42 = vmul.f32 %v4760_v3, %v5793_v30 }
 0x3d8   :  { %v2281_v13 = vpack.c.bf16 %v2249_v57, %v2249_v57 }
 0x3d9   :  { %v2094_v40 = vmul.f32 1.442695, %v2043_v61  ;;  %v2282_v29 = vpack.c.bf16 %v2250_v42, %v2250_v42 }
 0x3da   :  { %4499 = vmatmul.mubr.msk.bf16.vlgmr.msra.gmra.mrb[68].mxu1 %vm1927_vm3, %v2281_v13  ;;  %v5996_v34 = vpop.permute.xlu0 %3513 }
 0x3db   :  { %4767 = vpow2.f32 %v2094_v40  ;;  %4509 = vmatpush3.bf16.msra.mxu1 %v2463_v25  ;;  %4505 = vmatmul.mubr.msk.bf16.vlgmr.msra.gmra.mrb[72].mxu0 %vm1927_vm3, %v2282_v29 }
 0x3dc   :  { %4515 = vmatpush3.bf16.msra.mxu0 %v2511_v35  ;;  %4510 = vmatprep.mubr.msk.bf16.mxu1 %vm4974_vm0, %v6300_v20 }
 0x3dd   :  { %v5967_v26 = vpop.eup %4761  ;;  %4520 = vmatprep.subr.bf16.mxu1 %v6300_v20  ;;  %4516 = vmatprep.mubr.msk.bf16.mxu0 %vm4974_vm0, %v6300_v20 }
 0x3de   :  { %v5971_v30 = vpop.eup %4763  ;;  %v2171_v56 = vsel %vm1927_vm3, %v5967_v26, 0.0  ;;  %4526 = vmatprep.subr.bf16.mxu0 %v6300_v20 }
 0x3df   :  { %v4766_v59 = vpop.eup %4765  ;;  %2172 = vadd.xlane.f32.xlu0 %v2171_v56  ;;  %v2174_v1 = vsel %vm1927_vm3, %v5971_v30, 0.0 }
 0x3e0   :  { %v2251_v22 = vmul.f32 %v4766_v59, %v5807_v48  ;;  %2175 = vadd.xlane.f32.xlu1 %v2174_v1  ;;  %v5992_v48 = vpop.permute.xlu1 %3561 }
 0x3e2   :  { %v2283_v51 = vpack.c.bf16 %v2251_v22, %v2251_v22 }
 0x3e4   :  { %4511 = vmatmul.mubr.msk.bf16.vlgmr.msra.gmra.mrb[72].mxu1 %vm1927_vm3, %v2283_v51  ;;  %v5994_v9 = vpop.permute.xlu1 %3609 }
 0x3e5   :  { %v5985_v18 = vpop.eup %4767  ;;  %4521 = vmatpush3.bf16.msra.mxu1 %v2559_v2  ;;  %4522 = vmatprep.mubr.msk.bf16.mxu1 %vm4974_vm0, %v6300_v20 }
 0x3e6   :  { %v2177_v27 = vsel %vm1927_vm3, %v5985_v18, 0.0  ;;  %4532 = vmatprep.subr.bf16.mxu1 %v6300_v20 }
 0x3e7   :  { %2178 = vadd.xlane.f32.xlu0 %v2177_v27 }
 0x408   :  { %v1990_v58 = vpop.xlane.xlu1 %1989 }
 0x409   :  { %v2044_v3 = vsub.f32 %v5825_v52, %v1990_v58 }
 0x40b   :  { %v2096_v57 = vmul.f32 1.442695, %v2044_v3  ;;  %v1993_v61 = vpop.xlane.xlu0 %1992 }
 0x40c   :  { %v2045_v42 = vsub.f32 %v5828_v47, %v1993_v61  ;;  %v1996_v40 = vpop.xlane.xlu1 %1995 }
 0x40d   :  { %4769 = vpow2.f32 %v2096_v57  ;;  %v2046_v13 = vsub.f32 %v5831_v32, %v1996_v40 }
 0x40e   :  { %v2098_v29 = vmul.f32 1.442695, %v2045_v42 }
 0x40f   :  { %v2100_v25 = vmul.f32 1.442695, %v2046_v13  ;;  %v1999_v35 = vpop.xlane.xlu0 %1998 }
 0x410   :  { %4771 = vpow2.f32 %v2098_v29  ;;  %v2047_v56 = vsub.f32 %v5836_v43, %v1999_v35  ;;  %v2002_v59 = vpop.xlane.xlu1 %2001 }
 0x411   :  { %4773 = vpow2.f32 %v2100_v25  ;;  %v2048_v1 = vsub.f32 %v5841_v14, %v2002_v59 }
 0x412   :  { %v2102_v22 = vmul.f32 1.442695, %v2047_v56 }
 0x413   :  { %v2104_v52 = vmul.f32 1.442695, %v2048_v1  ;;  %v2005_v51 = vpop.xlane.xlu0 %2004 }
 0x414   :  { %4775 = vpow2.f32 %v2102_v22  ;;  %v2049_v47 = vsub.f32 %v5846_v44, %v2005_v51  ;;  %v2008_v2 = vpop.xlane.xlu1 %2007 }
 0x415   :  { %4777 = vpow2.f32 %v2104_v52  ;;  %v2050_v32 = vsub.f32 %v5851_v0, %v2008_v2 }
 0x416   :  { %v2106_v27 = vmul.f32 1.442695, %v2049_v47 }
 0x417   :  { %v6005_v58 = vpop.eup %4769  ;;  %v2108_v3 = vmul.f32 1.442695, %v2050_v32  ;;  %v2011_v57 = vpop.xlane.xlu0 %2010 }
 0x418   :  { %4779 = vpow2.f32 %v2106_v27  ;;  %v2051_v43 = vsub.f32 %v5861_v11, %v2011_v57  ;;  %v2180_v14 = vsel %vm1927_vm3, %v6005_v58, 0.0 }
 0x419   :  { %4781 = vpow2.f32 %v2108_v3  ;;  %2181 = vadd.xlane.f32.xlu1 %v2180_v14 }
 0x41a   :  { %v6010_v61 = vpop.eup %4771  ;;  %v2110_v44 = vmul.f32 1.442695, %v2051_v43  ;;  %v6020_v13 = vpop.xlane.xlu1 %2013 }
 0x41b   :  { %v6012_v42 = vpop.eup %4773  ;;  %v2183_v0 = vsel %vm1927_vm3, %v6010_v61, 0.0 }
 0x41c   :  { %4783 = vpow2.f32 %v2110_v44  ;;  %2184 = vadd.xlane.f32.xlu0 %v2183_v0  ;;  %v2186_v40 = vsel %vm1927_vm3, %v6012_v42, 0.0 }
 0x41d   :  { %2187 = vadd.xlane.f32.xlu1 %v2186_v40 }
 0x41e   :  { %v6018_v11 = vpop.eup %4775  ;;  %v6030_v59 = vpop.xlane.xlu0 %2016 }
 0x41f   :  { %v6022_v29 = vpop.eup %4777  ;;  %v2189_v25 = vsel %vm1927_vm3, %v6018_v11, 0.0 }
 0x420   :  { %2190 = vadd.xlane.f32.xlu0 %v2189_v25  ;;  %v2192_v35 = vsel %vm1927_vm3, %v6022_v29, 0.0 }
 0x421   :  { %2193 = vadd.xlane.f32.xlu1 %v2192_v35 }
 0x422   :  { %v6028_v56 = vpop.eup %4779  ;;  %v6032_v1 = vpop.xlane.xlu1 %2019 }
 0x423   :  { %v6034_v22 = vpop.eup %4781  ;;  %v2195_v52 = vsel %vm1927_vm3, %v6028_v56, 0.0 }
 0x424   :  { %2196 = vadd.xlane.f32.xlu0 %v2195_v52  ;;  %v2198_v51 = vsel %vm1927_vm3, %v6034_v22, 0.0 }
 0x425   :  { %2199 = vadd.xlane.f32.xlu1 %v2198_v51  ;;  %v2607_v51 = vsel %vm2317_vm4, %v5685_v63, 0 }
 0x426   :  { %v6040_v47 = vpop.eup %4783  ;;  %v6042_v2 = vpop.xlane.xlu0 %2022 }
 0x427   :  { %v2134_v32 = vpop.xlane.xlu1 %2133  ;;  %v2201_v27 = vsel %vm1927_vm3, %v6040_v47, 0.0 }
 0x428   :  { %4785 = vrcp.f32 %v2134_v32  ;;  %2202 = vadd.xlane.f32.xlu0 %v2201_v27 }
 0x42a   :  { %v2137_v3 = vpop.xlane.xlu0 %2136 }
 0x42b   :  { %v2140_v57 = vpop.xlane.xlu1 %2139  ;;  %4787 = vrcp.f32 %v2137_v3 }
 0x42c   :  { %4789 = vrcp.f32 %v2140_v57  ;;  %v2655_v57 = vsel %vm2317_vm4, %v5680_v60, 0  ;;  %v2703_v60 = vsel %vm2317_vm4, %v5696_v12, 0  ;;  %v2052_v12 = vsub.f32 %v5868_v46, %v6020_v13 }
 0x42d   :  { %v2799_v46 = vsel %vm2317_vm4, %v5708_v23, 0  ;;  %v2847_v23 = vsel %vm2317_vm4, %v5703_v38, 0  ;;  %v2895_v38 = vsel %vm2317_vm4, %v5719_v55, 0 }
 0x42e   :  { %v2143_v43 = vpop.xlane.xlu0 %2142  ;;  %v2112_v13 = vmul.f32 1.442695, %v2052_v12 }
 0x42f   :  { %4791 = vrcp.f32 %v2143_v43  ;;  %v2146_v14 = vpop.xlane.xlu1 %2145 }
 0x430   :  { %4793 = vrcp.f32 %v2146_v14 }
 0x432   :  { %v4786_v44 = vpop.eup %4785  ;;  %v2149_v40 = vpop.xlane.xlu0 %2148 }
 0x433   :  { %v2252_v0 = vmul.f32 %v4786_v44, %v5884_v16  ;;  %4795 = vrcp.f32 %v2149_v40 }
 0x435   :  { %v2284_v25 = vpack.c.bf16 %v2252_v0, %v2252_v0  ;;  %v4788_v35 = vpop.eup %4787 }
 0x436   :  { %3705 = vrot.lane.b32.xlu1 %v5456_v15, %s4969_s13  ;;  %v4790_v52 = vpop.eup %4789  ;;  %v2253_v32 = vmul.f32 %v4788_v35, %v5890_v31  ;;  %v2152_v27 = vpop.xlane.xlu1 %2151 }
 0x437   :  { %4517 = vmatmul.mubr.msk.bf16.vlgmr.msra.gmra.mrb[76].mxu0 %vm1927_vm3, %v2284_v25  ;;  %v2254_v16 = vmul.f32 %v4790_v52, %v5896_v49  ;;  %4797 = vrcp.f32 %v2152_v27  ;;  %v2054_v52 = vsub.f32 %v5880_v36, %v6032_v1  ;;  %v2055_v1 = vsub.f32 %v5887_v62, %v6042_v2 }
 0x438   :  { %4527 = vmatpush3.bf16.msra.mxu0 %v2607_v51  ;;  %4528 = vmatprep.mubr.msk.bf16.mxu0 %vm4974_vm0, %v6300_v20  ;;  %v2285_v3 = vpack.c.bf16 %v2253_v32, %v2253_v32 }
 0x439   :  { %4538 = vmatprep.subr.bf16.mxu0 %v6300_v20  ;;  %v4792_v15 = vpop.eup %4791  ;;  %v2286_v43 = vpack.c.bf16 %v2254_v16, %v2254_v16  ;;  %v2116_v36 = vmul.f32 1.442695, %v2054_v52  ;;  %v2118_v62 = vmul.f32 1.442695, %v2055_v1 }
 0x43a   :  { %4523 = vmatmul.mubr.msk.bf16.vlgmr.msra.gmra.mrb[76].mxu1 %vm1927_vm3, %v2285_v3  ;;  %v2255_v63 = vmul.f32 %v4792_v15, %v5903_v33  ;;  %v4794_v49 = vpop.eup %4793 }
 0x43b   :  { %4533 = vmatpush3.bf16.msra.mxu1 %v2655_v57  ;;  %4534 = vmatprep.mubr.msk.bf16.mxu1 %vm4974_vm0, %v6300_v20  ;;  %v2155_v31 = vpop.xlane.xlu0 %2154  ;;  %v2256_v33 = vmul.f32 %v4794_v49, %v5906_v41  ;;  %v2943_v57 = vsel %vm2317_vm4, %v5715_v39, 0 }
 0x43c   :  { %4544 = vmatprep.subr.bf16.mxu1 %v6300_v20  ;;  %4799 = vrcp.f32 %v2155_v31  ;;  %v2287_v44 = vpack.c.bf16 %v2255_v63, %v2255_v63 }
 0x43d   :  { %v4796_v0 = vpop.eup %4795  ;;  %v2288_v25 = vpack.c.bf16 %v2256_v33, %v2256_v33 }
 0x43e   :  { %3657 = vrot.lane.b32.xlu0 %v5441_v7, %s4969_s13  ;;  %v2158_v14 = vpop.xlane.xlu1 %2157  ;;  %v2751_v7 = vsel %vm2317_vm4, %v5692_v5, 0  ;;  %v2257_v41 = vmul.f32 %v4796_v0, %v5913_v19  ;;  %v2053_v5 = vsub.f32 %v5873_v24, %v6030_v59 }
 0x43f   :  { %4529 = vmatmul.mubr.msk.bf16.vlgmr.msra.gmra.mrb[80].mxu0 %vm1927_vm3, %v2286_v43  ;;  %4801 = vrcp.f32 %v2158_v14  ;;  %v2991_v43 = vsel %vm2317_vm4, %v5731_v6, 0  ;;  %v3039_v6 = vsel %vm2317_vm4, %v5726_v54, 0  ;;  %v3087_v54 = vsel %vm2317_vm4, %v5742_v53, 0 }
 0x440   :  { %4539 = vmatpush3.bf16.msra.mxu0 %v2703_v60  ;;  %4540 = vmatprep.mubr.msk.bf16.mxu0 %vm4974_vm0, %v6300_v20  ;;  %v2289_v32 = vpack.c.bf16 %v2257_v41, %v2257_v41  ;;  %v2114_v59 = vmul.f32 1.442695, %v2053_v5 }
 0x441   :  { %4550 = vmatprep.subr.bf16.mxu0 %v6300_v20  ;;  %v4798_v35 = vpop.eup %4797 }
 0x442   :  { %4535 = vmatmul.mubr.msk.bf16.vlgmr.msra.gmra.mrb[80].mxu1 %vm1927_vm3, %v2287_v44  ;;  %v2258_v19 = vmul.f32 %v4798_v35, %v5918_v28 }
 0x443   :  { %4545 = vmatpush3.bf16.msra.mxu1 %v2751_v7  ;;  %4546 = vmatprep.mubr.msk.bf16.mxu1 %vm4974_vm0, %v6300_v20  ;;  %v2161_v40 = vpop.xlane.xlu0 %2160 }
 0x444   :  { %4556 = vmatprep.subr.bf16.mxu1 %v6300_v20  ;;  %4803 = vrcp.f32 %v2161_v40  ;;  %v2290_v27 = vpack.c.bf16 %v2258_v19, %v2258_v19  ;;  %v3135_v40 = vsel %vm2317_vm4, %v5738_v17, 0 }
 0x445   :  { %4805 = vpow2.f32 %v2112_v13  ;;  %v6301_v13 = vld [vmem:[#allocation17_spill] sm:$0xff] }
 0x446   :  { %v2164_v51 = vpop.xlane.xlu1 %2163  ;;  %v4800_v24 = vpop.eup %4799  ;;  %v3183_v52 = vsel %vm2317_vm4, %v6301_v13, 0 }
 0x447   :  { %4541 = vmatmul.mubr.msk.bf16.vlgmr.msra.gmra.mrb[84].mxu0 %vm1927_vm3, %v2288_v25  ;;  %4807 = vrcp.f32 %v2164_v51  ;;  %v2259_v28 = vmul.f32 %v4800_v24, %v5923_v10 }
 0x448   :  { %4551 = vmatpush3.bf16.msra.mxu0 %v2799_v46  ;;  %4552 = vmatprep.mubr.msk.bf16.mxu0 %vm4974_vm0, %v6300_v20  ;;  %4809 = vpow2.f32 %v2114_v59 }
 0x449   :  { %4562 = vmatprep.subr.bf16.mxu0 %v6300_v20  ;;  %v4802_v3 = vpop.eup %4801  ;;  %4811 = vpow2.f32 %v2116_v36  ;;  %v2291_v2 = vpack.c.bf16 %v2259_v28, %v2259_v28  ;;  %v6303_v36 = vld [vmem:[#allocation16_spill] sm:$0xff]  ;;  %v6304_v28 = vld [vmem:[#allocation19_spill] sm:$0xff] }
 0x44a   :  { %4547 = vmatmul.mubr.msk.bf16.vlgmr.msra.gmra.mrb[84].mxu1 %vm1927_vm3, %v2289_v32  ;;  %v2260_v10 = vmul.f32 %v4802_v3, %v5928_v37  ;;  %v6302_v32 = vld [vmem:[#allocation15_spill] sm:$0xff]  ;;  %v3231_v1 = vsel %vm2317_vm4, %v6303_v36, 0  ;;  %v6305_v3 = vld [vmem:[#allocation18_spill] sm:$0xff] }
 0x44b   :  { %4557 = vmatpush3.bf16.msra.mxu1 %v2847_v23  ;;  %4558 = vmatprep.mubr.msk.bf16.mxu1 %vm4974_vm0, %v6300_v20  ;;  %v2167_v16 = vpop.xlane.xlu0 %2166 }
 0x44c   :  { %4568 = vmatprep.subr.bf16.mxu1 %v6300_v20  ;;  %4813 = vrcp.f32 %v2167_v16  ;;  %v2292_v31 = vpack.c.bf16 %v2260_v10, %v2260_v10  ;;  %v3279_v16 = vsel %vm2317_vm4, %v6304_v28, 0  ;;  %v3519_v28 = vsel %vm2317_vm4, %v5996_v34, 0 }
 0x44d   :  { %4815 = vpow2.f32 %v2118_v62 }
 0x44e   :  { %v4804_v15 = vpop.eup %4803 }
 0x44f   :  { %4553 = vmatmul.mubr.msk.bf16.vlgmr.msra.gmra.mrb[88].mxu0 %vm1927_vm3, %v2290_v27  ;;  %v6114_v55 = vpop.eup %4805  ;;  %v2261_v63 = vmul.f32 %v4804_v15, %v5932_v50 }
 0x450   :  { %4563 = vmatpush3.bf16.msra.mxu0 %v2895_v38  ;;  %4564 = vmatprep.mubr.msk.bf16.mxu0 %vm4974_vm0, %v6300_v20  ;;  %v2204_v50 = vsel %vm1927_vm3, %v6114_v55, 0.0  ;;  %v3327_v38 = vsel %vm2317_vm4, %v6305_v3, 0 }
 0x451   :  { %4574 = vmatprep.subr.bf16.mxu0 %v6300_v20  ;;  %v4808_v37 = vpop.eup %4807  ;;  %v2293_v33 = vpack.c.bf16 %v2261_v63, %v2261_v63 }
 0x452   :  { %4559 = vmatmul.mubr.msk.bf16.vlgmr.msra.gmra.mrb[88].mxu1 %vm1927_vm3, %v2291_v2  ;;  %v6121_v39 = vpop.eup %4809  ;;  %v2262_v60 = vmul.f32 %v4808_v37, %v5936_v4 }
 0x453   :  { %4569 = vmatpush3.bf16.msra.mxu1 %v2943_v57  ;;  %4570 = vmatprep.mubr.msk.bf16.mxu1 %vm4974_vm0, %v6300_v20  ;;  %v6125_v49 = vpop.eup %4811  ;;  %v2207_v44 = vsel %vm1927_vm3, %v6121_v39, 0.0 }
 0x454   :  { %4580 = vmatprep.subr.bf16.mxu1 %v6300_v20  ;;  %v2210_v7 = vsel %vm1927_vm3, %v6125_v49, 0.0  ;;  %v2294_v12 = vpack.c.bf16 %v2262_v60, %v2262_v60 }
 0x456   :  { %v4814_v14 = vpop.eup %4813 }
 0x457   :  { %4565 = vmatmul.mubr.msk.bf16.vlgmr.msra.gmra.mrb[92].mxu0 %vm1927_vm3, %v2292_v31  ;;  %v6138_v4 = vpop.eup %4815  ;;  %v2263_v0 = vmul.f32 %v4814_v14, %v5940_v8 }
 0x458   :  { %4575 = vmatpush3.bf16.msra.mxu0 %v2991_v43  ;;  %4576 = vmatprep.mubr.msk.bf16.mxu0 %vm4974_vm0, %v6300_v20  ;;  %v2213_v41 = vsel %vm1927_vm3, %v6138_v4, 0.0 }
 0x459   :  { %4586 = vmatprep.subr.bf16.mxu0 %v6300_v20  ;;  %v2295_v8 = vpack.c.bf16 %v2263_v0, %v2263_v0 }
 0x45a   :  { %2205 = vadd.xlane.f32.xlu1 %v2204_v50  ;;  %4571 = vmatmul.mubr.msk.bf16.vlgmr.msra.gmra.mrb[92].mxu1 %vm1927_vm3, %v2293_v33 }
 0x45b   :  { %4581 = vmatpush3.bf16.msra.mxu1 %v3039_v6  ;;  %4582 = vmatprep.mubr.msk.bf16.mxu1 %vm4974_vm0, %v6300_v20 }
 0x45c   :  { %4592 = vmatprep.subr.bf16.mxu1 %v6300_v20 }
 0x45d   :  { %2208 = vadd.xlane.f32.xlu0 %v2207_v44 }
 0x45e   :  { %2211 = vadd.xlane.f32.xlu1 %v2210_v7 }
 0x45f   :  { %4577 = vmatmul.mubr.msk.bf16.vlgmr.msra.gmra.mrb[96].mxu0 %vm1927_vm3, %v2294_v12 }
 0x460   :  { %4587 = vmatpush3.bf16.msra.mxu0 %v3087_v54  ;;  %4588 = vmatprep.mubr.msk.bf16.mxu0 %vm4974_vm0, %v6300_v20 }
 0x461   :  { %2214 = vadd.xlane.f32.xlu0 %v2213_v41  ;;  %4598 = vmatprep.subr.bf16.mxu0 %v6300_v20 }
 0x462   :  { %4583 = vmatmul.mubr.msk.bf16.vlgmr.msra.gmra.mrb[96].mxu1 %vm1927_vm3, %v2295_v8 }
 0x463   :  { %4593 = vmatpush3.bf16.msra.mxu1 %v3135_v40  ;;  %v2170_v53 = vpop.xlane.xlu1 %2169  ;;  %4594 = vmatprep.mubr.msk.bf16.mxu1 %vm4974_vm0, %v6300_v20 }
 0x464   :  { %4817 = vrcp.f32 %v2170_v53  ;;  %4604 = vmatprep.subr.bf16.mxu1 %v6300_v20 }
 0x46c   :  { %v2173_v25 = vpop.xlane.xlu0 %2172 }
 0x46d   :  { %4819 = vrcp.f32 %v2173_v25  ;;  %v2176_v35 = vpop.xlane.xlu1 %2175  ;;  %v6306_v25 = vld [vmem:[#allocation21_spill] sm:$0xff] }
 0x46e   :  { %4821 = vrcp.f32 %v2176_v35  ;;  %v4818_v5 = vpop.eup %4817  ;;  %v3375_v35 = vsel %vm2317_vm4, %v6306_v25, 0 }
 0x46f   :  { %3801 = vrot.lane.b32.xlu1 %v5484_v45, %s4969_s13  ;;  %v2264_v17 = vmul.f32 %v4818_v5, %v5954_v21 }
 0x471   :  { %v2296_v46 = vpack.c.bf16 %v2264_v17, %v2264_v17 }
 0x473   :  { %4589 = vmatmul.mubr.msk.bf16.vlgmr.msra.gmra.mrb[100].mxu0 %vm1927_vm3, %v2296_v46 }
 0x474   :  { %v2179_v19 = vpop.xlane.xlu0 %2178  ;;  %4599 = vmatpush3.bf16.msra.mxu0 %v3183_v52  ;;  %4600 = vmatprep.mubr.msk.bf16.mxu0 %vm4974_vm0, %v6300_v20 }
 0x475   :  { %4823 = vrcp.f32 %v2179_v19  ;;  %4610 = vmatprep.subr.bf16.mxu0 %v6300_v20 }
 0x477   :  { %v4820_v51 = vpop.eup %4819  ;;  %3753 = vrot.lane.b32.xlu0 %v6302_v32, %s4969_s13  ;;  %s4985_s13 = smov 36  }
 0x478   :  { %v4822_v45 = vpop.eup %4821  ;;  %v2265_v21 = vmul.f32 %v4820_v51, %v5967_v26 }
 0x479   :  { %v2266_v24 = vmul.f32 %v4822_v45, %v5971_v30 }
 0x47a   :  { %v2297_v59 = vpack.c.bf16 %v2265_v21, %v2265_v21 }
 0x47b   :  { %v2298_v23 = vpack.c.bf16 %v2266_v24, %v2266_v24 }
 0x47c   :  { %4595 = vmatmul.mubr.msk.bf16.vlgmr.msra.gmra.mrb[100].mxu1 %vm1927_vm3, %v2297_v59  ;;  %v6308_v59 = vld [vmem:[#allocation22_spill] sm:$0xff] }
 0x47d   :  { %4601 = vmatmul.mubr.msk.bf16.vlgmr.msra.gmra.mrb[104].mxu0 %vm1927_vm3, %v2298_v23  ;;  %4605 = vmatpush3.bf16.msra.mxu1 %v3231_v1  ;;  %v3471_v23 = vsel %vm2317_vm4, %v6308_v59, 0 }
 0x47e   :  { %4611 = vmatpush3.bf16.msra.mxu0 %v3279_v16  ;;  %4606 = vmatprep.mubr.msk.bf16.mxu1 %vm4974_vm0, %v6300_v20 }
 0x47f   :  { %v4824_v26 = vpop.eup %4823  ;;  %4616 = vmatprep.subr.bf16.mxu1 %v6300_v20  ;;  %4612 = vmatprep.mubr.msk.bf16.mxu0 %vm4974_vm0, %v6300_v20 }
 0x480   :  { %v2267_v30 = vmul.f32 %v4824_v26, %v5985_v18  ;;  %4622 = vmatprep.subr.bf16.mxu0 %v6300_v20 }
 0x482   :  { %v2299_v27 = vpack.c.bf16 %v2267_v30, %v2267_v30 }
 0x484   :  { %4607 = vmatmul.mubr.msk.bf16.vlgmr.msra.gmra.mrb[104].mxu1 %vm1927_vm3, %v2299_v27 }
 0x485   :  { %4617 = vmatpush3.bf16.msra.mxu1 %v3327_v38  ;;  %4618 = vmatprep.mubr.msk.bf16.mxu1 %vm4974_vm0, %v6300_v20 }
 0x486   :  { %4628 = vmatprep.subr.bf16.mxu1 %v6300_v20 }
 0x4a4   :  { %v2355_v62 = vpop.f32.mrb[68].mxu0 }
 0x4a5   :  { %3853 = vrot.lane.b32.xlu0 %v2355_v62, %s4984_s2  ;;  %v4494_v2 = vpop.f32.mrb[69].mxu0 }
 0x4a6   :  { %v2182_v10 = vpop.xlane.xlu1 %2181  ;;  %v2358_v18 = vpop.f32.mrb[70].mxu0 }
 0x4a7   :  { %4825 = vrcp.f32 %v2182_v10  ;;  %v4495_v15 = vpop.f32.mrb[71].mxu0 }
 0x4a9   :  { %v2185_v57 = vpop.xlane.xlu0 %2184 }
 0x4aa   :  { %4827 = vrcp.f32 %v2185_v57  ;;  %v2188_v63 = vpop.xlane.xlu1 %2187 }
 0x4ab   :  { %4829 = vrcp.f32 %v2188_v63 }
 0x4ad   :  { %v2191_v31 = vpop.xlane.xlu0 %2190  ;;  %v2403_v37 = vpop.f32.mrb[68].mxu1 }
 0x4ae   :  { %4831 = vrcp.f32 %v2191_v31  ;;  %v2194_v43 = vpop.xlane.xlu1 %2193  ;;  %v2451_v60 = vpop.f32.mrb[72].mxu0  ;;  %3855 = vrot.lane.b32.xlu1 %v2403_v37, %s4984_s2 }
 0x4af   :  { %v4500_v50 = vpop.f32.mrb[69].mxu1  ;;  %3849 = vst.msk [vmem:[#allocation10] sm:$0xff] %vm336_vm2, %v2451_v60  ;;  %v4506_v33 = vpop.f32.mrb[73].mxu0  ;;  %4833 = vrcp.f32 %v2194_v43 }
 0x4b0   :  { %v2406_v14 = vpop.f32.mrb[70].mxu1  ;;  %v2454_v44 = vpop.f32.mrb[74].mxu0 }
 0x4b1   :  { %v4826_v6 = vpop.eup %4825  ;;  %v4501_v0 = vpop.f32.mrb[71].mxu1 }
 0x4b2   :  { %v2268_v7 = vmul.f32 %v4826_v6, %v6005_v58  ;;  %v4507_v12 = vpop.f32.mrb[75].mxu0  ;;  %v2197_v54 = vpop.xlane.xlu0 %2196 }
 0x4b3   :  { %4835 = vrcp.f32 %v2197_v54  ;;  %v2200_v13 = vpop.xlane.xlu1 %2199 }
 0x4b4   :  { %v4828_v41 = vpop.eup %4827  ;;  %v2300_v8 = vpack.c.bf16 %v2268_v7, %v2268_v7  ;;  %4837 = vrcp.f32 %v2200_v13 }
 0x4b5   :  { %v4830_v40 = vpop.eup %4829  ;;  %v2269_v53 = vmul.f32 %v4828_v41, %v6010_v61  ;;  %v6307_v61 = vld [vmem:[#allocation20_spill] sm:$0xff] }
 0x4b6   :  { %4613 = vmatmul.mubr.msk.bf16.vlgmr.msra.gmra.mrb[108].mxu0 %vm1927_vm3, %v2300_v8  ;;  %v2270_v46 = vmul.f32 %v4830_v40, %v6012_v42  ;;  %v3423_v19 = vsel %vm2317_vm4, %v6307_v61, 0  ;;  %v2203_v42 = vpop.xlane.xlu0 %2202 }
 0x4b7   :  { %v2499_v5 = vpop.f32.mrb[72].mxu1  ;;  %4623 = vmatpush3.bf16.msra.mxu0 %v3375_v35  ;;  %v2301_v17 = vpack.c.bf16 %v2269_v53, %v2269_v53  ;;  %4624 = vmatprep.mubr.msk.bf16.mxu0 %vm4974_vm0, %v6300_v20  ;;  %4839 = vrcp.f32 %v2203_v42  ;;  %v3706_v10 = vpop.permute.xlu1 %3705 }
 0x4b8   :  { %v4832_v58 = vpop.eup %4831  ;;  %3850 = vst.msk [vmem:[#allocation10 + $0x8] sm:$0xff] %vm336_vm2, %v2499_v5  ;;  %v4512_v52 = vpop.f32.mrb[73].mxu1  ;;  %4634 = vmatprep.subr.bf16.mxu0 %v6300_v20  ;;  %v2302_v21 = vpack.c.bf16 %v2270_v46, %v2270_v46  ;;  %vm4002_vm2 = vcmask 261344  }
 0x4b9   :  { %v2502_v51 = vpop.f32.mrb[74].mxu1  ;;  %4619 = vmatmul.mubr.msk.bf16.vlgmr.msra.gmra.mrb[108].mxu1 %vm1927_vm3, %v2301_v17  ;;  %v2271_v45 = vmul.f32 %v4832_v58, %v6018_v11  ;;  %v4834_v24 = vpop.eup %4833 }
 0x4ba   :  { %v4513_v32 = vpop.f32.mrb[75].mxu1  ;;  %4629 = vmatpush3.bf16.msra.mxu1 %v3423_v19  ;;  %4630 = vmatprep.mubr.msk.bf16.mxu1 %vm4974_vm0, %v6300_v20  ;;  %v2272_v11 = vmul.f32 %v4834_v24, %v6022_v29  ;;  %v3567_v29 = vsel %vm2317_vm4, %v5992_v48, 0  ;;  %v3658_v38 = vpop.permute.xlu0 %3657 }
 0x4bb   :  { %4640 = vmatprep.subr.bf16.mxu1 %v6300_v20  ;;  %v2303_v36 = vpack.c.bf16 %v2271_v45, %v2271_v45 }
 0x4bc   :  { %v2304_v26 = vpack.c.bf16 %v2272_v11, %v2272_v11 }
 0x4bd   :  { %v4836_v1 = vpop.eup %4835 }
 0x4be   :  { %4625 = vmatmul.mubr.msk.bf16.vlgmr.msra.gmra.mrb[112].mxu0 %vm1927_vm3, %v2302_v21  ;;  %v2273_v16 = vmul.f32 %v4836_v1, %v6028_v56  ;;  %v4838_v30 = vpop.eup %4837  ;;  %v3615_v56 = vsel %vm2317_vm4, %v5994_v9, 0  ;;  %v3711_v9 = vsel %vm2317_vm4, %v3706_v10, 0 }
 0x4bf   :  { %4635 = vmatpush3.bf16.msra.mxu0 %v3471_v23  ;;  %4636 = vmatprep.mubr.msk.bf16.mxu0 %vm4974_vm0, %v6300_v20  ;;  %v2274_v3 = vmul.f32 %v4838_v30, %v6034_v22  ;;  %v3663_v22 = vsel %vm2317_vm4, %v3658_v38, 0 }
 0x4c0   :  { %4646 = vmatprep.subr.bf16.mxu0 %v6300_v20  ;;  %v2305_v27 = vpack.c.bf16 %v2273_v16, %v2273_v16 }
 0x4c1   :  { %4631 = vmatmul.mubr.msk.bf16.vlgmr.msra.gmra.mrb[112].mxu1 %vm1927_vm3, %v2303_v36  ;;  %v4840_v34 = vpop.eup %4839  ;;  %v2306_v62 = vpack.c.bf16 %v2274_v3, %v2274_v3 }
 0x4c2   :  { %4641 = vmatpush3.bf16.msra.mxu1 %v3519_v28  ;;  %4642 = vmatprep.mubr.msk.bf16.mxu1 %vm4974_vm0, %v6300_v20  ;;  %v2275_v48 = vmul.f32 %v4840_v34, %v6040_v47 }
 0x4c3   :  { %4652 = vmatprep.subr.bf16.mxu1 %v6300_v20 }
 0x4c4   :  { %v2307_v2 = vpack.c.bf16 %v2275_v48, %v2275_v48 }
 0x4c6   :  { %4637 = vmatmul.mubr.msk.bf16.vlgmr.msra.gmra.mrb[116].mxu0 %vm1927_vm3, %v2304_v26 }
 0x4c7   :  { %4647 = vmatpush3.bf16.msra.mxu0 %v3567_v29  ;;  %4648 = vmatprep.mubr.msk.bf16.mxu0 %vm4974_vm0, %v6300_v20 }
 0x4c8   :  { %4658 = vmatprep.subr.bf16.mxu0 %v6300_v20 }
 0x4c9   :  { %4643 = vmatmul.mubr.msk.bf16.vlgmr.msra.gmra.mrb[116].mxu1 %vm1927_vm3, %v2305_v27 }
 0x4ca   :  { %4653 = vmatpush3.bf16.msra.mxu1 %v3615_v56  ;;  %4654 = vmatprep.mubr.msk.bf16.mxu1 %vm4974_vm0, %v6300_v20 }
 0x4cb   :  { %4664 = vmatprep.subr.bf16.mxu1 %v6300_v20 }
 0x4ce   :  { %4649 = vmatmul.mubr.msk.bf16.vlgmr.msra.gmra.mrb[120].mxu0 %vm1927_vm3, %v2306_v62 }
 0x4cf   :  { %4659 = vmatpush3.bf16.msra.mxu0 %v3663_v22  ;;  %4660 = vmatprep.mubr.msk.bf16.mxu0 %vm4974_vm0, %v6300_v20 }
 0x4d0   :  { %4670 = vmatprep.subr.bf16.mxu0 %v6300_v20 }
 0x4d1   :  { %4655 = vmatmul.mubr.msk.bf16.vlgmr.msra.gmra.mrb[120].mxu1 %vm1927_vm3, %v2307_v2 }
 0x4d2   :  { %4665 = vmatpush3.bf16.msra.mxu1 %v3711_v9  ;;  %4666 = vmatprep.mubr.msk.bf16.mxu1 %vm4974_vm0, %v6300_v20 }
 0x4d3   :  { %4676 = vmatprep.subr.bf16.mxu1 %v6300_v20 }
 0x4e7   :  { %v2206_v47 = vpop.xlane.xlu1 %2205 }
 0x4e8   :  { %4841 = vrcp.f32 %v2206_v47 }
 0x4ea   :  { %v2209_v18 = vpop.xlane.xlu0 %2208 }
 0x4eb   :  { %4843 = vrcp.f32 %v2209_v18  ;;  %v2212_v15 = vpop.xlane.xlu1 %2211 }
 0x4ec   :  { %4845 = vrcp.f32 %v2212_v15 }
 0x4ee   :  { %v2215_v57 = vpop.xlane.xlu0 %2214 }
 0x4ef   :  { %4847 = vrcp.f32 %v2215_v57  ;;  %v3802_v14 = vpop.permute.xlu1 %3801 }
 0x4f2   :  { %v4842_v63 = vpop.eup %4841  ;;  %v3754_v37 = vpop.permute.xlu0 %3753 }
 0x4f3   :  { %v2276_v31 = vmul.f32 %v4842_v63, %v6114_v55  ;;  %v3759_v6 = vsel %vm2317_vm4, %v3754_v37, 0  ;;  %v3807_v55 = vsel %vm2317_vm4, %v3802_v14, 0  ;;  %vm4016_vm4 = vcmask 1048064  }
 0x4f5   :  { %v4844_v43 = vpop.eup %4843  ;;  %v2308_v60 = vpack.c.bf16 %v2276_v31, %v2276_v31 }
 0x4f6   :  { %v4846_v50 = vpop.eup %4845  ;;  %v2277_v33 = vmul.f32 %v4844_v43, %v6121_v39 }
 0x4f7   :  { %4661 = vmatmul.mubr.msk.bf16.vlgmr.msra.gmra.mrb[124].mxu0 %vm1927_vm3, %v2308_v60  ;;  %v2278_v7 = vmul.f32 %v4846_v50, %v6125_v49 }
 0x4f8   :  { %4671 = vmatpush3.bf16.msra.mxu0 %v3759_v6  ;;  %v2309_v44 = vpack.c.bf16 %v2277_v33, %v2277_v33  ;;  %4672 = vmatprep.mubr.msk.bf16.mxu0 %vm4974_vm0, %v6300_v20 }
 0x4f9   :  { %v4848_v0 = vpop.eup %4847  ;;  %v2310_v12 = vpack.c.bf16 %v2278_v7, %v2278_v7 }
 0x4fa   :  { %4667 = vmatmul.mubr.msk.bf16.vlgmr.msra.gmra.mrb[124].mxu1 %vm1927_vm3, %v2309_v44  ;;  %v2279_v39 = vmul.f32 %v4848_v0, %v6138_v4 }
 0x4fb   :  { %4677 = vmatpush3.bf16.msra.mxu1 %v3807_v55  ;;  %4678 = vmatprep.mubr.msk.bf16.mxu1 %vm4974_vm0, %v6300_v20  ;;  %vm3980_vm0 = vcmask 228544  }
 0x4fc   :  { %v2311_v54 = vpack.c.bf16 %v2279_v39, %v2279_v39 }
 0x4ff   :  { %4673 = vmatmul.mubr.msk.bf16.vlgmr.msra.gmra.mrb[128].mxu0 %vm1927_vm3, %v2310_v12 }
 0x502   :  { %4679 = vmatmul.mubr.msk.bf16.vlgmr.msra.gmra.mrb[128].mxu1 %vm1927_vm3, %v2311_v54  ;;  %vm4013_vm3 = vcmask 523744  }
 0x50a   :  { %v2547_v41 = vpop.f32.mrb[76].mxu0 }
 0x50b   :  { %3875 = vrot.lane.b32.xlu0 %v2547_v41, %s4985_s13  ;;  %v4518_v49 = vpop.f32.mrb[77].mxu0 }
 0x50c   :  { %v2550_v8 = vpop.f32.mrb[78].mxu0 }
 0x50d   :  { %v4519_v40 = vpop.f32.mrb[79].mxu0  ;;  %v2595_v53 = vpop.f32.mrb[76].mxu1 }
 0x50e   :  { %v4524_v25 = vpop.f32.mrb[77].mxu1  ;;  %3877 = vrot.lane.b32.xlu1 %v2595_v53, %s4985_s13 }
 0x50f   :  { %v2598_v35 = vpop.f32.mrb[78].mxu1 }
 0x510   :  { %v4525_v5 = vpop.f32.mrb[79].mxu1 }
 0x512   :  { %v2643_v17 = vpop.f32.mrb[80].mxu0 }
 0x513   :  { %3864 = vrot.lane.b32.xlu0 %v2643_v17, %s4970_s14  ;;  %v4530_v4 = vpop.f32.mrb[81].mxu0 }
 0x514   :  { %v2646_v58 = vpop.f32.mrb[82].mxu0 }
 0x515   :  { %v4531_v46 = vpop.f32.mrb[83].mxu0  ;;  %v2691_v13 = vpop.f32.mrb[80].mxu1 }
 0x516   :  { %v4536_v52 = vpop.f32.mrb[81].mxu1  ;;  %3866 = vrot.lane.b32.xlu1 %v2691_v13, %s4970_s14  ;;  %s4987_s14 = smov 8  }
 0x517   :  { %v2694_v61 = vpop.f32.mrb[82].mxu1  ;;  %v3854_v19 = vpop.permute.xlu0 %3853 }
 0x518   :  { %v4537_v51 = vpop.f32.mrb[83].mxu1  ;;  %3860 = vst.msk [vmem:[#allocation10] sm:$0xff] %vm3859_vm5, %v3854_v19 }
 0x51a   :  { %v2739_v32 = vpop.f32.mrb[84].mxu0 }
 0x51b   :  { %3897 = vrot.lane.b32.xlu0 %v2739_v32, %s4986_s18  ;;  %v4542_v45 = vpop.f32.mrb[85].mxu0 }
 0x51c   :  { %v2742_v42 = vpop.f32.mrb[86].mxu0 }
 0x51d   :  { %v4543_v21 = vpop.f32.mrb[87].mxu0  ;;  %v2787_v24 = vpop.f32.mrb[84].mxu1 }
 0x51e   :  { %v4548_v59 = vpop.f32.mrb[85].mxu1  ;;  %3899 = vrot.lane.b32.xlu1 %v2787_v24, %s4986_s18 }
 0x51f   :  { %v2790_v23 = vpop.f32.mrb[86].mxu1 }
 0x520   :  { %v4549_v36 = vpop.f32.mrb[87].mxu1  ;;  %v3856_v1 = vpop.permute.xlu1 %3855 }
 0x521   :  { %3861 = vst.msk [vmem:[#allocation10 + $0x8] sm:$0xff] %vm3859_vm5, %v3856_v1 }
 0x522   :  { %v2835_v11 = vpop.f32.mrb[88].mxu0 }
 0x523   :  { %3886 = vrot.lane.b32.xlu0 %v2835_v11, %s4987_s14  ;;  %v4554_v28 = vpop.f32.mrb[89].mxu0 }
 0x524   :  { %v2838_v16 = vpop.f32.mrb[90].mxu0 }
 0x525   :  { %v4555_v26 = vpop.f32.mrb[91].mxu0  ;;  %v2883_v30 = vpop.f32.mrb[88].mxu1 }
 0x526   :  { %v4560_v29 = vpop.f32.mrb[89].mxu1  ;;  %3888 = vrot.lane.b32.xlu1 %v2883_v30, %s4987_s14 }
 0x527   :  { %v2886_v27 = vpop.f32.mrb[90].mxu1 }
 0x528   :  { %v4561_v34 = vpop.f32.mrb[91].mxu1 }
 0x52a   :  { %v2931_v3 = vpop.f32.mrb[92].mxu0 }
 0x52b   :  { %3919 = vrot.lane.b32.xlu0 %v2931_v3, %s4988_s19  ;;  %v4566_v56 = vpop.f32.mrb[93].mxu0 }
 0x52c   :  { %v2934_v48 = vpop.f32.mrb[94].mxu0 }
 0x52d   :  { %v4567_v38 = vpop.f32.mrb[95].mxu0  ;;  %v2979_v62 = vpop.f32.mrb[92].mxu1 }
 0x52e   :  { %v4572_v10 = vpop.f32.mrb[93].mxu1  ;;  %3921 = vrot.lane.b32.xlu1 %v2979_v62, %s4988_s19 }
 0x52f   :  { %v2982_v22 = vpop.f32.mrb[94].mxu1 }
 0x530   :  { %v4573_v2 = vpop.f32.mrb[95].mxu1 }
 0x532   :  { %v3027_v9 = vpop.f32.mrb[96].mxu0 }
 0x533   :  { %3908 = vrot.lane.b32.xlu0 %v3027_v9, %s4989_s20  ;;  %v4578_v47 = vpop.f32.mrb[97].mxu0 }
 0x534   :  { %v3030_v18 = vpop.f32.mrb[98].mxu0 }
 0x535   :  { %v4579_v15 = vpop.f32.mrb[99].mxu0  ;;  %v3075_v57 = vpop.f32.mrb[96].mxu1 }
 0x536   :  { %v4584_v63 = vpop.f32.mrb[97].mxu1  ;;  %3910 = vrot.lane.b32.xlu1 %v3075_v57, %s4989_s20 }
 0x537   :  { %v3078_v31 = vpop.f32.mrb[98].mxu1 }
 0x538   :  { %v4585_v37 = vpop.f32.mrb[99].mxu1 }
 0x546   :  { %v3123_v43 = vpop.f32.mrb[100].mxu0 }
 0x547   :  { %3941 = vrot.lane.b32.xlu0 %v3123_v43, %s4990_s21  ;;  %v4590_v60 = vpop.f32.mrb[101].mxu0 }
 0x548   :  { %v3126_v50 = vpop.f32.mrb[102].mxu0 }
 0x549   :  { %v4591_v33 = vpop.f32.mrb[103].mxu0 }
 0x54f   :  { %v3171_v14 = vpop.f32.mrb[100].mxu1 }
 0x550   :  { %v3219_v6 = vpop.f32.mrb[104].mxu0  ;;  %v4596_v44 = vpop.f32.mrb[101].mxu1  ;;  %3943 = vrot.lane.b32.xlu1 %v3171_v14, %s4990_s21 }
 0x551   :  { %3930 = vrot.lane.b32.xlu0 %v3219_v6, %s4991_s22  ;;  %v4602_v0 = vpop.f32.mrb[105].mxu0  ;;  %v3174_v7 = vpop.f32.mrb[102].mxu1 }
 0x552   :  { %v3222_v55 = vpop.f32.mrb[106].mxu0  ;;  %v4597_v39 = vpop.f32.mrb[103].mxu1 }
 0x553   :  { %v4603_v12 = vpop.f32.mrb[107].mxu0 }
 0x557   :  { %v3267_v54 = vpop.f32.mrb[104].mxu1 }
 0x558   :  { %v4608_v41 = vpop.f32.mrb[105].mxu1  ;;  %3932 = vrot.lane.b32.xlu1 %v3267_v54, %s4991_s22 }
 0x559   :  { %v3270_v49 = vpop.f32.mrb[106].mxu1 }
 0x55a   :  { %v4609_v8 = vpop.f32.mrb[107].mxu1 }
 0x57d   :  { %v3876_v40 = vpop.permute.xlu0 %3875 }
 0x580   :  { %v3878_v53 = vpop.permute.xlu1 %3877 }
 0x585   :  { %v3865_v25 = vpop.permute.xlu0 %3864 }
 0x586   :  { %3871 = vst.msk [vmem:[#allocation10] sm:$0xff] %vm3870_vm6, %v3865_v25 }
 0x587   :  { %3882 = vst.msk [vmem:[#allocation10] sm:$0xff] %vm3881_vm7, %v3876_v40 }
 0x588   :  { %v3867_v35 = vpop.permute.xlu1 %3866 }
 0x589   :  { %v3315_v5 = vpop.f32.mrb[108].mxu0  ;;  %3872 = vst.msk [vmem:[#allocation10 + $0x8] sm:$0xff] %vm3870_vm6, %v3867_v35 }
 0x58a   :  { %3963 = vrot.lane.b32.xlu0 %v3315_v5, %s4992_s23  ;;  %v4614_v17 = vpop.f32.mrb[109].mxu0  ;;  %3883 = vst.msk [vmem:[#allocation10 + $0x8] sm:$0xff] %vm3881_vm7, %v3878_v53 }
 0x58b   :  { %v3318_v4 = vpop.f32.mrb[110].mxu0 }
 0x58c   :  { %v4615_v58 = vpop.f32.mrb[111].mxu0  ;;  %v3363_v46 = vpop.f32.mrb[108].mxu1 }
 0x58d   :  { %v4620_v13 = vpop.f32.mrb[109].mxu1  ;;  %3965 = vrot.lane.b32.xlu1 %v3363_v46, %s4992_s23  ;;  %v3898_v19 = vpop.permute.xlu0 %3897 }
 0x58e   :  { %v3366_v52 = vpop.f32.mrb[110].mxu1 }
 0x58f   :  { %v4621_v61 = vpop.f32.mrb[111].mxu1 }
 0x590   :  { %v3900_v45 = vpop.permute.xlu1 %3899 }
 0x591   :  { %v3411_v51 = vpop.f32.mrb[112].mxu0 }
 0x592   :  { %3952 = vrot.lane.b32.xlu0 %v3411_v51, %s4993_s24  ;;  %v4626_v32 = vpop.f32.mrb[113].mxu0 }
 0x593   :  { %v3414_v42 = vpop.f32.mrb[114].mxu0 }
 0x594   :  { %v4627_v21 = vpop.f32.mrb[115].mxu0  ;;  %v3459_v24 = vpop.f32.mrb[112].mxu1 }
 0x595   :  { %v3887_v59 = vpop.permute.xlu0 %3886  ;;  %v4632_v23 = vpop.f32.mrb[113].mxu1  ;;  %3954 = vrot.lane.b32.xlu1 %v3459_v24, %s4993_s24 }
 0x596   :  { %3893 = vst.msk [vmem:[#allocation10] sm:$0xff] %vm3892_vm8, %v3887_v59  ;;  %v3462_v36 = vpop.f32.mrb[114].mxu1 }
 0x597   :  { %v4633_v1 = vpop.f32.mrb[115].mxu1  ;;  %3904 = vst.msk [vmem:[#allocation10] sm:$0xff] %vm3903_vm9, %v3898_v19 }
 0x598   :  { %v3889_v11 = vpop.permute.xlu1 %3888 }
 0x599   :  { %v3507_v28 = vpop.f32.mrb[116].mxu0  ;;  %3894 = vst.msk [vmem:[#allocation10 + $0x8] sm:$0xff] %vm3892_vm8, %v3889_v11 }
 0x59a   :  { %3985 = vrot.lane.b32.xlu0 %v3507_v28, %s4994_s1  ;;  %v4638_v16 = vpop.f32.mrb[117].mxu0  ;;  %3905 = vst.msk [vmem:[#allocation10 + $0x8] sm:$0xff] %vm3903_vm9, %v3900_v45 }
 0x59b   :  { %v3510_v26 = vpop.f32.mrb[118].mxu0 }
 0x59c   :  { %v4639_v30 = vpop.f32.mrb[119].mxu0  ;;  %v3555_v29 = vpop.f32.mrb[116].mxu1 }
 0x59d   :  { %v4644_v27 = vpop.f32.mrb[117].mxu1  ;;  %3987 = vrot.lane.b32.xlu1 %v3555_v29, %s4994_s1  ;;  %v3920_v56 = vpop.permute.xlu0 %3919 }
 0x59e   :  { %v3558_v34 = vpop.f32.mrb[118].mxu1 }
 0x59f   :  { %v4645_v3 = vpop.f32.mrb[119].mxu1 }
 0x5a0   :  { %v3922_v62 = vpop.permute.xlu1 %3921 }
 0x5a1   :  { %v3603_v48 = vpop.f32.mrb[120].mxu0 }
 0x5a2   :  { %3974 = vrot.lane.b32.xlu0 %v3603_v48, %s4995_s25  ;;  %v4650_v38 = vpop.f32.mrb[121].mxu0 }
 0x5a3   :  { %v3606_v10 = vpop.f32.mrb[122].mxu0 }
 0x5a4   :  { %v4651_v22 = vpop.f32.mrb[123].mxu0  ;;  %v3651_v2 = vpop.f32.mrb[120].mxu1 }
 0x5a5   :  { %v3909_v9 = vpop.permute.xlu0 %3908  ;;  %v4656_v47 = vpop.f32.mrb[121].mxu1  ;;  %3976 = vrot.lane.b32.xlu1 %v3651_v2, %s4995_s25 }
 0x5a6   :  { %3915 = vst.msk [vmem:[#allocation10] sm:$0xff] %vm3914_vm10, %v3909_v9  ;;  %v3654_v18 = vpop.f32.mrb[122].mxu1 }
 0x5a7   :  { %v4657_v15 = vpop.f32.mrb[123].mxu1  ;;  %3926 = vst.msk [vmem:[#allocation10] sm:$0xff] %vm3925_vm11, %v3920_v56 }
 0x5a8   :  { %v3911_v57 = vpop.permute.xlu1 %3910 }
 0x5a9   :  { %3916 = vst.msk [vmem:[#allocation10 + $0x8] sm:$0xff] %vm3914_vm10, %v3911_v57 }
 0x5aa   :  { %3927 = vst.msk [vmem:[#allocation10 + $0x8] sm:$0xff] %vm3925_vm11, %v3922_v62 }
 0x5b9   :  { %v3942_v63 = vpop.permute.xlu0 %3941 }
 0x5c2   :  { %v3944_v37 = vpop.permute.xlu1 %3943 }
 0x5c3   :  { %v3931_v31 = vpop.permute.xlu0 %3930 }
 0x5c4   :  { %3937 = vst.msk [vmem:[#allocation10] sm:$0xff] %vm3936_vm12, %v3931_v31 }
 0x5c5   :  { %3948 = vst.msk [vmem:[#allocation10] sm:$0xff] %vm3947_vm13, %v3942_v63 }
 0x5ca   :  { %v3699_v43 = vpop.f32.mrb[124].mxu0  ;;  %v3933_v60 = vpop.permute.xlu1 %3932 }
 0x5cb   :  { %3938 = vst.msk [vmem:[#allocation10 + $0x8] sm:$0xff] %vm3936_vm12, %v3933_v60  ;;  %v4662_v50 = vpop.f32.mrb[125].mxu0 }
 0x5cc   :  { %v3702_v33 = vpop.f32.mrb[126].mxu0  ;;  %3949 = vst.msk [vmem:[#allocation10 + $0x8] sm:$0xff] %vm3947_vm13, %v3944_v37 }
 0x5cd   :  { %v4663_v14 = vpop.f32.mrb[127].mxu0  ;;  %v3747_v6 = vpop.f32.mrb[124].mxu1 }
 0x5ce   :  { %v4668_v44 = vpop.f32.mrb[125].mxu1 }
 0x5cf   :  { %v3750_v0 = vpop.f32.mrb[126].mxu1 }
 0x5d0   :  { %v4669_v7 = vpop.f32.mrb[127].mxu1 }
 0x5d2   :  { %v3795_v55 = vpop.f32.mrb[128].mxu0 }
 0x5d3   :  { %3996 = vrot.lane.b32.xlu0 %v3795_v55, %s4996_s3  ;;  %v4674_v39 = vpop.f32.mrb[129].mxu0 }
 0x5d4   :  { %v3798_v12 = vpop.f32.mrb[130].mxu0 }
 0x5d5   :  { %v4675_v54 = vpop.f32.mrb[131].mxu0  ;;  %v3843_v41 = vpop.f32.mrb[128].mxu1 }
 0x5d6   :  { %3998 = vrot.lane.b32.xlu1 %v3843_v41, %s4996_s3  ;;  %v4680_v49 = vpop.f32.mrb[129].mxu1 }
 0x5d7   :  { %4007 = vrot.lane.b32.xlu0 %v3699_v43, %s4997_s26  ;;  %v3846_v8 = vpop.f32.mrb[130].mxu1 }
 0x5d8   :  { %v4681_v40 = vpop.f32.mrb[131].mxu1 }
 0x5da   :  { %4009 = vrot.lane.b32.xlu1 %v3747_v6, %s4997_s26 }
 0x5fc   :  { %v3964_v53 = vpop.permute.xlu0 %3963 }
 0x5ff   :  { %v3966_v25 = vpop.permute.xlu1 %3965 }
 0x604   :  { %v3953_v35 = vpop.permute.xlu0 %3952 }
 0x605   :  { %3959 = vst.msk [vmem:[#allocation10] sm:$0xff] %vm3958_vm14, %v3953_v35 }
 0x606   :  { %3970 = vst.msk [vmem:[#allocation10] sm:$0xff] %vm3969_vm15, %v3964_v53 }
 0x607   :  { %v3955_v5 = vpop.permute.xlu1 %3954 }
 0x608   :  { %3960 = vst.msk [vmem:[#allocation10 + $0x8] sm:$0xff] %vm3958_vm14, %v3955_v5 }
 0x609   :  { %3971 = vst.msk [vmem:[#allocation10 + $0x8] sm:$0xff] %vm3969_vm15, %v3966_v25 }
 0x60c   :  { %v3986_v17 = vpop.permute.xlu0 %3985 }
 0x60f   :  { %v3988_v4 = vpop.permute.xlu1 %3987 }
 0x614   :  { %v3975_v58 = vpop.permute.xlu0 %3974 }
 0x615   :  { %3981 = vst.msk [vmem:[#allocation10] sm:$0xff] %vm3980_vm0, %v3975_v58 }
 0x616   :  { %3992 = vst.msk [vmem:[#allocation10] sm:$0xff] %vm3991_vm1, %v3986_v17 }
 0x617   :  { %v3977_v46 = vpop.permute.xlu1 %3976 }
 0x618   :  { %3982 = vst.msk [vmem:[#allocation10 + $0x8] sm:$0xff] %vm3980_vm0, %v3977_v46 }
 0x619   :  { %3993 = vst.msk [vmem:[#allocation10 + $0x8] sm:$0xff] %vm3991_vm1, %v3988_v4 }
 0x645   :  { %v3997_v13 = vpop.permute.xlu0 %3996 }
 0x646   :  { %4003 = vst.msk [vmem:[#allocation10] sm:$0xff] %vm4002_vm2, %v3997_v13 }
 0x648   :  { %v3999_v52 = vpop.permute.xlu1 %3998 }
 0x649   :  { %4004 = vst.msk [vmem:[#allocation10 + $0x8] sm:$0xff] %vm4002_vm2, %v3999_v52  ;;  %v4008_v61 = vpop.permute.xlu0 %4007 }
 0x64a   :  { %4014 = vst.msk [vmem:[#allocation10] sm:$0xff] %vm4013_vm3, %v4008_v61 }
 0x64b   :  { %4017 = vst.msk [vmem:[#allocation10] sm:$0xff] %vm4016_vm4, %v6300_v20 }
 0x64c   :  { %v4010_v19 = vpop.permute.xlu1 %4009 }
 0x64d   :  { %4015 = vst.msk [vmem:[#allocation10 + $0x8] sm:$0xff] %vm4013_vm3, %v4010_v19 }
 0x64e   :  { %4018 = vst.msk [vmem:[#allocation10 + $0x8] sm:$0xff] %vm4016_vm4, %v6300_v20 }
 0x64f   :  { %4948 = shalt.err (!%p4945_p8)
}
 0x650   :  { %s4949_s8 = scalar_lea.hbm %s6288_s7, 256 }
 0x651   :  { %p4950_p9 = scmp.ne.s32.totalorder %s6288_s7, %s4949_s8  ;;  %p4953_p10 = scmp.lt.u32.totalorder %s4949_s8, %s6288_s7 }
 0x653   :  { %p4955_p11 = pnand %p4953_p10, %p4950_p9 }
 0x655   :  { %4958 = shalt.err (!%p4955_p11)
}
 0x656   :  { %s4999_s12 = smov 128  }
 0x657   :  { %4030 = dma.vmem_to_hbm [thread:$0]  %s4025_s28, 256, %s6288_s7, [#allocation4], %s4999_s12, %s4999_s12, %s4987_s14  }
 0x658   :  { %4965 = dma.done.wait [#allocation4], 256  }
 0x659   :  { %4966 = vsyncadd [#allocation4], 4294967040 }
 0x65a   :  { %4034 = vsyncpa [#allocation3], 1 }
 0x65b   :  { %4035 = vsyncpa [#allocation6], 1 }
 0x65c   :  { %4036 = vsyncpa [#allocation9], 1 }
 0x65d   :  { %4037 = vsyncpa [#allocation4], 1 }

</bundles_post_ra>
